<compile_context>
chip_gen: v7x
topology: tpu7x:2x2x1
jax: 0.10.0
libtpu: 0.0.40
codegen_flags: <defaults>
</compile_context>

<pallas_src>
import functools

import jax
import jax.numpy as jnp
from jax import lax
from jax.experimental import pallas as pl
from jax.experimental.pallas import tpu as pltpu


# ---------------------------------------------------------------------------
# Flat, ring-padded activation layout helpers
# ---------------------------------------------------------------------------

def _rup(v, m):
    return (v + m - 1) // m * m


def _ring_layout(h, w):
    """Ring-padded, pitch-padded flat layout for an (h, w) activation plane.

    Padded pixel (y, x), y in [0, h+1], x in [0, w+1], lives at flat index
    base + y*pitch + x.  `length` leaves >= pitch+1 slack on both ends so every
    shifted conv-tap slab read stays in bounds.
    """
    pitch = _rup(w + 2, 8)
    base = _rup(pitch + 1, 8)
    mp = (h + 2) * pitch
    length = _rup(base + mp + pitch + 1, 8)
    return pitch, base, mp, length


# ---------------------------------------------------------------------------
# Fused 4-block ConvNet encoder kernel
# ---------------------------------------------------------------------------

def _make_encoder_kernel(H, W, C, G):
    hws = [(H >> i, W >> i) for i in range(4)]          # input plane of each block
    layouts = [_ring_layout(h, w) for (h, w) in hws]
    GC = G * C
    rows0 = H * W
    taps = [(kh, kw) for kh in range(3) for kw in range(3)]

    def kernel(x_ref,
               w1, s1, b1, w2, s2, b2, w3, s3, b3, w4, s4, b4,
               o_ref,
               xp2, xp3, xp4, cat_ref, acc_ref, pm_ref):
        w_refs = (w1, w2, w3, w4)
        s_refs = (s1, s2, s3, s4)
        b_refs = (b1, b2, b3, b4)
        xps = (None, xp2, xp3, xp4)

        # ---- zero only the conv halo ring of the intermediate activation buffers.
        # Done every step (cheap: a few tiny stores); the pooling below only writes
        # the interior rows, and the pitch-pad / end-pad regions never feed any
        # value that is read, so nothing else needs initialization.
        for l in (1, 2, 3):
            h, w = hws[l]
            pitch, base, _, _ = layouts[l]
            xp = xps[l]
            zrow = jnp.zeros((w + 2, GC), jnp.float32)
            xp[base:base + w + 2, :] = zrow                       # top halo row
            bot = base + (h + 1) * pitch
            xp[bot:bot + w + 2, :] = zrow                         # bottom halo row
            zgap = jnp.zeros((pitch - w, GC), jnp.float32)
            for y in range(1, h + 2):     # right halo of row y-1 .. left halo of row y
                s = base + (y - 1) * pitch + (w + 1)
                xp[s:s + (pitch - w), :] = zgap

        # ---- shared 2x2 max-pool: one whole-buffer vertical max pass, then
        #      2 strided reads + 1 max per output row.
        def pool(rows, pitch, in_off, h, w, store):
            pm_ref[0:rows - pitch, :] = jnp.maximum(acc_ref[0:rows - pitch, :],
                                                    acc_ref[pitch:rows, :])
            wo = w // 2
            # TODO(synk): for large resolutions convert this unrolled loop to
            # lax.fori_loop to bound code size / vreg live ranges.
            for y2 in range(h // 2):
                s0 = in_off(y2)
                if wo == 1:
                    a = pm_ref[s0:s0 + 1, :]
                    b = pm_ref[s0 + 1:s0 + 2, :]
                else:
                    a = pm_ref[pl.ds(s0, wo, stride=2), :]
                    b = pm_ref[pl.ds(s0 + 1, wo, stride=2), :]
                store(y2, wo, jnp.maximum(a, b))

        # ---- block 1: input arrives from HBM already im2col'd -> one matmul
        acc_ref[0:rows0, :] = jnp.dot(x_ref[...], w1[...],
                                      preferred_element_type=jnp.float32)
        acc_ref[0:rows0, :] = jnp.maximum(
            acc_ref[0:rows0, :] * s1[...] + b1[...], 0.0)

        pitch2, base2, _, _ = layouts[1]

        def store0(y2, wo, v):
            off = base2 + (y2 + 1) * pitch2 + 1
            xp2[off:off + wo, :] = v

        pool(rows0, W, lambda y2: 2 * y2 * W, H, W, store0)

        # ---- blocks 2..4: tap-concatenated single matmul per block
        for l in range(1, 4):
            h, w = hws[l]
            pitch, base, mp, _ = layouts[l]
            src = xps[l]

            # build the (mp, 9*GC) bf16 contraction operand from 9 shifted slabs
            for t, (kh, kw) in enumerate(taps):
                st = base + (kh - 1) * pitch + (kw - 1)
                cat_ref[0:mp, t * GC:(t + 1) * GC] = (
                    src[st:st + mp, :].astype(jnp.bfloat16))

            acc_ref[0:mp, :] = jnp.dot(cat_ref[0:mp, :], w_refs[l][...],
                                       preferred_element_type=jnp.float32)
            acc_ref[0:mp, :] = jnp.maximum(
                acc_ref[0:mp, :] * s_refs[l][...] + b_refs[l][...], 0.0)

            if l < 3:
                pitch_n, base_n, _, _ = layouts[l + 1]
                dst = xps[l + 1]

                def store(y2, wo, v, dst=dst, base_n=base_n, pitch_n=pitch_n):
                    off = base_n + (y2 + 1) * pitch_n + 1
                    dst[off:off + wo, :] = v
            else:
                def store(y2, wo, v):
                    o_ref[y2 * wo:(y2 + 1) * wo, :] = v

            pool(mp, pitch, lambda y2, pitch=pitch: (2 * y2 + 1) * pitch + 1,
                 h, w, store)

    return kernel


# ---------------------------------------------------------------------------
# Wrapper: layout prep, block-diagonal weight packing, pallas_call
# ---------------------------------------------------------------------------

@functools.partial(jax.jit, static_argnames=("group",))
def convnet_encoder(x_nchw, params, group=4):
    """x_nchw: (N, Cin, H, W); params: 4 x (w(Co,Ci,3,3), bias, gamma, beta, rmean, rvar)."""
    G = group
    x = jnp.transpose(x_nchw, (0, 2, 3, 1)).astype(jnp.float32)       # NHWC
    N, H, W, Cin = x.shape
    assert H % 16 == 0 and W % 16 == 0, "4 pooling stages need H, W % 16 == 0"

    c_outs = [int(p[0].shape[0]) for p in params]
    assert len(set(c_outs)) == 1, "encoder assumes equal channel width per block"
    C = c_outs[0]
    GC = G * C
    hws = [(H >> i, W >> i) for i in range(4)]
    layouts = [_ring_layout(h, w) for (h, w) in hws]
    hf, wf = H // 16, W // 16
    out_rows = hf * wf

    # pack `group` images along the lane axis -> pad N up to a multiple of G
    NG = -(-N // G)
    Npad = NG * G
    if Npad != N:
        x = jnp.concatenate(
            [x, jnp.zeros((Npad - N, H, W, Cin), x.dtype)], axis=0)

    # ---- block-1 operand: im2col in the wrapper -> (H*W, G*9*Cin) bf16 per step
    xpad = jnp.pad(x, ((0, 0), (1, 1), (1, 1), (0, 0)))
    slabs = [xpad[:, kh:kh + H, kw:kw + W, :]
             for kh in range(3) for kw in range(3)]
    xi = jnp.stack(slabs, axis=3).reshape(Npad, H * W, 9 * Cin)
    xi = (xi.reshape(NG, G, H * W, 9 * Cin)
            .transpose(0, 2, 1, 3)
            .reshape(NG, H * W, G * 9 * Cin)
            .astype(jnp.bfloat16))

    # ---- weights (bf16, block-diagonal over packed images) + folded BN scale/shift
    eps = 1e-5
    operands = [xi]
    in_specs = [pl.BlockSpec((None, H * W, G * 9 * Cin), lambda n: (n, 0, 0))]
    for li, (w, bconv, gamma, beta, rmean, rvar) in enumerate(params):
        co, ci = int(w.shape[0]), int(w.shape[1])
        inv = (gamma / jnp.sqrt(rvar + eps)).astype(jnp.float32)
        scale = jnp.tile(inv, G).reshape(1, G * co).astype(jnp.float32)
        shift = jnp.tile(beta + (bconv - rmean) * inv, G).reshape(1, G * co)
        shift = shift.astype(jnp.float32)
        if li == 0:
            # K order = img*(9*ci) + tap*ci + cin  (matches wrapper im2col packing)
            ws = jnp.transpose(w, (2, 3, 1, 0)).reshape(9 * ci, co)
            bd = jnp.zeros((G, 9 * ci, G, co), jnp.float32)
            for g in range(G):
                bd = bd.at[g, :, g, :].set(ws)
            wfull = bd.reshape(G * 9 * ci, G * co).astype(jnp.bfloat16)
        else:
            # K order = tap*(G*ci) + img*ci + cin (matches in-kernel tap concat)
            ws = jnp.transpose(w, (2, 3, 1, 0)).reshape(9, ci, co)
            bd = jnp.zeros((9, G, ci, G, co), jnp.float32)
            for g in range(G):
                bd = bd.at[:, g, :, g, :].set(ws)
            wfull = bd.reshape(9 * G * ci, G * co).astype(jnp.bfloat16)
        operands += [wfull, scale, shift]
        in_specs += [
            pl.BlockSpec(tuple(wfull.shape), lambda n: (0, 0)),
            pl.BlockSpec((1, G * co), lambda n: (0, 0)),
            pl.BlockSpec((1, G * co), lambda n: (0, 0)),
        ]

    mp_234 = [layouts[l][2] for l in range(1, 4)]
    lens_234 = [layouts[l][3] for l in range(1, 4)]
    max_mp = max(mp_234)
    max_rows = max([H * W] + mp_234)

    scratch_shapes = (
        [pltpu.VMEM((lens_234[i], GC), jnp.float32) for i in range(3)]  # xp2..xp4
        + [pltpu.VMEM((max_mp, 9 * GC), jnp.bfloat16),                  # tap concat
           pltpu.VMEM((max_rows, GC), jnp.float32),                     # conv acc
           pltpu.VMEM((max_rows, GC), jnp.float32)]                     # pool vmax
    )

    kernel = _make_encoder_kernel(H, W, C, G)
    out = pl.pallas_call(
        kernel,
        out_shape=jax.ShapeDtypeStruct((NG, out_rows, GC), jnp.float32),
        grid_spec=pltpu.PrefetchScalarGridSpec(
            num_scalar_prefetch=0,
            grid=(NG,),
            in_specs=in_specs,
            out_specs=pl.BlockSpec((None, out_rows, GC), lambda n: (n, 0, 0)),
            scratch_shapes=scratch_shapes,
        ),
        compiler_params=pltpu.CompilerParams(
            dimension_semantics=("parallel",)),
        # TODO(synk): for large inputs (e.g. 84px / 8-image packing) on v5e raise
        # vmem_limit_bytes; at these sizes the default scoped limit is ample.
    )(*operands)

    # unpack lane-packed image groups; match PyTorch's x.view(N, -1) on NCHW.
    out = (out.reshape(NG, out_rows, G, C)
              .transpose(0, 2, 1, 3)
              .reshape(Npad, out_rows, C)[:N])
    return jnp.transpose(out, (0, 2, 1)).reshape(N, C * out_rows)


# ---------------------------------------------------------------------------
# Pure-JAX/XLA reference (for correctness check only)
# ---------------------------------------------------------------------------

def convnet_encoder_reference(x_nchw, params):
    x = jnp.transpose(x_nchw, (0, 2, 3, 1)).astype(jnp.float32)
    eps = 1e-5
    for (w, bconv, gamma, beta, rmean, rvar) in params:
        out = lax.conv_general_dilated(
            x, jnp.transpose(w, (2, 3, 1, 0)),
            window_strides=(1, 1), padding="SAME",
            dimension_numbers=("NHWC", "HWIO", "NHWC"),
            precision=lax.Precision.HIGHEST)
        out = out + bconv.reshape(1, 1, 1, -1)
        inv = gamma / jnp.sqrt(rvar + eps)
        out = (out - rmean) * inv + beta
        out = jnp.maximum(out, 0.0)
        x = lax.reduce_window(out, -jnp.inf, lax.max,
                              (1, 2, 2, 1), (1, 2, 2, 1), "VALID")
    n = x.shape[0]
    return jnp.transpose(x, (0, 3, 1, 2)).reshape(n, -1)


# ---------------------------------------------------------------------------
# FewShotModel (base class) forward
# ---------------------------------------------------------------------------

def split_instances(way, shot, query):
    support_idx = jnp.arange(way * shot, dtype=jnp.int32).reshape(1, shot, way)
    query_idx = jnp.arange(way * shot, way * (shot + query),
                           dtype=jnp.int32).reshape(1, query, way)
    return support_idx, query_idx


def few_shot_model_forward(x, params, way, shot, query, get_feature=False):
    if get_feature:
        if x.ndim == 5:
            x = jnp.squeeze(x, axis=0)
        return convnet_encoder(x, params)
    x = jnp.squeeze(x, axis=0)                 # (1, N, C, H, W) -> (N, C, H, W)
    instance_embs = convnet_encoder(x, params)
    support_idx, query_idx = split_instances(way, shot, query)
    # TODO(synk): `_forward` is abstract in the base class (raises NotImplementedError);
    # returning the embeddings and split indices instead of subclass-specific logits.
    return instance_embs, support_idx, query_idx


# ---------------------------------------------------------------------------
# Deterministic parameter init (He-init conv, bias, eval-mode BN stats)
# ---------------------------------------------------------------------------

def init_convnet_params(key, x_dim=3, hid_dim=32, z_dim=32):
    dims = [(x_dim, hid_dim), (hid_dim, hid_dim), (hid_dim, hid_dim), (hid_dim, z_dim)]
    params = []
    for cin, cout in dims:
        key, k1, k2, k3, k4, k5, k6 = jax.random.split(key, 7)
        fan_in = cin * 9
        w = jax.random.normal(k1, (cout, cin, 3, 3), jnp.float32) * (2.0 / fan_in) ** 0.5
        bconv = 0.05 * jax.random.normal(k6, (cout,), jnp.float32)
        gamma = 1.0 + 0.1 * jax.random.normal(k2, (cout,), jnp.float32)
        beta = 0.1 * jax.random.normal(k3, (cout,), jnp.float32)
        rmean = 0.1 * jax.random.normal(k4, (cout,), jnp.float32)
        rvar = jnp.abs(1.0 + 0.1 * jax.random.normal(k5, (cout,), jnp.float32))
        params.append((w, bconv, gamma, beta, rmean, rvar))
    return params


if __name__ == "__main__":
    key = jax.random.PRNGKey(0)
    kx, kp = jax.random.split(key)

    # eval_way=2, eval_shot=1, eval_query=2  ->  N = way*(shot+query) = 6 instances
    way, shot, query = 2, 1, 2
    N = way * (shot + query)
    C_in, H, W = 3, 16, 16
    hid = 32

    x = jax.random.normal(kx, (1, N, C_in, H, W), jnp.float32)   # leading dim squeezed
    params = init_convnet_params(kp, x_dim=C_in, hid_dim=hid, z_dim=hid)

    embs, sidx, qidx = few_shot_model_forward(x, params, way, shot, query)
    jax.block_until_ready(embs)

    # 16 -> 8 -> 4 -> 2 -> 1 spatial; flattened embedding dim = hid * 1 * 1
    assert embs.shape == (N, hid), embs.shape
    assert sidx.shape == (1, shot, way) and qidx.shape == (1, query, way)

    # correctness vs. pure-XLA reference (bf16 MXU inputs -> loose tolerance)
    ref = convnet_encoder_reference(jnp.squeeze(x, 0), params)
    err = jnp.max(jnp.abs(embs - ref)) / (jnp.max(jnp.abs(ref)) + 1e-6)
    assert float(err) < 0.08, f"max error relative to peak = {float(err)}"

    print("KERNEL_OK")
</pallas_src>

<mosaic_0001>
module attributes {stable_mosaic.version = 11 : i64} {
  func.func @kernel(%arg0: i32, %arg1: memref<1x256x108xbf16, #tpu.memory_space<vmem>>, %arg2: memref<108x128xbf16, #tpu.memory_space<vmem>>, %arg3: memref<1x128xf32, #tpu.memory_space<vmem>>, %arg4: memref<1x128xf32, #tpu.memory_space<vmem>>, %arg5: memref<1152x128xbf16, #tpu.memory_space<vmem>>, %arg6: memref<1x128xf32, #tpu.memory_space<vmem>>, %arg7: memref<1x128xf32, #tpu.memory_space<vmem>>, %arg8: memref<1152x128xbf16, #tpu.memory_space<vmem>>, %arg9: memref<1x128xf32, #tpu.memory_space<vmem>>, %arg10: memref<1x128xf32, #tpu.memory_space<vmem>>, %arg11: memref<1152x128xbf16, #tpu.memory_space<vmem>>, %arg12: memref<1x128xf32, #tpu.memory_space<vmem>>, %arg13: memref<1x128xf32, #tpu.memory_space<vmem>>, %arg14: memref<1x1x128xf32, #tpu.memory_space<vmem>>, %arg15: memref<208x128xf32, #tpu.memory_space<vmem>>, %arg16: memref<80x128xf32, #tpu.memory_space<vmem>>, %arg17: memref<64x128xf32, #tpu.memory_space<vmem>>, %arg18: memref<160x1152xbf16, #tpu.memory_space<vmem>>, %arg19: memref<256x128xf32, #tpu.memory_space<vmem>>, %arg20: memref<256x128xf32, #tpu.memory_space<vmem>>) attributes {dimension_semantics = [#tpu.dimension_semantics<parallel>], iteration_bounds = array<i64: 2>, scalar_prefetch = 0 : i64, scratch_operands = 6 : i64, tpu.core_type = #tpu.core_type<tc>, window_params = [{transform_indices = @transform_0, window_bounds = array<i64: 1, 256, 108>}, {pipeline_mode = #tpu.pipeline_mode<synchronous>, transform_indices = @transform_1, window_bounds = array<i64: 108, 128>}, {pipeline_mode = #tpu.pipeline_mode<synchronous>, transform_indices = @transform_2, window_bounds = array<i64: 1, 128>}, {pipeline_mode = #tpu.pipeline_mode<synchronous>, transform_indices = @transform_3, window_bounds = array<i64: 1, 128>}, {pipeline_mode = #tpu.pipeline_mode<synchronous>, transform_indices = @transform_4, window_bounds = array<i64: 1152, 128>}, {pipeline_mode = #tpu.pipeline_mode<synchronous>, transform_indices = @transform_5, window_bounds = array<i64: 1, 128>}, {pipeline_mode = #tpu.pipeline_mode<synchronous>, transform_indices = @transform_6, window_bounds = array<i64: 1, 128>}, {pipeline_mode = #tpu.pipeline_mode<synchronous>, transform_indices = @transform_7, window_bounds = array<i64: 1152, 128>}, {pipeline_mode = #tpu.pipeline_mode<synchronous>, transform_indices = @transform_8, window_bounds = array<i64: 1, 128>}, {pipeline_mode = #tpu.pipeline_mode<synchronous>, transform_indices = @transform_9, window_bounds = array<i64: 1, 128>}, {pipeline_mode = #tpu.pipeline_mode<synchronous>, transform_indices = @transform_10, window_bounds = array<i64: 1152, 128>}, {pipeline_mode = #tpu.pipeline_mode<synchronous>, transform_indices = @transform_11, window_bounds = array<i64: 1, 128>}, {pipeline_mode = #tpu.pipeline_mode<synchronous>, transform_indices = @transform_12, window_bounds = array<i64: 1, 128>}, {transform_indices = @transform_13, window_bounds = array<i64: 1, 1, 128>}]} {
    %cst = arith.constant 0.000000e+00 : f32
    %0 = vector.broadcast %cst : f32 to vector<10x128xf32>
    %c24 = arith.constant 24 : index
    %c0 = arith.constant 0 : index
    %1 = vector.load %arg15[%c24, %c0] : memref<208x128xf32, #tpu.memory_space<vmem>>, vector<10x128xf32>
    tpu.vector_store %arg15[%c24, %c0], %0 {strides = array<i32>} : memref<208x128xf32, #tpu.memory_space<vmem>>, vector<10x128xf32>,
    %c168 = arith.constant 168 : index
    %c0_0 = arith.constant 0 : index
    %2 = vector.load %arg15[%c168, %c0_0] : memref<208x128xf32, #tpu.memory_space<vmem>>, vector<10x128xf32>
    tpu.vector_store %arg15[%c168, %c0_0], %0 {strides = array<i32>} : memref<208x128xf32, #tpu.memory_space<vmem>>, vector<10x128xf32>,
    %cst_1 = arith.constant 0.000000e+00 : f32
    %3 = vector.broadcast %cst_1 : f32 to vector<8x128xf32>
    %c33 = arith.constant 33 : index
    %c0_2 = arith.constant 0 : index
    %4 = vector.load %arg15[%c33, %c0_2] : memref<208x128xf32, #tpu.memory_space<vmem>>, vector<8x128xf32>
    tpu.vector_store %arg15[%c33, %c0_2], %3 {strides = array<i32>} : memref<208x128xf32, #tpu.memory_space<vmem>>, vector<8x128xf32>,
    %c49 = arith.constant 49 : index
    %c0_3 = arith.constant 0 : index
    %5 = vector.load %arg15[%c49, %c0_3] : memref<208x128xf32, #tpu.memory_space<vmem>>, vector<8x128xf32>
    tpu.vector_store %arg15[%c49, %c0_3], %3 {strides = array<i32>} : memref<208x128xf32, #tpu.memory_space<vmem>>, vector<8x128xf32>,
    %c65 = arith.constant 65 : index
    %c0_4 = arith.constant 0 : index
    %6 = vector.load %arg15[%c65, %c0_4] : memref<208x128xf32, #tpu.memory_space<vmem>>, vector<8x128xf32>
    tpu.vector_store %arg15[%c65, %c0_4], %3 {strides = array<i32>} : memref<208x128xf32, #tpu.memory_space<vmem>>, vector<8x128xf32>,
    %c81 = arith.constant 81 : index
    %c0_5 = arith.constant 0 : index
    %7 = vector.load %arg15[%c81, %c0_5] : memref<208x128xf32, #tpu.memory_space<vmem>>, vector<8x128xf32>
    tpu.vector_store %arg15[%c81, %c0_5], %3 {strides = array<i32>} : memref<208x128xf32, #tpu.memory_space<vmem>>, vector<8x128xf32>,
    %c97 = arith.constant 97 : index
    %c0_6 = arith.constant 0 : index
    %8 = vector.load %arg15[%c97, %c0_6] : memref<208x128xf32, #tpu.memory_space<vmem>>, vector<8x128xf32>
    tpu.vector_store %arg15[%c97, %c0_6], %3 {strides = array<i32>} : memref<208x128xf32, #tpu.memory_space<vmem>>, vector<8x128xf32>,
    %c113 = arith.constant 113 : index
    %c0_7 = arith.constant 0 : index
    %9 = vector.load %arg15[%c113, %c0_7] : memref<208x128xf32, #tpu.memory_space<vmem>>, vector<8x128xf32>
    tpu.vector_store %arg15[%c113, %c0_7], %3 {strides = array<i32>} : memref<208x128xf32, #tpu.memory_space<vmem>>, vector<8x128xf32>,
    %c129 = arith.constant 129 : index
    %c0_8 = arith.constant 0 : index
    %10 = vector.load %arg15[%c129, %c0_8] : memref<208x128xf32, #tpu.memory_space<vmem>>, vector<8x128xf32>
    tpu.vector_store %arg15[%c129, %c0_8], %3 {strides = array<i32>} : memref<208x128xf32, #tpu.memory_space<vmem>>, vector<8x128xf32>,
    %c145 = arith.constant 145 : index
    %c0_9 = arith.constant 0 : index
    %11 = vector.load %arg15[%c145, %c0_9] : memref<208x128xf32, #tpu.memory_space<vmem>>, vector<8x128xf32>
    tpu.vector_store %arg15[%c145, %c0_9], %3 {strides = array<i32>} : memref<208x128xf32, #tpu.memory_space<vmem>>, vector<8x128xf32>,
    %c161 = arith.constant 161 : index
    %c0_10 = arith.constant 0 : index
    %12 = vector.load %arg15[%c161, %c0_10] : memref<208x128xf32, #tpu.memory_space<vmem>>, vector<8x128xf32>
    tpu.vector_store %arg15[%c161, %c0_10], %3 {strides = array<i32>} : memref<208x128xf32, #tpu.memory_space<vmem>>, vector<8x128xf32>,
    %cst_11 = arith.constant 0.000000e+00 : f32
    %13 = vector.broadcast %cst_11 : f32 to vector<6x128xf32>
    %c16 = arith.constant 16 : index
    %c0_12 = arith.constant 0 : index
    %14 = vector.load %arg16[%c16, %c0_12] : memref<80x128xf32, #tpu.memory_space<vmem>>, vector<6x128xf32>
    tpu.vector_store %arg16[%c16, %c0_12], %13 {strides = array<i32>} : memref<80x128xf32, #tpu.memory_space<vmem>>, vector<6x128xf32>,
    %c56 = arith.constant 56 : index
    %c0_13 = arith.constant 0 : index
    %15 = vector.load %arg16[%c56, %c0_13] : memref<80x128xf32, #tpu.memory_space<vmem>>, vector<6x128xf32>
    tpu.vector_store %arg16[%c56, %c0_13], %13 {strides = array<i32>} : memref<80x128xf32, #tpu.memory_space<vmem>>, vector<6x128xf32>,
    %cst_14 = arith.constant 0.000000e+00 : f32
    %16 = vector.broadcast %cst_14 : f32 to vector<4x128xf32>
    %c21 = arith.constant 21 : index
    %c0_15 = arith.constant 0 : index
    %17 = vector.load %arg16[%c21, %c0_15] : memref<80x128xf32, #tpu.memory_space<vmem>>, vector<4x128xf32>
    tpu.vector_store %arg16[%c21, %c0_15], %16 {strides = array<i32>} : memref<80x128xf32, #tpu.memory_space<vmem>>, vector<4x128xf32>,
    %c29 = arith.constant 29 : index
    %c0_16 = arith.constant 0 : index
    %18 = vector.load %arg16[%c29, %c0_16] : memref<80x128xf32, #tpu.memory_space<vmem>>, vector<4x128xf32>
    tpu.vector_store %arg16[%c29, %c0_16], %16 {strides = array<i32>} : memref<80x128xf32, #tpu.memory_space<vmem>>, vector<4x128xf32>,
    %c37 = arith.constant 37 : index
    %c0_17 = arith.constant 0 : index
    %19 = vector.load %arg16[%c37, %c0_17] : memref<80x128xf32, #tpu.memory_space<vmem>>, vector<4x128xf32>
    tpu.vector_store %arg16[%c37, %c0_17], %16 {strides = array<i32>} : memref<80x128xf32, #tpu.memory_space<vmem>>, vector<4x128xf32>,
    %c45 = arith.constant 45 : index
    %c0_18 = arith.constant 0 : index
    %20 = vector.load %arg16[%c45, %c0_18] : memref<80x128xf32, #tpu.memory_space<vmem>>, vector<4x128xf32>
    tpu.vector_store %arg16[%c45, %c0_18], %16 {strides = array<i32>} : memref<80x128xf32, #tpu.memory_space<vmem>>, vector<4x128xf32>,
    %c53 = arith.constant 53 : index
    %c0_19 = arith.constant 0 : index
    %21 = vector.load %arg16[%c53, %c0_19] : memref<80x128xf32, #tpu.memory_space<vmem>>, vector<4x128xf32>
    tpu.vector_store %arg16[%c53, %c0_19], %16 {strides = array<i32>} : memref<80x128xf32, #tpu.memory_space<vmem>>, vector<4x128xf32>,
    %cst_20 = arith.constant 0.000000e+00 : f32
    %22 = vector.broadcast %cst_20 : f32 to vector<4x128xf32>
    %c16_21 = arith.constant 16 : index
    %c0_22 = arith.constant 0 : index
    %23 = vector.load %arg17[%c16_21, %c0_22] : memref<64x128xf32, #tpu.memory_space<vmem>>, vector<4x128xf32>
    tpu.vector_store %arg17[%c16_21, %c0_22], %22 {strides = array<i32>} : memref<64x128xf32, #tpu.memory_space<vmem>>, vector<4x128xf32>,
    %c40 = arith.constant 40 : index
    %c0_23 = arith.constant 0 : index
    %24 = vector.load %arg17[%c40, %c0_23] : memref<64x128xf32, #tpu.memory_space<vmem>>, vector<4x128xf32>
    tpu.vector_store %arg17[%c40, %c0_23], %22 {strides = array<i32>} : memref<64x128xf32, #tpu.memory_space<vmem>>, vector<4x128xf32>,
    %cst_24 = arith.constant 0.000000e+00 : f32
    %25 = vector.broadcast %cst_24 : f32 to vector<6x128xf32>
    %c19 = arith.constant 19 : index
    %c0_25 = arith.constant 0 : index
    %26 = vector.load %arg17[%c19, %c0_25] : memref<64x128xf32, #tpu.memory_space<vmem>>, vector<6x128xf32>
    tpu.vector_store %arg17[%c19, %c0_25], %25 {strides = array<i32>} : memref<64x128xf32, #tpu.memory_space<vmem>>, vector<6x128xf32>,
    %c27 = arith.constant 27 : index
    %c0_26 = arith.constant 0 : index
    %27 = vector.load %arg17[%c27, %c0_26] : memref<64x128xf32, #tpu.memory_space<vmem>>, vector<6x128xf32>
    tpu.vector_store %arg17[%c27, %c0_26], %25 {strides = array<i32>} : memref<64x128xf32, #tpu.memory_space<vmem>>, vector<6x128xf32>,
    %c35 = arith.constant 35 : index
    %c0_27 = arith.constant 0 : index
    %28 = vector.load %arg17[%c35, %c0_27] : memref<64x128xf32, #tpu.memory_space<vmem>>, vector<6x128xf32>
    tpu.vector_store %arg17[%c35, %c0_27], %25 {strides = array<i32>} : memref<64x128xf32, #tpu.memory_space<vmem>>, vector<6x128xf32>,
    %c0_28 = arith.constant 0 : index
    %c0_29 = arith.constant 0 : index
    %c0_30 = arith.constant 0 : index
    %29 = vector.load %arg1[%c0_28, %c0_29, %c0_30] : memref<1x256x108xbf16, #tpu.memory_space<vmem>>, vector<1x256x108xbf16>
    %30 = vector.shape_cast %29 : vector<1x256x108xbf16> to vector<256x108xbf16>
    %c0_31 = arith.constant 0 : index
    %c0_32 = arith.constant 0 : index
    %31 = vector.load %arg2[%c0_31, %c0_32] : memref<108x128xbf16, #tpu.memory_space<vmem>>, vector<108x128xbf16>
    %cst_33 = arith.constant dense<0.000000e+00> : vector<256x128xf32>
    %32 = tpu.matmul %30, %31, %cst_33 {dimension_numbers = #tpu.dot_dimension_numbers<[1], [0], [0], [1], [0, 0, 1, 1], [], []>} : vector<256x108xbf16>, vector<108x128xbf16>, vector<256x128xf32> -> vector<256x128xf32>
    %c0_34 = arith.constant 0 : index
    %c0_35 = arith.constant 0 : index
    %33 = vector.load %arg19[%c0_34, %c0_35] : memref<256x128xf32, #tpu.memory_space<vmem>>, vector<256x128xf32>
    tpu.vector_store %arg19[%c0_34, %c0_35], %32 {strides = array<i32>} : memref<256x128xf32, #tpu.memory_space<vmem>>, vector<256x128xf32>,
    %c0_36 = arith.constant 0 : index
    %c0_37 = arith.constant 0 : index
    %34 = vector.load %arg19[%c0_36, %c0_37] : memref<256x128xf32, #tpu.memory_space<vmem>>, vector<256x128xf32>
    %c0_38 = arith.constant 0 : index
    %c0_39 = arith.constant 0 : index
    %35 = vector.load %arg3[%c0_38, %c0_39] : memref<1x128xf32, #tpu.memory_space<vmem>>, vector<1x128xf32>
    %36 = vector.broadcast %35 : vector<1x128xf32> to vector<256x128xf32>
    %37 = arith.mulf %34, %36 : vector<256x128xf32>
    %c0_40 = arith.constant 0 : index
    %c0_41 = arith.constant 0 : index
    %38 = vector.load %arg4[%c0_40, %c0_41] : memref<1x128xf32, #tpu.memory_space<vmem>>, vector<1x128xf32>
    %39 = vector.broadcast %38 : vector<1x128xf32> to vector<256x128xf32>
    %40 = arith.addf %37, %39 : vector<256x128xf32>
    %cst_42 = arith.constant 0.000000e+00 : f32
    %41 = vector.broadcast %cst_42 : f32 to vector<256x128xf32>
    %42 = arith.maximumf %40, %41 : vector<256x128xf32>
    %c0_43 = arith.constant 0 : index
    %c0_44 = arith.constant 0 : index
    %43 = vector.load %arg19[%c0_43, %c0_44] : memref<256x128xf32, #tpu.memory_space<vmem>>, vector<256x128xf32>
    tpu.vector_store %arg19[%c0_43, %c0_44], %42 {strides = array<i32>} : memref<256x128xf32, #tpu.memory_space<vmem>>, vector<256x128xf32>,
    %c0_45 = arith.constant 0 : index
    %c0_46 = arith.constant 0 : index
    %44 = vector.load %arg19[%c0_45, %c0_46] : memref<256x128xf32, #tpu.memory_space<vmem>>, vector<240x128xf32>
    %c16_47 = arith.constant 16 : index
    %c0_48 = arith.constant 0 : index
    %45 = vector.load %arg19[%c16_47, %c0_48] : memref<256x128xf32, #tpu.memory_space<vmem>>, vector<240x128xf32>
    %46 = arith.maximumf %44, %45 : vector<240x128xf32>
    %c0_49 = arith.constant 0 : index
    %c0_50 = arith.constant 0 : index
    %47 = vector.load %arg20[%c0_49, %c0_50] : memref<256x128xf32, #tpu.memory_space<vmem>>, vector<240x128xf32>
    tpu.vector_store %arg20[%c0_49, %c0_50], %46 {strides = array<i32>} : memref<256x128xf32, #tpu.memory_space<vmem>>, vector<240x128xf32>,
    %c0_51 = arith.constant 0 : index
    %c0_52 = arith.constant 0 : index
    %48 = tpu.strided_load %arg20[%c0_51, %c0_52] {strides = array<i32: 2, 1>} : memref<256x128xf32, #tpu.memory_space<vmem>>, vector<8x128xf32>
    %c1 = arith.constant 1 : index
    %c0_53 = arith.constant 0 : index
    %49 = tpu.strided_load %arg20[%c1, %c0_53] {strides = array<i32: 2, 1>} : memref<256x128xf32, #tpu.memory_space<vmem>>, vector<8x128xf32>
    %50 = arith.maximumf %48, %49 : vector<8x128xf32>
    %c41 = arith.constant 41 : index
    %c0_54 = arith.constant 0 : index
    %51 = vector.load %arg15[%c41, %c0_54] : memref<208x128xf32, #tpu.memory_space<vmem>>, vector<8x128xf32>
    tpu.vector_store %arg15[%c41, %c0_54], %50 {strides = array<i32>} : memref<208x128xf32, #tpu.memory_space<vmem>>, vector<8x128xf32>,
    %c32 = arith.constant 32 : index
    %c0_55 = arith.constant 0 : index
    %52 = tpu.strided_load %arg20[%c32, %c0_55] {strides = array<i32: 2, 1>} : memref<256x128xf32, #tpu.memory_space<vmem>>, vector<8x128xf32>
    %c33_56 = arith.constant 33 : index
    %c0_57 = arith.constant 0 : index
    %53 = tpu.strided_load %arg20[%c33_56, %c0_57] {strides = array<i32: 2, 1>} : memref<256x128xf32, #tpu.memory_space<vmem>>, vector<8x128xf32>
    %54 = arith.maximumf %52, %53 : vector<8x128xf32>
    %c57 = arith.constant 57 : index
    %c0_58 = arith.constant 0 : index
    %55 = vector.load %arg15[%c57, %c0_58] : memref<208x128xf32, #tpu.memory_space<vmem>>, vector<8x128xf32>
    tpu.vector_store %arg15[%c57, %c0_58], %54 {strides = array<i32>} : memref<208x128xf32, #tpu.memory_space<vmem>>, vector<8x128xf32>,
    %c64 = arith.constant 64 : index
    %c0_59 = arith.constant 0 : index
    %56 = tpu.strided_load %arg20[%c64, %c0_59] {strides = array<i32: 2, 1>} : memref<256x128xf32, #tpu.memory_space<vmem>>, vector<8x128xf32>
    %c65_60 = arith.constant 65 : index
    %c0_61 = arith.constant 0 : index
    %57 = tpu.strided_load %arg20[%c65_60, %c0_61] {strides = array<i32: 2, 1>} : memref<256x128xf32, #tpu.memory_space<vmem>>, vector<8x128xf32>
    %58 = arith.maximumf %56, %57 : vector<8x128xf32>
    %c73 = arith.constant 73 : index
    %c0_62 = arith.constant 0 : index
    %59 = vector.load %arg15[%c73, %c0_62] : memref<208x128xf32, #tpu.memory_space<vmem>>, vector<8x128xf32>
    tpu.vector_store %arg15[%c73, %c0_62], %58 {strides = array<i32>} : memref<208x128xf32, #tpu.memory_space<vmem>>, vector<8x128xf32>,
    %c96 = arith.constant 96 : index
    %c0_63 = arith.constant 0 : index
    %60 = tpu.strided_load %arg20[%c96, %c0_63] {strides = array<i32: 2, 1>} : memref<256x128xf32, #tpu.memory_space<vmem>>, vector<8x128xf32>
    %c97_64 = arith.constant 97 : index
    %c0_65 = arith.constant 0 : index
    %61 = tpu.strided_load %arg20[%c97_64, %c0_65] {strides = array<i32: 2, 1>} : memref<256x128xf32, #tpu.memory_space<vmem>>, vector<8x128xf32>
    %62 = arith.maximumf %60, %61 : vector<8x128xf32>
    %c89 = arith.constant 89 : index
    %c0_66 = arith.constant 0 : index
    %63 = vector.load %arg15[%c89, %c0_66] : memref<208x128xf32, #tpu.memory_space<vmem>>, vector<8x128xf32>
    tpu.vector_store %arg15[%c89, %c0_66], %62 {strides = array<i32>} : memref<208x128xf32, #tpu.memory_space<vmem>>, vector<8x128xf32>,
    %c128 = arith.constant 128 : index
    %c0_67 = arith.constant 0 : index
    %64 = tpu.strided_load %arg20[%c128, %c0_67] {strides = array<i32: 2, 1>} : memref<256x128xf32, #tpu.memory_space<vmem>>, vector<8x128xf32>
    %c129_68 = arith.constant 129 : index
    %c0_69 = arith.constant 0 : index
    %65 = tpu.strided_load %arg20[%c129_68, %c0_69] {strides = array<i32: 2, 1>} : memref<256x128xf32, #tpu.memory_space<vmem>>, vector<8x128xf32>
    %66 = arith.maximumf %64, %65 : vector<8x128xf32>
    %c105 = arith.constant 105 : index
    %c0_70 = arith.constant 0 : index
    %67 = vector.load %arg15[%c105, %c0_70] : memref<208x128xf32, #tpu.memory_space<vmem>>, vector<8x128xf32>
    tpu.vector_store %arg15[%c105, %c0_70], %66 {strides = array<i32>} : memref<208x128xf32, #tpu.memory_space<vmem>>, vector<8x128xf32>,
    %c160 = arith.constant 160 : index
    %c0_71 = arith.constant 0 : index
    %68 = tpu.strided_load %arg20[%c160, %c0_71] {strides = array<i32: 2, 1>} : memref<256x128xf32, #tpu.memory_space<vmem>>, vector<8x128xf32>
    %c161_72 = arith.constant 161 : index
    %c0_73 = arith.constant 0 : index
    %69 = tpu.strided_load %arg20[%c161_72, %c0_73] {strides = array<i32: 2, 1>} : memref<256x128xf32, #tpu.memory_space<vmem>>, vector<8x128xf32>
    %70 = arith.maximumf %68, %69 : vector<8x128xf32>
    %c121 = arith.constant 121 : index
    %c0_74 = arith.constant 0 : index
    %71 = vector.load %arg15[%c121, %c0_74] : memref<208x128xf32, #tpu.memory_space<vmem>>, vector<8x128xf32>
    tpu.vector_store %arg15[%c121, %c0_74], %70 {strides = array<i32>} : memref<208x128xf32, #tpu.memory_space<vmem>>, vector<8x128xf32>,
    %c192 = arith.constant 192 : index
    %c0_75 = arith.constant 0 : index
    %72 = tpu.strided_load %arg20[%c192, %c0_75] {strides = array<i32: 2, 1>} : memref<256x128xf32, #tpu.memory_space<vmem>>, vector<8x128xf32>
    %c193 = arith.constant 193 : index
    %c0_76 = arith.constant 0 : index
    %73 = tpu.strided_load %arg20[%c193, %c0_76] {strides = array<i32: 2, 1>} : memref<256x128xf32, #tpu.memory_space<vmem>>, vector<8x128xf32>
    %74 = arith.maximumf %72, %73 : vector<8x128xf32>
    %c137 = arith.constant 137 : index
    %c0_77 = arith.constant 0 : index
    %75 = vector.load %arg15[%c137, %c0_77] : memref<208x128xf32, #tpu.memory_space<vmem>>, vector<8x128xf32>
    tpu.vector_store %arg15[%c137, %c0_77], %74 {strides = array<i32>} : memref<208x128xf32, #tpu.memory_space<vmem>>, vector<8x128xf32>,
    %c224 = arith.constant 224 : index
    %c0_78 = arith.constant 0 : index
    %76 = tpu.strided_load %arg20[%c224, %c0_78] {strides = array<i32: 2, 1>} : memref<256x128xf32, #tpu.memory_space<vmem>>, vector<8x128xf32>
    %c225 = arith.constant 225 : index
    %c0_79 = arith.constant 0 : index
    %77 = tpu.strided_load %arg20[%c225, %c0_79] {strides = array<i32: 2, 1>} : memref<256x128xf32, #tpu.memory_space<vmem>>, vector<8x128xf32>
    %78 = arith.maximumf %76, %77 : vector<8x128xf32>
    %c153 = arith.constant 153 : index
    %c0_80 = arith.constant 0 : index
    %79 = vector.load %arg15[%c153, %c0_80] : memref<208x128xf32, #tpu.memory_space<vmem>>, vector<8x128xf32>
    tpu.vector_store %arg15[%c153, %c0_80], %78 {strides = array<i32>} : memref<208x128xf32, #tpu.memory_space<vmem>>, vector<8x128xf32>,
    %c7 = arith.constant 7 : index
    %c0_81 = arith.constant 0 : index
    %80 = vector.load %arg15[%c7, %c0_81] : memref<208x128xf32, #tpu.memory_space<vmem>>, vector<160x128xf32>
    %81 = arith.truncf %80 : vector<160x128xf32> to vector<160x128xbf16>
    %c0_82 = arith.constant 0 : index
    %c0_83 = arith.constant 0 : index
    %82 = vector.load %arg18[%c0_82, %c0_83] : memref<160x1152xbf16, #tpu.memory_space<vmem>>, vector<160x128xbf16>
    tpu.vector_store %arg18[%c0_82, %c0_83], %81 {strides = array<i32>} : memref<160x1152xbf16, #tpu.memory_space<vmem>>, vector<160x128xbf16>,
    %c8 = arith.constant 8 : index
    %c0_84 = arith.constant 0 : index
    %83 = vector.load %arg15[%c8, %c0_84] : memref<208x128xf32, #tpu.memory_space<vmem>>, vector<160x128xf32>
    %84 = arith.truncf %83 : vector<160x128xf32> to vector<160x128xbf16>
    %c0_85 = arith.constant 0 : index
    %c128_86 = arith.constant 128 : index
    %85 = vector.load %arg18[%c0_85, %c128_86] : memref<160x1152xbf16, #tpu.memory_space<vmem>>, vector<160x128xbf16>
    tpu.vector_store %arg18[%c0_85, %c128_86], %84 {strides = array<i32>} : memref<160x1152xbf16, #tpu.memory_space<vmem>>, vector<160x128xbf16>,
    %c9 = arith.constant 9 : index
    %c0_87 = arith.constant 0 : index
    %86 = vector.load %arg15[%c9, %c0_87] : memref<208x128xf32, #tpu.memory_space<vmem>>, vector<160x128xf32>
    %87 = arith.truncf %86 : vector<160x128xf32> to vector<160x128xbf16>
    %c0_88 = arith.constant 0 : index
    %c256 = arith.constant 256 : index
    %88 = vector.load %arg18[%c0_88, %c256] : memref<160x1152xbf16, #tpu.memory_space<vmem>>, vector<160x128xbf16>
    tpu.vector_store %arg18[%c0_88, %c256], %87 {strides = array<i32>} : memref<160x1152xbf16, #tpu.memory_space<vmem>>, vector<160x128xbf16>,
    %c23 = arith.constant 23 : index
    %c0_89 = arith.constant 0 : index
    %89 = vector.load %arg15[%c23, %c0_89] : memref<208x128xf32, #tpu.memory_space<vmem>>, vector<160x128xf32>
    %90 = arith.truncf %89 : vector<160x128xf32> to vector<160x128xbf16>
    %c0_90 = arith.constant 0 : index
    %c384 = arith.constant 384 : index
    %91 = vector.load %arg18[%c0_90, %c384] : memref<160x1152xbf16, #tpu.memory_space<vmem>>, vector<160x128xbf16>
    tpu.vector_store %arg18[%c0_90, %c384], %90 {strides = array<i32>} : memref<160x1152xbf16, #tpu.memory_space<vmem>>, vector<160x128xbf16>,
    %c24_91 = arith.constant 24 : index
    %c0_92 = arith.constant 0 : index
    %92 = vector.load %arg15[%c24_91, %c0_92] : memref<208x128xf32, #tpu.memory_space<vmem>>, vector<160x128xf32>
    %93 = arith.truncf %92 : vector<160x128xf32> to vector<160x128xbf16>
    %c0_93 = arith.constant 0 : index
    %c512 = arith.constant 512 : index
    %94 = vector.load %arg18[%c0_93, %c512] : memref<160x1152xbf16, #tpu.memory_space<vmem>>, vector<160x128xbf16>
    tpu.vector_store %arg18[%c0_93, %c512], %93 {strides = array<i32>} : memref<160x1152xbf16, #tpu.memory_space<vmem>>, vector<160x128xbf16>,
    %c25 = arith.constant 25 : index
    %c0_94 = arith.constant 0 : index
    %95 = vector.load %arg15[%c25, %c0_94] : memref<208x128xf32, #tpu.memory_space<vmem>>, vector<160x128xf32>
    %96 = arith.truncf %95 : vector<160x128xf32> to vector<160x128xbf16>
    %c0_95 = arith.constant 0 : index
    %c640 = arith.constant 640 : index
    %97 = vector.load %arg18[%c0_95, %c640] : memref<160x1152xbf16, #tpu.memory_space<vmem>>, vector<160x128xbf16>
    tpu.vector_store %arg18[%c0_95, %c640], %96 {strides = array<i32>} : memref<160x1152xbf16, #tpu.memory_space<vmem>>, vector<160x128xbf16>,
    %c39 = arith.constant 39 : index
    %c0_96 = arith.constant 0 : index
    %98 = vector.load %arg15[%c39, %c0_96] : memref<208x128xf32, #tpu.memory_space<vmem>>, vector<160x128xf32>
    %99 = arith.truncf %98 : vector<160x128xf32> to vector<160x128xbf16>
    %c0_97 = arith.constant 0 : index
    %c768 = arith.constant 768 : index
    %100 = vector.load %arg18[%c0_97, %c768] : memref<160x1152xbf16, #tpu.memory_space<vmem>>, vector<160x128xbf16>
    tpu.vector_store %arg18[%c0_97, %c768], %99 {strides = array<i32>} : memref<160x1152xbf16, #tpu.memory_space<vmem>>, vector<160x128xbf16>,
    %c40_98 = arith.constant 40 : index
    %c0_99 = arith.constant 0 : index
    %101 = vector.load %arg15[%c40_98, %c0_99] : memref<208x128xf32, #tpu.memory_space<vmem>>, vector<160x128xf32>
    %102 = arith.truncf %101 : vector<160x128xf32> to vector<160x128xbf16>
    %c0_100 = arith.constant 0 : index
    %c896 = arith.constant 896 : index
    %103 = vector.load %arg18[%c0_100, %c896] : memref<160x1152xbf16, #tpu.memory_space<vmem>>, vector<160x128xbf16>
    tpu.vector_store %arg18[%c0_100, %c896], %102 {strides = array<i32>} : memref<160x1152xbf16, #tpu.memory_space<vmem>>, vector<160x128xbf16>,
    %c41_101 = arith.constant 41 : index
    %c0_102 = arith.constant 0 : index
    %104 = vector.load %arg15[%c41_101, %c0_102] : memref<208x128xf32, #tpu.memory_space<vmem>>, vector<160x128xf32>
    %105 = arith.truncf %104 : vector<160x128xf32> to vector<160x128xbf16>
    %c0_103 = arith.constant 0 : index
    %c1024 = arith.constant 1024 : index
    %106 = vector.load %arg18[%c0_103, %c1024] : memref<160x1152xbf16, #tpu.memory_space<vmem>>, vector<160x128xbf16>
    tpu.vector_store %arg18[%c0_103, %c1024], %105 {strides = array<i32>} : memref<160x1152xbf16, #tpu.memory_space<vmem>>, vector<160x128xbf16>,
    %c0_104 = arith.constant 0 : index
    %c0_105 = arith.constant 0 : index
    %107 = vector.load %arg18[%c0_104, %c0_105] : memref<160x1152xbf16, #tpu.memory_space<vmem>>, vector<160x1152xbf16>
    %c0_106 = arith.constant 0 : index
    %c0_107 = arith.constant 0 : index
    %108 = vector.load %arg5[%c0_106, %c0_107] : memref<1152x128xbf16, #tpu.memory_space<vmem>>, vector<1152x128xbf16>
    %cst_108 = arith.constant dense<0.000000e+00> : vector<160x128xf32>
    %109 = tpu.matmul %107, %108, %cst_108 {dimension_numbers = #tpu.dot_dimension_numbers<[1], [0], [0], [1], [0, 0, 1, 1], [], []>} : vector<160x1152xbf16>, vector<1152x128xbf16>, vector<160x128xf32> -> vector<160x128xf32>
    %c0_109 = arith.constant 0 : index
    %c0_110 = arith.constant 0 : index
    %110 = vector.load %arg19[%c0_109, %c0_110] : memref<256x128xf32, #tpu.memory_space<vmem>>, vector<160x128xf32>
    tpu.vector_store %arg19[%c0_109, %c0_110], %109 {strides = array<i32>} : memref<256x128xf32, #tpu.memory_space<vmem>>, vector<160x128xf32>,
    %c0_111 = arith.constant 0 : index
    %c0_112 = arith.constant 0 : index
    %111 = vector.load %arg19[%c0_111, %c0_112] : memref<256x128xf32, #tpu.memory_space<vmem>>, vector<160x128xf32>
    %c0_113 = arith.constant 0 : index
    %c0_114 = arith.constant 0 : index
    %112 = vector.load %arg6[%c0_113, %c0_114] : memref<1x128xf32, #tpu.memory_space<vmem>>, vector<1x128xf32>
    %113 = vector.broadcast %112 : vector<1x128xf32> to vector<160x128xf32>
    %114 = arith.mulf %111, %113 : vector<160x128xf32>
    %c0_115 = arith.constant 0 : index
    %c0_116 = arith.constant 0 : index
    %115 = vector.load %arg7[%c0_115, %c0_116] : memref<1x128xf32, #tpu.memory_space<vmem>>, vector<1x128xf32>
    %116 = vector.broadcast %115 : vector<1x128xf32> to vector<160x128xf32>
    %117 = arith.addf %114, %116 : vector<160x128xf32>
    %cst_117 = arith.constant 0.000000e+00 : f32
    %118 = vector.broadcast %cst_117 : f32 to vector<160x128xf32>
    %119 = arith.maximumf %117, %118 : vector<160x128xf32>
    %c0_118 = arith.constant 0 : index
    %c0_119 = arith.constant 0 : index
    %120 = vector.load %arg19[%c0_118, %c0_119] : memref<256x128xf32, #tpu.memory_space<vmem>>, vector<160x128xf32>
    tpu.vector_store %arg19[%c0_118, %c0_119], %119 {strides = array<i32>} : memref<256x128xf32, #tpu.memory_space<vmem>>, vector<160x128xf32>,
    %c0_120 = arith.constant 0 : index
    %c0_121 = arith.constant 0 : index
    %121 = vector.load %arg19[%c0_120, %c0_121] : memref<256x128xf32, #tpu.memory_space<vmem>>, vector<144x128xf32>
    %c16_122 = arith.constant 16 : index
    %c0_123 = arith.constant 0 : index
    %122 = vector.load %arg19[%c16_122, %c0_123] : memref<256x128xf32, #tpu.memory_space<vmem>>, vector<144x128xf32>
    %123 = arith.maximumf %121, %122 : vector<144x128xf32>
    %c0_124 = arith.constant 0 : index
    %c0_125 = arith.constant 0 : index
    %124 = vector.load %arg20[%c0_124, %c0_125] : memref<256x128xf32, #tpu.memory_space<vmem>>, vector<144x128xf32>
    tpu.vector_store %arg20[%c0_124, %c0_125], %123 {strides = array<i32>} : memref<256x128xf32, #tpu.memory_space<vmem>>, vector<144x128xf32>,
    %c17 = arith.constant 17 : index
    %c0_126 = arith.constant 0 : index
    %125 = tpu.strided_load %arg20[%c17, %c0_126] {strides = array<i32: 2, 1>} : memref<256x128xf32, #tpu.memory_space<vmem>>, vector<4x128xf32>
    %c18 = arith.constant 18 : index
    %c0_127 = arith.constant 0 : index
    %126 = tpu.strided_load %arg20[%c18, %c0_127] {strides = array<i32: 2, 1>} : memref<256x128xf32, #tpu.memory_space<vmem>>, vector<4x128xf32>
    %127 = arith.maximumf %125, %126 : vector<4x128xf32>
    %c25_128 = arith.constant 25 : index
    %c0_129 = arith.constant 0 : index
    %128 = vector.load %arg16[%c25_128, %c0_129] : memref<80x128xf32, #tpu.memory_space<vmem>>, vector<4x128xf32>
    tpu.vector_store %arg16[%c25_128, %c0_129], %127 {strides = array<i32>} : memref<80x128xf32, #tpu.memory_space<vmem>>, vector<4x128xf32>,
    %c49_130 = arith.constant 49 : index
    %c0_131 = arith.constant 0 : index
    %129 = tpu.strided_load %arg20[%c49_130, %c0_131] {strides = array<i32: 2, 1>} : memref<256x128xf32, #tpu.memory_space<vmem>>, vector<4x128xf32>
    %c50 = arith.constant 50 : index
    %c0_132 = arith.constant 0 : index
    %130 = tpu.strided_load %arg20[%c50, %c0_132] {strides = array<i32: 2, 1>} : memref<256x128xf32, #tpu.memory_space<vmem>>, vector<4x128xf32>
    %131 = arith.maximumf %129, %130 : vector<4x128xf32>
    %c33_133 = arith.constant 33 : index
    %c0_134 = arith.constant 0 : index
    %132 = vector.load %arg16[%c33_133, %c0_134] : memref<80x128xf32, #tpu.memory_space<vmem>>, vector<4x128xf32>
    tpu.vector_store %arg16[%c33_133, %c0_134], %131 {strides = array<i32>} : memref<80x128xf32, #tpu.memory_space<vmem>>, vector<4x128xf32>,
    %c81_135 = arith.constant 81 : index
    %c0_136 = arith.constant 0 : index
    %133 = tpu.strided_load %arg20[%c81_135, %c0_136] {strides = array<i32: 2, 1>} : memref<256x128xf32, #tpu.memory_space<vmem>>, vector<4x128xf32>
    %c82 = arith.constant 82 : index
    %c0_137 = arith.constant 0 : index
    %134 = tpu.strided_load %arg20[%c82, %c0_137] {strides = array<i32: 2, 1>} : memref<256x128xf32, #tpu.memory_space<vmem>>, vector<4x128xf32>
    %135 = arith.maximumf %133, %134 : vector<4x128xf32>
    %c41_138 = arith.constant 41 : index
    %c0_139 = arith.constant 0 : index
    %136 = vector.load %arg16[%c41_138, %c0_139] : memref<80x128xf32, #tpu.memory_space<vmem>>, vector<4x128xf32>
    tpu.vector_store %arg16[%c41_138, %c0_139], %135 {strides = array<i32>} : memref<80x128xf32, #tpu.memory_space<vmem>>, vector<4x128xf32>,
    %c113_140 = arith.constant 113 : index
    %c0_141 = arith.constant 0 : index
    %137 = tpu.strided_load %arg20[%c113_140, %c0_141] {strides = array<i32: 2, 1>} : memref<256x128xf32, #tpu.memory_space<vmem>>, vector<4x128xf32>
    %c114 = arith.constant 114 : index
    %c0_142 = arith.constant 0 : index
    %138 = tpu.strided_load %arg20[%c114, %c0_142] {strides = array<i32: 2, 1>} : memref<256x128xf32, #tpu.memory_space<vmem>>, vector<4x128xf32>
    %139 = arith.maximumf %137, %138 : vector<4x128xf32>
    %c49_143 = arith.constant 49 : index
    %c0_144 = arith.constant 0 : index
    %140 = vector.load %arg16[%c49_143, %c0_144] : memref<80x128xf32, #tpu.memory_space<vmem>>, vector<4x128xf32>
    tpu.vector_store %arg16[%c49_143, %c0_144], %139 {strides = array<i32>} : memref<80x128xf32, #tpu.memory_space<vmem>>, vector<4x128xf32>,
    %c7_145 = arith.constant 7 : index
    %c0_146 = arith.constant 0 : index
    %141 = vector.load %arg16[%c7_145, %c0_146] : memref<80x128xf32, #tpu.memory_space<vmem>>, vector<48x128xf32>
    %142 = arith.truncf %141 : vector<48x128xf32> to vector<48x128xbf16>
    %c0_147 = arith.constant 0 : index
    %c0_148 = arith.constant 0 : index
    %143 = vector.load %arg18[%c0_147, %c0_148] : memref<160x1152xbf16, #tpu.memory_space<vmem>>, vector<48x128xbf16>
    tpu.vector_store %arg18[%c0_147, %c0_148], %142 {strides = array<i32>} : memref<160x1152xbf16, #tpu.memory_space<vmem>>, vector<48x128xbf16>,
    %c8_149 = arith.constant 8 : index
    %c0_150 = arith.constant 0 : index
    %144 = vector.load %arg16[%c8_149, %c0_150] : memref<80x128xf32, #tpu.memory_space<vmem>>, vector<48x128xf32>
    %145 = arith.truncf %144 : vector<48x128xf32> to vector<48x128xbf16>
    %c0_151 = arith.constant 0 : index
    %c128_152 = arith.constant 128 : index
    %146 = vector.load %arg18[%c0_151, %c128_152] : memref<160x1152xbf16, #tpu.memory_space<vmem>>, vector<48x128xbf16>
    tpu.vector_store %arg18[%c0_151, %c128_152], %145 {strides = array<i32>} : memref<160x1152xbf16, #tpu.memory_space<vmem>>, vector<48x128xbf16>,
    %c9_153 = arith.constant 9 : index
    %c0_154 = arith.constant 0 : index
    %147 = vector.load %arg16[%c9_153, %c0_154] : memref<80x128xf32, #tpu.memory_space<vmem>>, vector<48x128xf32>
    %148 = arith.truncf %147 : vector<48x128xf32> to vector<48x128xbf16>
    %c0_155 = arith.constant 0 : index
    %c256_156 = arith.constant 256 : index
    %149 = vector.load %arg18[%c0_155, %c256_156] : memref<160x1152xbf16, #tpu.memory_space<vmem>>, vector<48x128xbf16>
    tpu.vector_store %arg18[%c0_155, %c256_156], %148 {strides = array<i32>} : memref<160x1152xbf16, #tpu.memory_space<vmem>>, vector<48x128xbf16>,
    %c15 = arith.constant 15 : index
    %c0_157 = arith.constant 0 : index
    %150 = vector.load %arg16[%c15, %c0_157] : memref<80x128xf32, #tpu.memory_space<vmem>>, vector<48x128xf32>
    %151 = arith.truncf %150 : vector<48x128xf32> to vector<48x128xbf16>
    %c0_158 = arith.constant 0 : index
    %c384_159 = arith.constant 384 : index
    %152 = vector.load %arg18[%c0_158, %c384_159] : memref<160x1152xbf16, #tpu.memory_space<vmem>>, vector<48x128xbf16>
    tpu.vector_store %arg18[%c0_158, %c384_159], %151 {strides = array<i32>} : memref<160x1152xbf16, #tpu.memory_space<vmem>>, vector<48x128xbf16>,
    %c16_160 = arith.constant 16 : index
    %c0_161 = arith.constant 0 : index
    %153 = vector.load %arg16[%c16_160, %c0_161] : memref<80x128xf32, #tpu.memory_space<vmem>>, vector<48x128xf32>
    %154 = arith.truncf %153 : vector<48x128xf32> to vector<48x128xbf16>
    %c0_162 = arith.constant 0 : index
    %c512_163 = arith.constant 512 : index
    %155 = vector.load %arg18[%c0_162, %c512_163] : memref<160x1152xbf16, #tpu.memory_space<vmem>>, vector<48x128xbf16>
    tpu.vector_store %arg18[%c0_162, %c512_163], %154 {strides = array<i32>} : memref<160x1152xbf16, #tpu.memory_space<vmem>>, vector<48x128xbf16>,
    %c17_164 = arith.constant 17 : index
    %c0_165 = arith.constant 0 : index
    %156 = vector.load %arg16[%c17_164, %c0_165] : memref<80x128xf32, #tpu.memory_space<vmem>>, vector<48x128xf32>
    %157 = arith.truncf %156 : vector<48x128xf32> to vector<48x128xbf16>
    %c0_166 = arith.constant 0 : index
    %c640_167 = arith.constant 640 : index
    %158 = vector.load %arg18[%c0_166, %c640_167] : memref<160x1152xbf16, #tpu.memory_space<vmem>>, vector<48x128xbf16>
    tpu.vector_store %arg18[%c0_166, %c640_167], %157 {strides = array<i32>} : memref<160x1152xbf16, #tpu.memory_space<vmem>>, vector<48x128xbf16>,
    %c23_168 = arith.constant 23 : index
    %c0_169 = arith.constant 0 : index
    %159 = vector.load %arg16[%c23_168, %c0_169] : memref<80x128xf32, #tpu.memory_space<vmem>>, vector<48x128xf32>
    %160 = arith.truncf %159 : vector<48x128xf32> to vector<48x128xbf16>
    %c0_170 = arith.constant 0 : index
    %c768_171 = arith.constant 768 : index
    %161 = vector.load %arg18[%c0_170, %c768_171] : memref<160x1152xbf16, #tpu.memory_space<vmem>>, vector<48x128xbf16>
    tpu.vector_store %arg18[%c0_170, %c768_171], %160 {strides = array<i32>} : memref<160x1152xbf16, #tpu.memory_space<vmem>>, vector<48x128xbf16>,
    %c24_172 = arith.constant 24 : index
    %c0_173 = arith.constant 0 : index
    %162 = vector.load %arg16[%c24_172, %c0_173] : memref<80x128xf32, #tpu.memory_space<vmem>>, vector<48x128xf32>
    %163 = arith.truncf %162 : vector<48x128xf32> to vector<48x128xbf16>
    %c0_174 = arith.constant 0 : index
    %c896_175 = arith.constant 896 : index
    %164 = vector.load %arg18[%c0_174, %c896_175] : memref<160x1152xbf16, #tpu.memory_space<vmem>>, vector<48x128xbf16>
    tpu.vector_store %arg18[%c0_174, %c896_175], %163 {strides = array<i32>} : memref<160x1152xbf16, #tpu.memory_space<vmem>>, vector<48x128xbf16>,
    %c25_176 = arith.constant 25 : index
    %c0_177 = arith.constant 0 : index
    %165 = vector.load %arg16[%c25_176, %c0_177] : memref<80x128xf32, #tpu.memory_space<vmem>>, vector<48x128xf32>
    %166 = arith.truncf %165 : vector<48x128xf32> to vector<48x128xbf16>
    %c0_178 = arith.constant 0 : index
    %c1024_179 = arith.constant 1024 : index
    %167 = vector.load %arg18[%c0_178, %c1024_179] : memref<160x1152xbf16, #tpu.memory_space<vmem>>, vector<48x128xbf16>
    tpu.vector_store %arg18[%c0_178, %c1024_179], %166 {strides = array<i32>} : memref<160x1152xbf16, #tpu.memory_space<vmem>>, vector<48x128xbf16>,
    %c0_180 = arith.constant 0 : index
    %c0_181 = arith.constant 0 : index
    %168 = vector.load %arg18[%c0_180, %c0_181] : memref<160x1152xbf16, #tpu.memory_space<vmem>>, vector<48x1152xbf16>
    %c0_182 = arith.constant 0 : index
    %c0_183 = arith.constant 0 : index
    %169 = vector.load %arg8[%c0_182, %c0_183] : memref<1152x128xbf16, #tpu.memory_space<vmem>>, vector<1152x128xbf16>
    %cst_184 = arith.constant dense<0.000000e+00> : vector<48x128xf32>
    %170 = tpu.matmul %168, %169, %cst_184 {dimension_numbers = #tpu.dot_dimension_numbers<[1], [0], [0], [1], [0, 0, 1, 1], [], []>} : vector<48x1152xbf16>, vector<1152x128xbf16>, vector<48x128xf32> -> vector<48x128xf32>
    %c0_185 = arith.constant 0 : index
    %c0_186 = arith.constant 0 : index
    %171 = vector.load %arg19[%c0_185, %c0_186] : memref<256x128xf32, #tpu.memory_space<vmem>>, vector<48x128xf32>
    tpu.vector_store %arg19[%c0_185, %c0_186], %170 {strides = array<i32>} : memref<256x128xf32, #tpu.memory_space<vmem>>, vector<48x128xf32>,
    %c0_187 = arith.constant 0 : index
    %c0_188 = arith.constant 0 : index
    %172 = vector.load %arg19[%c0_187, %c0_188] : memref<256x128xf32, #tpu.memory_space<vmem>>, vector<48x128xf32>
    %c0_189 = arith.constant 0 : index
    %c0_190 = arith.constant 0 : index
    %173 = vector.load %arg9[%c0_189, %c0_190] : memref<1x128xf32, #tpu.memory_space<vmem>>, vector<1x128xf32>
    %174 = vector.broadcast %173 : vector<1x128xf32> to vector<48x128xf32>
    %175 = arith.mulf %172, %174 : vector<48x128xf32>
    %c0_191 = arith.constant 0 : index
    %c0_192 = arith.constant 0 : index
    %176 = vector.load %arg10[%c0_191, %c0_192] : memref<1x128xf32, #tpu.memory_space<vmem>>, vector<1x128xf32>
    %177 = vector.broadcast %176 : vector<1x128xf32> to vector<48x128xf32>
    %178 = arith.addf %175, %177 : vector<48x128xf32>
    %cst_193 = arith.constant 0.000000e+00 : f32
    %179 = vector.broadcast %cst_193 : f32 to vector<48x128xf32>
    %180 = arith.maximumf %178, %179 : vector<48x128xf32>
    %c0_194 = arith.constant 0 : index
    %c0_195 = arith.constant 0 : index
    %181 = vector.load %arg19[%c0_194, %c0_195] : memref<256x128xf32, #tpu.memory_space<vmem>>, vector<48x128xf32>
    tpu.vector_store %arg19[%c0_194, %c0_195], %180 {strides = array<i32>} : memref<256x128xf32, #tpu.memory_space<vmem>>, vector<48x128xf32>,
    %c0_196 = arith.constant 0 : index
    %c0_197 = arith.constant 0 : index
    %182 = vector.load %arg19[%c0_196, %c0_197] : memref<256x128xf32, #tpu.memory_space<vmem>>, vector<40x128xf32>
    %c8_198 = arith.constant 8 : index
    %c0_199 = arith.constant 0 : index
    %183 = vector.load %arg19[%c8_198, %c0_199] : memref<256x128xf32, #tpu.memory_space<vmem>>, vector<40x128xf32>
    %184 = arith.maximumf %182, %183 : vector<40x128xf32>
    %c0_200 = arith.constant 0 : index
    %c0_201 = arith.constant 0 : index
    %185 = vector.load %arg20[%c0_200, %c0_201] : memref<256x128xf32, #tpu.memory_space<vmem>>, vector<40x128xf32>
    tpu.vector_store %arg20[%c0_200, %c0_201], %184 {strides = array<i32>} : memref<256x128xf32, #tpu.memory_space<vmem>>, vector<40x128xf32>,
    %c9_202 = arith.constant 9 : index
    %c0_203 = arith.constant 0 : index
    %186 = tpu.strided_load %arg20[%c9_202, %c0_203] {strides = array<i32: 2, 1>} : memref<256x128xf32, #tpu.memory_space<vmem>>, vector<2x128xf32>
    %c10 = arith.constant 10 : index
    %c0_204 = arith.constant 0 : index
    %187 = tpu.strided_load %arg20[%c10, %c0_204] {strides = array<i32: 2, 1>} : memref<256x128xf32, #tpu.memory_space<vmem>>, vector<2x128xf32>
    %188 = arith.maximumf %186, %187 : vector<2x128xf32>
    %c25_205 = arith.constant 25 : index
    %c0_206 = arith.constant 0 : index
    %189 = vector.load %arg17[%c25_205, %c0_206] : memref<64x128xf32, #tpu.memory_space<vmem>>, vector<2x128xf32>
    tpu.vector_store %arg17[%c25_205, %c0_206], %188 {strides = array<i32>} : memref<64x128xf32, #tpu.memory_space<vmem>>, vector<2x128xf32>,
    %c25_207 = arith.constant 25 : index
    %c0_208 = arith.constant 0 : index
    %190 = tpu.strided_load %arg20[%c25_207, %c0_208] {strides = array<i32: 2, 1>} : memref<256x128xf32, #tpu.memory_space<vmem>>, vector<2x128xf32>
    %c26 = arith.constant 26 : index
    %c0_209 = arith.constant 0 : index
    %191 = tpu.strided_load %arg20[%c26, %c0_209] {strides = array<i32: 2, 1>} : memref<256x128xf32, #tpu.memory_space<vmem>>, vector<2x128xf32>
    %192 = arith.maximumf %190, %191 : vector<2x128xf32>
    %c33_210 = arith.constant 33 : index
    %c0_211 = arith.constant 0 : index
    %193 = vector.load %arg17[%c33_210, %c0_211] : memref<64x128xf32, #tpu.memory_space<vmem>>, vector<2x128xf32>
    tpu.vector_store %arg17[%c33_210, %c0_211], %192 {strides = array<i32>} : memref<64x128xf32, #tpu.memory_space<vmem>>, vector<2x128xf32>,
    %c7_212 = arith.constant 7 : index
    %c0_213 = arith.constant 0 : index
    %194 = vector.load %arg17[%c7_212, %c0_213] : memref<64x128xf32, #tpu.memory_space<vmem>>, vector<32x128xf32>
    %195 = arith.truncf %194 : vector<32x128xf32> to vector<32x128xbf16>
    %c0_214 = arith.constant 0 : index
    %c0_215 = arith.constant 0 : index
    %196 = vector.load %arg18[%c0_214, %c0_215] : memref<160x1152xbf16, #tpu.memory_space<vmem>>, vector<32x128xbf16>
    tpu.vector_store %arg18[%c0_214, %c0_215], %195 {strides = array<i32>} : memref<160x1152xbf16, #tpu.memory_space<vmem>>, vector<32x128xbf16>,
    %c8_216 = arith.constant 8 : index
    %c0_217 = arith.constant 0 : index
    %197 = vector.load %arg17[%c8_216, %c0_217] : memref<64x128xf32, #tpu.memory_space<vmem>>, vector<32x128xf32>
    %198 = arith.truncf %197 : vector<32x128xf32> to vector<32x128xbf16>
    %c0_218 = arith.constant 0 : index
    %c128_219 = arith.constant 128 : index
    %199 = vector.load %arg18[%c0_218, %c128_219] : memref<160x1152xbf16, #tpu.memory_space<vmem>>, vector<32x128xbf16>
    tpu.vector_store %arg18[%c0_218, %c128_219], %198 {strides = array<i32>} : memref<160x1152xbf16, #tpu.memory_space<vmem>>, vector<32x128xbf16>,
    %c9_220 = arith.constant 9 : index
    %c0_221 = arith.constant 0 : index
    %200 = vector.load %arg17[%c9_220, %c0_221] : memref<64x128xf32, #tpu.memory_space<vmem>>, vector<32x128xf32>
    %201 = arith.truncf %200 : vector<32x128xf32> to vector<32x128xbf16>
    %c0_222 = arith.constant 0 : index
    %c256_223 = arith.constant 256 : index
    %202 = vector.load %arg18[%c0_222, %c256_223] : memref<160x1152xbf16, #tpu.memory_space<vmem>>, vector<32x128xbf16>
    tpu.vector_store %arg18[%c0_222, %c256_223], %201 {strides = array<i32>} : memref<160x1152xbf16, #tpu.memory_space<vmem>>, vector<32x128xbf16>,
    %c15_224 = arith.constant 15 : index
    %c0_225 = arith.constant 0 : index
    %203 = vector.load %arg17[%c15_224, %c0_225] : memref<64x128xf32, #tpu.memory_space<vmem>>, vector<32x128xf32>
    %204 = arith.truncf %203 : vector<32x128xf32> to vector<32x128xbf16>
    %c0_226 = arith.constant 0 : index
    %c384_227 = arith.constant 384 : index
    %205 = vector.load %arg18[%c0_226, %c384_227] : memref<160x1152xbf16, #tpu.memory_space<vmem>>, vector<32x128xbf16>
    tpu.vector_store %arg18[%c0_226, %c384_227], %204 {strides = array<i32>} : memref<160x1152xbf16, #tpu.memory_space<vmem>>, vector<32x128xbf16>,
    %c16_228 = arith.constant 16 : index
    %c0_229 = arith.constant 0 : index
    %206 = vector.load %arg17[%c16_228, %c0_229] : memref<64x128xf32, #tpu.memory_space<vmem>>, vector<32x128xf32>
    %207 = arith.truncf %206 : vector<32x128xf32> to vector<32x128xbf16>
    %c0_230 = arith.constant 0 : index
    %c512_231 = arith.constant 512 : index
    %208 = vector.load %arg18[%c0_230, %c512_231] : memref<160x1152xbf16, #tpu.memory_space<vmem>>, vector<32x128xbf16>
    tpu.vector_store %arg18[%c0_230, %c512_231], %207 {strides = array<i32>} : memref<160x1152xbf16, #tpu.memory_space<vmem>>, vector<32x128xbf16>,
    %c17_232 = arith.constant 17 : index
    %c0_233 = arith.constant 0 : index
    %209 = vector.load %arg17[%c17_232, %c0_233] : memref<64x128xf32, #tpu.memory_space<vmem>>, vector<32x128xf32>
    %210 = arith.truncf %209 : vector<32x128xf32> to vector<32x128xbf16>
    %c0_234 = arith.constant 0 : index
    %c640_235 = arith.constant 640 : index
    %211 = vector.load %arg18[%c0_234, %c640_235] : memref<160x1152xbf16, #tpu.memory_space<vmem>>, vector<32x128xbf16>
    tpu.vector_store %arg18[%c0_234, %c640_235], %210 {strides = array<i32>} : memref<160x1152xbf16, #tpu.memory_space<vmem>>, vector<32x128xbf16>,
    %c23_236 = arith.constant 23 : index
    %c0_237 = arith.constant 0 : index
    %212 = vector.load %arg17[%c23_236, %c0_237] : memref<64x128xf32, #tpu.memory_space<vmem>>, vector<32x128xf32>
    %213 = arith.truncf %212 : vector<32x128xf32> to vector<32x128xbf16>
    %c0_238 = arith.constant 0 : index
    %c768_239 = arith.constant 768 : index
    %214 = vector.load %arg18[%c0_238, %c768_239] : memref<160x1152xbf16, #tpu.memory_space<vmem>>, vector<32x128xbf16>
    tpu.vector_store %arg18[%c0_238, %c768_239], %213 {strides = array<i32>} : memref<160x1152xbf16, #tpu.memory_space<vmem>>, vector<32x128xbf16>,
    %c24_240 = arith.constant 24 : index
    %c0_241 = arith.constant 0 : index
    %215 = vector.load %arg17[%c24_240, %c0_241] : memref<64x128xf32, #tpu.memory_space<vmem>>, vector<32x128xf32>
    %216 = arith.truncf %215 : vector<32x128xf32> to vector<32x128xbf16>
    %c0_242 = arith.constant 0 : index
    %c896_243 = arith.constant 896 : index
    %217 = vector.load %arg18[%c0_242, %c896_243] : memref<160x1152xbf16, #tpu.memory_space<vmem>>, vector<32x128xbf16>
    tpu.vector_store %arg18[%c0_242, %c896_243], %216 {strides = array<i32>} : memref<160x1152xbf16, #tpu.memory_space<vmem>>, vector<32x128xbf16>,
    %c25_244 = arith.constant 25 : index
    %c0_245 = arith.constant 0 : index
    %218 = vector.load %arg17[%c25_244, %c0_245] : memref<64x128xf32, #tpu.memory_space<vmem>>, vector<32x128xf32>
    %219 = arith.truncf %218 : vector<32x128xf32> to vector<32x128xbf16>
    %c0_246 = arith.constant 0 : index
    %c1024_247 = arith.constant 1024 : index
    %220 = vector.load %arg18[%c0_246, %c1024_247] : memref<160x1152xbf16, #tpu.memory_space<vmem>>, vector<32x128xbf16>
    tpu.vector_store %arg18[%c0_246, %c1024_247], %219 {strides = array<i32>} : memref<160x1152xbf16, #tpu.memory_space<vmem>>, vector<32x128xbf16>,
    %c0_248 = arith.constant 0 : index
    %c0_249 = arith.constant 0 : index
    %221 = vector.load %arg18[%c0_248, %c0_249] : memref<160x1152xbf16, #tpu.memory_space<vmem>>, vector<32x1152xbf16>
    %c0_250 = arith.constant 0 : index
    %c0_251 = arith.constant 0 : index
    %222 = vector.load %arg11[%c0_250, %c0_251] : memref<1152x128xbf16, #tpu.memory_space<vmem>>, vector<1152x128xbf16>
    %cst_252 = arith.constant dense<0.000000e+00> : vector<32x128xf32>
    %223 = tpu.matmul %221, %222, %cst_252 {dimension_numbers = #tpu.dot_dimension_numbers<[1], [0], [0], [1], [0, 0, 1, 1], [], []>} : vector<32x1152xbf16>, vector<1152x128xbf16>, vector<32x128xf32> -> vector<32x128xf32>
    %c0_253 = arith.constant 0 : index
    %c0_254 = arith.constant 0 : index
    %224 = vector.load %arg19[%c0_253, %c0_254] : memref<256x128xf32, #tpu.memory_space<vmem>>, vector<32x128xf32>
    tpu.vector_store %arg19[%c0_253, %c0_254], %223 {strides = array<i32>} : memref<256x128xf32, #tpu.memory_space<vmem>>, vector<32x128xf32>,
    %c0_255 = arith.constant 0 : index
    %c0_256 = arith.constant 0 : index
    %225 = vector.load %arg19[%c0_255, %c0_256] : memref<256x128xf32, #tpu.memory_space<vmem>>, vector<32x128xf32>
    %c0_257 = arith.constant 0 : index
    %c0_258 = arith.constant 0 : index
    %226 = vector.load %arg12[%c0_257, %c0_258] : memref<1x128xf32, #tpu.memory_space<vmem>>, vector<1x128xf32>
    %227 = vector.broadcast %226 : vector<1x128xf32> to vector<32x128xf32>
    %228 = arith.mulf %225, %227 : vector<32x128xf32>
    %c0_259 = arith.constant 0 : index
    %c0_260 = arith.constant 0 : index
    %229 = vector.load %arg13[%c0_259, %c0_260] : memref<1x128xf32, #tpu.memory_space<vmem>>, vector<1x128xf32>
    %230 = vector.broadcast %229 : vector<1x128xf32> to vector<32x128xf32>
    %231 = arith.addf %228, %230 : vector<32x128xf32>
    %cst_261 = arith.constant 0.000000e+00 : f32
    %232 = vector.broadcast %cst_261 : f32 to vector<32x128xf32>
    %233 = arith.maximumf %231, %232 : vector<32x128xf32>
    %c0_262 = arith.constant 0 : index
    %c0_263 = arith.constant 0 : index
    %234 = vector.load %arg19[%c0_262, %c0_263] : memref<256x128xf32, #tpu.memory_space<vmem>>, vector<32x128xf32>
    tpu.vector_store %arg19[%c0_262, %c0_263], %233 {strides = array<i32>} : memref<256x128xf32, #tpu.memory_space<vmem>>, vector<32x128xf32>,
    %c0_264 = arith.constant 0 : index
    %c0_265 = arith.constant 0 : index
    %235 = vector.load %arg19[%c0_264, %c0_265] : memref<256x128xf32, #tpu.memory_space<vmem>>, vector<24x128xf32>
    %c8_266 = arith.constant 8 : index
    %c0_267 = arith.constant 0 : index
    %236 = vector.load %arg19[%c8_266, %c0_267] : memref<256x128xf32, #tpu.memory_space<vmem>>, vector<24x128xf32>
    %237 = arith.maximumf %235, %236 : vector<24x128xf32>
    %c0_268 = arith.constant 0 : index
    %c0_269 = arith.constant 0 : index
    %238 = vector.load %arg20[%c0_268, %c0_269] : memref<256x128xf32, #tpu.memory_space<vmem>>, vector<24x128xf32>
    tpu.vector_store %arg20[%c0_268, %c0_269], %237 {strides = array<i32>} : memref<256x128xf32, #tpu.memory_space<vmem>>, vector<24x128xf32>,
    %c9_270 = arith.constant 9 : index
    %c0_271 = arith.constant 0 : index
    %239 = vector.load %arg20[%c9_270, %c0_271] : memref<256x128xf32, #tpu.memory_space<vmem>>, vector<1x128xf32>
    %c10_272 = arith.constant 10 : index
    %c0_273 = arith.constant 0 : index
    %240 = vector.load %arg20[%c10_272, %c0_273] : memref<256x128xf32, #tpu.memory_space<vmem>>, vector<1x128xf32>
    %241 = arith.maximumf %239, %240 : vector<1x128xf32>
    %c0_274 = arith.constant 0 : index
    %c0_275 = arith.constant 0 : index
    %c0_276 = arith.constant 0 : index
    %242 = vector.load %arg14[%c0_274, %c0_275, %c0_276] : memref<1x1x128xf32, #tpu.memory_space<vmem>>, vector<1x1x128xf32>
    %243 = vector.shape_cast %242 : vector<1x1x128xf32> to vector<1x128xf32>
    %244 = vector.shape_cast %241 : vector<1x128xf32> to vector<1x1x128xf32>
    tpu.vector_store %arg14[%c0_274, %c0_275, %c0_276], %244 {strides = array<i32>} : memref<1x1x128xf32, #tpu.memory_space<vmem>>, vector<1x1x128xf32>,
    return
  }
  func.func @transform_0(%arg0: i32) -> (i32, i32, i32) {
    %c0_i32 = arith.constant 0 : i32
    %c0_i32_0 = arith.constant 0 : i32
    %c0_i32_1 = arith.constant 0 : i32
    return %arg0, %c0_i32, %c0_i32_0 : i32, i32, i32
  }
  func.func @transform_1(%arg0: i32) -> (i32, i32) {
    %c0_i32 = arith.constant 0 : i32
    %c0_i32_0 = arith.constant 0 : i32
    %c0_i32_1 = arith.constant 0 : i32
    return %c0_i32, %c0_i32_0 : i32, i32
  }
  func.func @transform_2(%arg0: i32) -> (i32, i32) {
    %c0_i32 = arith.constant 0 : i32
    %c0_i32_0 = arith.constant 0 : i32
    %c0_i32_1 = arith.constant 0 : i32
    return %c0_i32, %c0_i32_0 : i32, i32
  }
  func.func @transform_3(%arg0: i32) -> (i32, i32) {
    %c0_i32 = arith.constant 0 : i32
    %c0_i32_0 = arith.constant 0 : i32
    %c0_i32_1 = arith.constant 0 : i32
    return %c0_i32, %c0_i32_0 : i32, i32
  }
  func.func @transform_4(%arg0: i32) -> (i32, i32) {
    %c0_i32 = arith.constant 0 : i32
    %c0_i32_0 = arith.constant 0 : i32
    %c0_i32_1 = arith.constant 0 : i32
    return %c0_i32, %c0_i32_0 : i32, i32
  }
  func.func @transform_5(%arg0: i32) -> (i32, i32) {
    %c0_i32 = arith.constant 0 : i32
    %c0_i32_0 = arith.constant 0 : i32
    %c0_i32_1 = arith.constant 0 : i32
    return %c0_i32, %c0_i32_0 : i32, i32
  }
  func.func @transform_6(%arg0: i32) -> (i32, i32) {
    %c0_i32 = arith.constant 0 : i32
    %c0_i32_0 = arith.constant 0 : i32
    %c0_i32_1 = arith.constant 0 : i32
    return %c0_i32, %c0_i32_0 : i32, i32
  }
  func.func @transform_7(%arg0: i32) -> (i32, i32) {
    %c0_i32 = arith.constant 0 : i32
    %c0_i32_0 = arith.constant 0 : i32
    %c0_i32_1 = arith.constant 0 : i32
    return %c0_i32, %c0_i32_0 : i32, i32
  }
  func.func @transform_8(%arg0: i32) -> (i32, i32) {
    %c0_i32 = arith.constant 0 : i32
    %c0_i32_0 = arith.constant 0 : i32
    %c0_i32_1 = arith.constant 0 : i32
    return %c0_i32, %c0_i32_0 : i32, i32
  }
  func.func @transform_9(%arg0: i32) -> (i32, i32) {
    %c0_i32 = arith.constant 0 : i32
    %c0_i32_0 = arith.constant 0 : i32
    %c0_i32_1 = arith.constant 0 : i32
    return %c0_i32, %c0_i32_0 : i32, i32
  }
  func.func @transform_10(%arg0: i32) -> (i32, i32) {
    %c0_i32 = arith.constant 0 : i32
    %c0_i32_0 = arith.constant 0 : i32
    %c0_i32_1 = arith.constant 0 : i32
    return %c0_i32, %c0_i32_0 : i32, i32
  }
  func.func @transform_11(%arg0: i32) -> (i32, i32) {
    %c0_i32 = arith.constant 0 : i32
    %c0_i32_0 = arith.constant 0 : i32
    %c0_i32_1 = arith.constant 0 : i32
    return %c0_i32, %c0_i32_0 : i32, i32
  }
  func.func @transform_12(%arg0: i32) -> (i32, i32) {
    %c0_i32 = arith.constant 0 : i32
    %c0_i32_0 = arith.constant 0 : i32
    %c0_i32_1 = arith.constant 0 : i32
    return %c0_i32, %c0_i32_0 : i32, i32
  }
  func.func @transform_13(%arg0: i32) -> (i32, i32, i32) {
    %c0_i32 = arith.constant 0 : i32
    %c0_i32_0 = arith.constant 0 : i32
    %c0_i32_1 = arith.constant 0 : i32
    return %arg0, %c0_i32, %c0_i32_0 : i32, i32, i32
  }
}

</mosaic_0001>

<bundles_post_ra>
// kernel: tile.43
= control target key start
LH: loop header
LB: loop body
LE: loop exit
PB: predicated region body
PF: predicated region fallthrough
CT: control target
= control target key end

     0   :  { %s22_s0 = inlined_call_operand.vmem [shape: f32[32], index: 0, kind: input, shape index: {}]   ;;  %s23_s1 = inlined_call_operand.vmem [shape: f32[4,32], index: 1, kind: output, shape index: {}]  }
   0x1   :  { %v4_v0 = vld [vmem:[%s22_s0] ss:$0 sm:$0xff] }
   0x2   :  { %5 = vst [vmem:[%s23_s1] sm:$0xf] %v4_v0 }

// kernel: tile.44
= control target key start
LH: loop header
LB: loop body
LE: loop exit
PB: predicated region body
PF: predicated region fallthrough
CT: control target
= control target key end

     0   :  { %vm7_vm0 = vcmask 261120   ;;  %s37_s8 = smov 32   ;;  %s38_s9 = smov 64   ;;  %vm13_vm1 = vcmask 1048320   ;;  %vm19_vm2 = vcmask 785920   ;;  %vm25_vm3 = vcmask 523520   ;;  %s55_s0 = inlined_call_operand.vmem [shape: f32[4,32], index: 0, kind: input, shape index: {}]   ;;  %s56_s1 = inlined_call_operand.vmem [shape: f32[1,128], index: 1, kind: output, shape index: {}]  }
   0x1   :  { %v4_v0 = vld [vmem:[%s55_s0] sm:$0xf]  ;;  %s36_s0 = smov 96  }
   0x2   :  { %5 = vst [vmem:[#allocation1] sm:$0xf] %v4_v0 }
   0x9   :  { %v10_v1 = vld [vmem:[#allocation1 + $0x3] sm:$0x1]   ;;  %v22_v2 = vld [vmem:[#allocation1 + $0x1] sm:$0x1]   ;;  %v6_v3 = vld [vmem:[#allocation1] sm:$0x1]  }
   0xa   :  { %11 = vrot.lane.b32.xlu0 %v10_v1, %s36_s0  ;;  %23 = vrot.lane.b32.xlu1 %v22_v2, %s37_s8  ;;  %v16_v4 = vld [vmem:[#allocation1 + $0x2] sm:$0x1]   ;;  %8 = vst.msk [vmem:[#allocation0] sm:$0x1] %vm7_vm0, %v6_v3  }
   0xe   :  { %17 = vrot.lane.b32.xlu0 %v16_v4, %s38_s9 }
  0x7c   :  { %v12_v5 = vpop.permute.xlu0 %11   ;;  %v24_v6 = vpop.permute.xlu1 %23  }
  0x7d   :  { %14 = vst.msk [vmem:[#allocation0] sm:$0x1] %vm13_vm1, %v12_v5  }
  0x80   :  { %v18_v7 = vpop.permute.xlu0 %17  }
  0x81   :  { %20 = vst.msk [vmem:[#allocation0] sm:$0x1] %vm19_vm2, %v18_v7  }
  0x82   :  { %26 = vst.msk [vmem:[#allocation0] sm:$0x1] %vm25_vm3, %v24_v6  }
  0x89   :  { %v30_v8 = vld [vmem:[#allocation0] sm:$0x1] }
  0x8a   :  { %32 = vst [vmem:[%s56_s1] sm:$0x1] %v30_v8 }

// kernel: convnet_encoder.1
= control target key start
LH: loop header
LB: loop body
LE: loop exit
PB: predicated region body
PF: predicated region fallthrough
CT: control target
= control target key end

     0   :  { %s6455_s25 = smov 0   ;;  %s7666_s0 = inlined_call_operand.vmem [shape: bf16[2,256,108], index: 0, kind: input, shape index: {}]   ;;  %s7667_s1 = inlined_call_operand.vmem [shape: bf16[108,128], index: 1, kind: input, shape index: {}]   ;;  %s7668_s2 = inlined_call_operand.vmem [shape: f32[1,128], index: 2, kind: input, shape index: {}]   ;;  %s7669_s3 = inlined_call_operand.vmem [shape: f32[1,128], index: 3, kind: input, shape index: {}]   ;;  %s7670_s4 = inlined_call_operand.vmem [shape: bf16[1152,128], index: 4, kind: input, shape index: {}]   ;;  %s7671_s5 = inlined_call_operand.vmem [shape: f32[1,128], index: 5, kind: input, shape index: {}]   ;;  %s7672_s6 = inlined_call_operand.vmem [shape: f32[1,128], index: 6, kind: input, shape index: {}]   ;;  %s7673_s7 = inlined_call_operand.vmem [shape: bf16[1152,128], index: 7, kind: input, shape index: {}]   ;;  %s7674_s8 = inlined_call_operand.vmem [shape: f32[1,128], index: 8, kind: input, shape index: {}]   ;;  %s7675_s9 = inlined_call_operand.vmem [shape: f32[1,128], index: 9, kind: input, shape index: {}]   ;;  %s7676_s10 = inlined_call_operand.vmem [shape: bf16[1152,128], index: 10, kind: input, shape index: {}]   ;;  %s7677_s11 = inlined_call_operand.vmem [shape: f32[1,128], index: 11, kind: input, shape index: {}]   ;;  %s7678_s12 = inlined_call_operand.vmem [shape: f32[1,128], index: 12, kind: input, shape index: {}]   ;;  %s7679_s13 = inlined_call_operand.vmem [shape: f32[2,1,128], index: 13, kind: output, shape index: {}]  }
   0x1 LB: > { %s5106_s26 = sadd.s32 4294967295, %s6381_s25   ;;  %p5110_p0 = scmp.ge.s32.totalorder %s6381_s25, 1  ;;  %s6381_s25 = sphi %s6455_s25, %s23_s25  }
   0x2   : > { %p387_p1 = scmp.lt.s32.totalorder %s6381_s25, 3 }
   0x4   : > { %p388_p2 = pnand %p5110_p0, %p387_p1 }
   0x5   : > { %v6134_v0 = vld [vmem:[%s7667_s1] sm:$0xff] (!%p388_p2)   ;;  %v6135_v1 = vld [vmem:[%s7667_s1 + $0x8] sm:$0xff] (!%p388_p2)   ;;  %p429_p3 = scmp.lt.s32.totalorder (!%p388_p2), %s5106_s26, 1  ;;  %v6136_v2 = vld [vmem:[%s7667_s1 + $0x10] sm:$0xff] (!%p388_p2)   ;;  %vm630_vm0 = vcmask (!%p388_p2), 883712   ;;  %vm679_vm1 = vcmask (!%p388_p2), 1045504  }
   0x6   : > { %391 = sbr.rel (%p388_p2) target bundleno = 1275 (0x4fb), region = 72  ;;  %5993 = vmatprep.subr.bf16.mxu0 (!%p388_p2), %v6134_v0  ;;  %v6137_v4 = vld [vmem:[%s7667_s1 + $0x18] sm:$0xff] (!%p388_p2)   ;;  %v6138_v5 = vld [vmem:[%s7667_s1 + $0x20] sm:$0xff] (!%p388_p2)   ;;  %v6139_v6 = vld [vmem:[%s7667_s1 + $0x28] sm:$0xff] (!%p388_p2)   ;;  %v6383_v53 = vmov (!%p388_p2), 0.0   ;;  %vm6384_vm2 = vmmov (!%p388_p2), 0  }
   0x7   : > { %5994 = vmatpush3.bf16.msra.mxu0 (!%p388_p2), %v6134_v0  ;;  %v6140_v7 = vld [vmem:[%s7667_s1 + $0x30] sm:$0x3f] (!%p388_p2)   ;;  %v6157_v8 = vld [vmem:[%s7670_s4 + $0x40] sm:$0xff] (!%p388_p2)   ;;  %v6161_v15 = vld [vmem:[%s7670_s4 + $0x48] sm:$0xff] (!%p388_p2)   ;;  %438 = vst [vmem:[#allocation2 + $0x18] sm:$0xff] (!%p388_p2), %v6383_v53 }
   0x8   : > { %5995 = vmatprep.subr.bf16.mxu0 (!%p388_p2), %v6135_v1  ;;  %v681_v9 = vsel (!%p388_p2), %vm679_vm1, %v6140_v7, 0  ;;  %v6158_v11 = vld [vmem:[%s7670_s4 + $0xc0] sm:$0xff] (!%p388_p2)   ;;  %5402 = vmatprep.subr.bf16.mxu1 (!%p388_p2), %v6157_v8  ;;  %v6162_v16 = vld [vmem:[%s7670_s4 + $0xc8] sm:$0xff] (!%p388_p2)   ;;  %v6165_v19 = vld [vmem:[%s7670_s4 + $0x50] sm:$0xff] (!%p388_p2)   ;;  %439 = vst [vmem:[#allocation2 + $0x20] sm:$0x3] (!%p388_p2), %v6383_v53 }
   0x9   : > { %v6159_v13 = vld [vmem:[%s7670_s4] sm:$0xff] (!%p388_p2)   ;;  %v6163_v17 = vld [vmem:[%s7670_s4 + $0x8] sm:$0xff] (!%p388_p2)   ;;  %v6166_v21 = vld [vmem:[%s7670_s4 + $0xd0] sm:$0xff] (!%p388_p2)   ;;  %440 = vst [vmem:[#allocation2 + $0xa8] sm:$0xff] (!%p388_p2), %v6383_v53 }
   0xa   : > { %v6160_v14 = vld [vmem:[%s7670_s4 + $0x80] sm:$0xff] (!%p388_p2)   ;;  %5403 = vmatpush3.bf16.msra.mxu1 (!%p388_p2), %v6159_v13  ;;  %v6164_v18 = vld [vmem:[%s7670_s4 + $0x88] sm:$0xff] (!%p388_p2)   ;;  %v6167_v23 = vld [vmem:[%s7670_s4 + $0x10] sm:$0xff] (!%p388_p2)   ;;  %441 = vst [vmem:[#allocation2 + $0xb0] sm:$0x3] (!%p388_p2), %v6383_v53 }
   0xb   : > { %5996 = vmatpush3.bf16.msra.mxu0 (!%p388_p2), %v6135_v1  ;;  %5404 = vmatprep.subr.bf16.mxu1 (!%p388_p2), %v6161_v15  ;;  %v6168_v24 = vld [vmem:[%s7670_s4 + $0x90] sm:$0xff] (!%p388_p2)   ;;  %v6169_v25 = vld [vmem:[%s7670_s4 + $0x58] sm:$0xff] (!%p388_p2)   ;;  %v6173_v29 = vld [vmem:[%s7670_s4 + $0x60] sm:$0xff] (!%p388_p2)   ;;  %443 = vst [vmem:[#allocation2 + $0x31] sm:$0xff] (!%p388_p2), %v6383_v53 }
   0xc   : > { %5997 = vmatprep.subr.bf16.mxu0 (!%p388_p2), %v6136_v2  ;;  %v6170_v26 = vld [vmem:[%s7670_s4 + $0xd8] sm:$0xff] (!%p388_p2)   ;;  %v6174_v31 = vld [vmem:[%s7670_s4 + $0xe0] sm:$0xff] (!%p388_p2)   ;;  %v6177_v44 = vld [vmem:[%s7670_s4 + $0x68] sm:$0xff] (!%p388_p2)   ;;  %444 = vst [vmem:[#allocation2 + $0x41] sm:$0xff] (!%p388_p2), %v6383_v53 }
   0xd   : > { %s7681_s26 = smov (!%p429_p3, %s5106_s26), 1  ;;  %v6171_v27 = vld [vmem:[%s7670_s4 + $0x18] sm:$0xff]   ;;  %v6175_v33 = vld [vmem:[%s7670_s4 + $0x20] sm:$0xff]   ;;  %v6179_v45 = vld [vmem:[%s7670_s4 + $0x28] sm:$0xff]   ;;  %445 = vst [vmem:[#allocation2 + $0x51] sm:$0xff] %v6383_v53 }
   0xe   : > { %s5378_s16 = sshll.u32 %s7681_s26, 7  ;;  %5405 = vmatpush3.bf16.msra.mxu1 %v6163_v17  ;;  %v6172_v28 = vld [vmem:[%s7670_s4 + $0x98] sm:$0xff]   ;;  %v6176_v34 = vld [vmem:[%s7670_s4 + $0xa0] sm:$0xff]   ;;  %v6181_v46 = vld [vmem:[%s7670_s4 + $0x70] sm:$0xff]   ;;  %446 = vst [vmem:[#allocation2 + $0x61] sm:$0xff] %v6383_v53 }
   0xf   : > { %s6478_s19 = scalar_lea.vmem %s7666_s0, %s5378_s16  ;;  %5998 = vmatpush3.bf16.msra.mxu0 %v6136_v2  ;;  %5406 = vmatprep.subr.bf16.mxu1 %v6165_v19  ;;  %v6183_v47 = vld [vmem:[%s7670_s4 + $0x30] sm:$0xff]   ;;  %v6185_v48 = vld [vmem:[%s7670_s4 + $0x78] sm:$0xff]   ;;  %v6178_v50 = vld [vmem:[%s7670_s4 + $0xe8] sm:$0xff]   ;;  %447 = vst [vmem:[#allocation2 + $0x71] sm:$0xff] %v6383_v53  ;;  %s436_s16 = scalar_lea.vmem %s7679_s13, %s7681_s26 }
  0x10   : > { %v6141_v3 = vld [vmem:[%s6478_s19] sm:$0xff]   ;;  %5999 = vmatprep.subr.bf16.mxu0 %v6137_v4  ;;  %v6142_v10 = vld [vmem:[%s6478_s19 + $0x8] sm:$0xff]   ;;  %v6143_v12 = vld [vmem:[%s6478_s19 + $0x10] sm:$0xff]   ;;  %448 = vst [vmem:[#allocation2 + $0x81] sm:$0xff] %v6383_v53 }
  0x11   : > { %6007 = vmatprep.mubr.msk.bf16.mxu0 %vm630_vm0, %v6141_v3  ;;  %v6144_v20 = vld [vmem:[%s6478_s19 + $0x18] sm:$0xff]   ;;  %v6145_v22 = vld [vmem:[%s6478_s19 + $0x20] sm:$0xff]   ;;  %v6146_v30 = vld [vmem:[%s6478_s19 + $0x28] sm:$0xff]   ;;  %449 = vst [vmem:[#allocation2 + $0x91] sm:$0xff] %v6383_v53 }
  0x12   : > { %5407 = vmatpush3.bf16.msra.mxu1 %v6167_v23  ;;  %v6147_v32 = vld [vmem:[%s6478_s19 + $0x30] sm:$0xff]   ;;  %v6148_v35 = vld [vmem:[%s6478_s19 + $0x38] sm:$0xff]   ;;  %v6149_v36 = vld [vmem:[%s6478_s19 + $0x40] sm:$0xff]   ;;  %451 = vst [vmem:[#allocation3 + $0x10] sm:$0x3f] %v6383_v53 }
  0x13   : > { %6000 = vmatpush3.bf16.msra.mxu0 %v6137_v4  ;;  %5408 = vmatprep.subr.bf16.mxu1 %v6169_v25  ;;  %v6150_v37 = vld [vmem:[%s6478_s19 + $0x48] sm:$0xff]   ;;  %v6151_v38 = vld [vmem:[%s6478_s19 + $0x50] sm:$0xff]   ;;  %v6152_v39 = vld [vmem:[%s6478_s19 + $0x58] sm:$0xff]   ;;  %452 = vst [vmem:[#allocation3 + $0x38] sm:$0x3f] %v6383_v53 }
  0x14   : > { %6001 = vmatprep.subr.bf16.mxu0 %v6138_v5  ;;  %v6153_v40 = vld [vmem:[%s6478_s19 + $0x60] sm:$0xff]   ;;  %v6154_v41 = vld [vmem:[%s6478_s19 + $0x68] sm:$0xff]   ;;  %v6155_v42 = vld [vmem:[%s6478_s19 + $0x70] sm:$0xff]   ;;  %454 = vst [vmem:[#allocation3 + $0x1d] sm:$0xf] %v6383_v53 }
  0x15   : > { %v6156_v43 = vld [vmem:[%s6478_s19 + $0x78] sm:$0xff]   ;;  %v1257_v51 = vld [vmem:[#allocation2 + $0x8] sm:$0xff]  ;;  %v1258_v52 = vld [vmem:[#allocation2 + $0x10] sm:$0xff]  ;;  %455 = vst [vmem:[#allocation3 + $0x25] sm:$0xf] %v6383_v53 }
  0x16   : > { %5409 = vmatpush3.bf16.msra.mxu1 %v6171_v27  ;;  %v6187_v49 = vld [vmem:[%s7670_s4 + $0x38] sm:$0xff]   ;;  %456 = vst [vmem:[#allocation3 + $0x2d] sm:$0xf] %v6383_v53  ;;  %458 = vst [vmem:[#allocation4 + $0x10] sm:$0xf] %v6383_v53  ;;  %v1277_v54 = vpack.c.bf16 %v1258_v52, %v1257_v51  ;;  %v1217_v55 = vld [vmem:[#allocation2 + $0x7] sm:$0xff] }
  0x17   : > { %6002 = vmatpush3.bf16.msra.mxu0 %v6138_v5  ;;  %5410 = vmatprep.subr.bf16.mxu1 %v6173_v29  ;;  %459 = vst [vmem:[#allocation4 + $0x28] sm:$0xf] %v6383_v53  ;;  %461 = vst [vmem:[#allocation4 + $0x1b] sm:$0x3f] %v6383_v53  ;;  %v1218_v56 = vld [vmem:[#allocation2 + $0xf] sm:$0xff]  ;;  %v6186_v62 = vld [vmem:[%s7670_s4 + $0xf8] sm:$0xff]  }
  0x18   : > { %6003 = vmatprep.subr.bf16.mxu0 %v6139_v6  ;;  %442 = vst [vmem:[#allocation2 + $0x21] sm:$0xff] %v6383_v53  ;;  %450 = vst [vmem:[#allocation2 + $0xa1] sm:$0xff] %v6383_v53  ;;  %v6180_v57 = vld [vmem:[%s7670_s4 + $0xa8] sm:$0xff]   ;;  %v1237_v58 = vpack.c.bf16 %v1218_v56, %v1217_v55  ;;  %2275 = vmatprep.mubr.bf16.mxu1 %v1277_v54  ;;  %v6182_v59 = vld [vmem:[%s7670_s4 + $0xf0] sm:$0xff]  }
  0x19   : > { %453 = vst [vmem:[#allocation3 + $0x15] sm:$0xf] %v6383_v53  ;;  %457 = vst [vmem:[#allocation3 + $0x35] sm:$0xf] %v6383_v53  ;;  %v6184_v60 = vld [vmem:[%s7670_s4 + $0xb0] sm:$0xff]   ;;  %v6188_v2 = vld [vmem:[%s7670_s4 + $0xb8] sm:$0xff]  }
  0x1a   : > { %5411 = vmatpush3.bf16.msra.mxu1 %v6175_v33  ;;  %460 = vst [vmem:[#allocation4 + $0x13] sm:$0x3f] %v6383_v53  ;;  %462 = vst [vmem:[#allocation4 + $0x23] sm:$0x3f] %v6383_v53  ;;  %v1337_v63 = vld [vmem:[#allocation2 + $0x17] sm:$0xff]  ;;  %v1297_v4 = vld [vmem:[#allocation2 + $0x9] sm:$0xff] }
  0x1b   : > { %6004 = vmatpush3.bf16.msra.mxu0 %v6139_v6  ;;  %5412 = vmatprep.subr.bf16.mxu1 %v6177_v44  ;;  %v1298_v5 = vld [vmem:[#allocation2 + $0x11] sm:$0xff]  ;;  %v6190_v8 = vld [vmem:[%s7670_s4 + $0x100] sm:$0xff]   ;;  %v6201_v19 = vld [vmem:[%s7670_s4 + $0x168] sm:$0xff]  }
  0x1c   : > { %6123 = vmatprep.subr.msk.bf16.mxu0 %vm679_vm1, %v6140_v7  ;;  %v1317_v6 = vpack.c.bf16 %v1298_v5, %v1297_v4  ;;  %v6189_v7 = vld [vmem:[%s7670_s4 + $0x140] sm:$0xff]   ;;  %v6195_v13 = vld [vmem:[%s7670_s4 + $0x158] sm:$0xff]   ;;  %v6205_v23 = vld [vmem:[%s7670_s4 + $0x170] sm:$0xff]  }
  0x1d   : > { %v6197_v15 = vld [vmem:[%s7670_s4 + $0x160] sm:$0xff]   ;;  %v6207_v25 = vld [vmem:[%s7670_s4 + $0x1d0] sm:$0xff]   ;;  %v6209_v27 = vld [vmem:[%s7670_s4 + $0x1d8] sm:$0xff]  }
  0x1e   : > { %5413 = vmatpush3.bf16.msra.mxu1 %v6179_v45  ;;  %v6199_v17 = vld [vmem:[%s7670_s4 + $0x1c0] sm:$0xff]   ;;  %v6211_v29 = vld [vmem:[%s7670_s4 + $0x198] sm:$0xff]   ;;  %v6215_v33 = vld [vmem:[%s7670_s4 + $0x1e8] sm:$0xff]  }
  0x1f   : > { %6006 = vmatpush3.bf16.msra.mxu0 %v681_v9  ;;  %5414 = vmatprep.subr.bf16.mxu1 %v6181_v46  ;;  %v1260_v61 = vld [vmem:[#allocation2 + $0x20] sm:$0xff]  ;;  %v6191_v9 = vld [vmem:[%s7670_s4 + $0x148] sm:$0xff]  }
  0x20   : > { %5478 = vmatprep.subr.bf16.mxu0 %v6158_v11  ;;  %v1338_v0 = vld [vmem:[#allocation2 + $0x1f] sm:$0xff]  ;;  %v6643_v1 = vpack.c.bf16 %v1260_v61, %v6383_v53  ;;  %v6193_v11 = vld [vmem:[%s7670_s4 + $0x150] sm:$0xff]  }
  0x21   : > { %v1357_v3 = vpack.c.bf16 %v1338_v0, %v1337_v63 }
  0x22   : > { %6008 = vmatmul.mubr.msk.bf16.vlgmr.msra.gmra.mrb[0].mxu0 %vm630_vm0, %v6142_v10  ;;  %5415 = vmatpush3.bf16.msra.mxu1 %v6183_v47  ;;  %v6192_v10 = vld [vmem:[%s7670_s4 + $0x108] sm:$0xff]  }
  0x23   : > { %6011 = vmatprep.mubr.msk.bf16.mxu0 %vm630_vm0, %v6143_v12  ;;  %5479 = vmatpush3.bf16.msra.mxu0 %v6160_v14  ;;  %v6194_v12 = vld [vmem:[%s7670_s4 + $0x110] sm:$0xff]   ;;  %v6196_v14 = vld [vmem:[%s7670_s4 + $0x118] sm:$0xff]  }
  0x24   : > { %5480 = vmatprep.subr.bf16.mxu0 %v6162_v16  ;;  %5416 = vmatprep.subr.bf16.mxu1 %v6185_v48  ;;  %v6198_v16 = vld [vmem:[%s7670_s4 + $0x120] sm:$0xff]  }
  0x26   : > { %5417 = vmatpush3.bf16.msra.mxu1 %v6187_v49 }
  0x27   : > { %5481 = vmatpush3.bf16.msra.mxu0 %v6164_v18  ;;  %5554 = vmatprep.subr.bf16.mxu1 %v6189_v7  ;;  %v6200_v18 = vld [vmem:[%s7670_s4 + $0x180] sm:$0xff]  }
  0x28   : > { %5482 = vmatprep.subr.bf16.mxu0 %v6166_v21  ;;  %v6203_v21 = vld [vmem:[%s7670_s4 + $0x1c8] sm:$0xff]  }
  0x29   : > { %2276 = vmatmul.mubr.bf16.vlgmr.msra.gmra.mrb[0].mxu1 %v1237_v58 }
  0x2a   : > { %6012 = vmatmul.mubr.msk.bf16.gmra.mrb[4].mxu0 %vm630_vm0, %v6144_v20  ;;  %2283 = vmatprep.mubr.bf16.mxu1 %v6643_v1  ;;  %v6202_v20 = vld [vmem:[%s7670_s4 + $0x128] sm:$0xff]  }
  0x2b   : > { %6015 = vmatprep.mubr.msk.bf16.mxu0 %vm630_vm0, %v6145_v22  ;;  %5483 = vmatpush3.bf16.msra.mxu0 %v6168_v24  ;;  %v6204_v22 = vld [vmem:[%s7670_s4 + $0x188] sm:$0xff]   ;;  %v6206_v24 = vld [vmem:[%s7670_s4 + $0x130] sm:$0xff]  }
  0x2c   : > { %5484 = vmatprep.subr.bf16.mxu0 %v6170_v26  ;;  %5555 = vmatpush3.bf16.msra.mxu1 %v6190_v8  ;;  %v6208_v26 = vld [vmem:[%s7670_s4 + $0x190] sm:$0xff]  }
  0x2d   : > { %5556 = vmatprep.subr.bf16.mxu1 %v6191_v9 }
  0x2f   : > { %5485 = vmatpush3.bf16.msra.mxu0 %v6172_v28  ;;  %v6210_v28 = vld [vmem:[%s7670_s4 + $0x178] sm:$0xff]  }
  0x30   : > { %5486 = vmatprep.subr.bf16.mxu0 %v6174_v31  ;;  %5557 = vmatpush3.bf16.msra.mxu1 %v6192_v10  ;;  %v6213_v31 = vld [vmem:[%s7670_s4 + $0x1e0] sm:$0xff]  }
  0x31   : > { %2284 = vmatmul.mubr.bf16.gmra.mrb[4].mxu1 %v1357_v3  ;;  %5558 = vmatprep.subr.bf16.mxu1 %v6193_v11 }
  0x32   : > { %6016 = vmatmul.mubr.msk.bf16.gmra.mrb[8].mxu0 %vm630_vm0, %v6146_v30  ;;  %v6212_v30 = vld [vmem:[%s7670_s4 + $0x138] sm:$0xff]  }
  0x33   : > { %6019 = vmatprep.mubr.msk.bf16.mxu0 %vm630_vm0, %v6147_v32  ;;  %5487 = vmatpush3.bf16.msra.mxu0 %v6176_v34  ;;  %v6214_v32 = vld [vmem:[%s7670_s4 + $0x1a0] sm:$0xff]   ;;  %v6216_v34 = vld [vmem:[%s7670_s4 + $0x1a8] sm:$0xff]  }
  0x34   : > { %5488 = vmatprep.subr.bf16.mxu0 %v6178_v50  ;;  %5559 = vmatpush3.bf16.msra.mxu1 %v6194_v12 }
  0x35   : > { %5560 = vmatprep.subr.bf16.mxu1 %v6195_v13 }
  0x37   : > { %5489 = vmatpush3.bf16.msra.mxu0 %v6180_v57 }
  0x38   : > { %5490 = vmatprep.subr.bf16.mxu0 %v6182_v59  ;;  %5561 = vmatpush3.bf16.msra.mxu1 %v6196_v14 }
  0x39   : > { %5562 = vmatprep.subr.bf16.mxu1 %v6197_v15 }
  0x3a   : > { %6020 = vmatmul.mubr.msk.bf16.gmra.mrb[12].mxu0 %vm630_vm0, %v6148_v35  ;;  %v6736_v35 = vld [vmem:[%s7670_s4 + $0x200] sm:$0xff]  }
  0x3b   : > { %6023 = vmatprep.mubr.msk.bf16.mxu0 %vm630_vm0, %v6149_v36  ;;  %5491 = vmatpush3.bf16.msra.mxu0 %v6184_v60  ;;  %v6218_v36 = vld [vmem:[%s7670_s4 + $0x1f0] sm:$0xff]  }
  0x3c   : > { %5492 = vmatprep.subr.bf16.mxu0 %v6186_v62  ;;  %5563 = vmatpush3.bf16.msra.mxu1 %v6198_v16 }
  0x3d   : > { %5564 = vmatprep.subr.bf16.mxu1 %v6201_v19 }
  0x3f   : > { %5493 = vmatpush3.bf16.msra.mxu0 %v6188_v2 }
  0x40   : > { %5630 = vmatprep.subr.bf16.mxu0 %v6199_v17  ;;  %5565 = vmatpush3.bf16.msra.mxu1 %v6202_v20 }
  0x41   : > { %5566 = vmatprep.subr.bf16.mxu1 %v6205_v23 }
  0x42   : > { %6024 = vmatmul.mubr.msk.bf16.gmra.mrb[16].mxu0 %vm630_vm0, %v6150_v37  ;;  %v6219_v37 = vld [vmem:[%s7670_s4 + $0x1b0] sm:$0xff]  }
  0x43   : > { %6027 = vmatprep.mubr.msk.bf16.mxu0 %vm630_vm0, %v6151_v38  ;;  %v6220_v38 = vld [vmem:[%s7670_s4 + $0x1f8] sm:$0xff]  }
  0x44   : > { %5567 = vmatpush3.bf16.msra.mxu1 %v6206_v24 }
  0x45   : > { %5568 = vmatprep.subr.bf16.mxu1 %v6210_v28 }
  0x48   : > { %5569 = vmatpush3.bf16.msra.mxu1 %v6212_v30 }
  0x49   : > { %6039 = vmatprep.subr.bf16.mxu1 %v6736_v35 }
  0x4a   : > { %6028 = vmatmul.mubr.msk.bf16.gmra.mrb[20].mxu0 %vm630_vm0, %v6152_v39  ;;  %v6221_v39 = vld [vmem:[%s7670_s4 + $0x1b8] sm:$0xff]  }
  0x4b   : > { %6031 = vmatprep.mubr.msk.bf16.mxu0 %vm630_vm0, %v6153_v40  ;;  %v6754_v40 = vld [vmem:[%s7668_s2] ss:$0 sm:$0xff] }
  0x52   : > { %6032 = vmatmul.mubr.msk.bf16.gmra.mrb[24].mxu0 %vm630_vm0, %v6154_v41 }
  0x53   : > { %6035 = vmatprep.mubr.msk.bf16.mxu0 %vm630_vm0, %v6155_v42  ;;  %v6759_v42 = vld [vmem:[%s7669_s3] ss:$0 sm:$0xff] }
  0x5a   : > { %6036 = vmatmul.mubr.msk.bf16.gmra.mrb[28].mxu0 %vm630_vm0, %v6156_v43 }
  0x5b   : > { %2388 = vmatprep.mubr.bf16.mxu0 %v1357_v3 }
  0x62   : > { %2389 = vmatmul.mubr.bf16.vlgmr.msra.gmra.mrb[32].mxu0 %v1317_v6 }
  0x63   : > { %5631 = vmatpush3.bf16.msra.mxu0 %v6200_v18 }
  0x64   : > { %5632 = vmatprep.subr.bf16.mxu0 %v6203_v21 }
  0x67   : > { %5633 = vmatpush3.bf16.msra.mxu0 %v6204_v22 }
  0x68   : > { %5634 = vmatprep.subr.bf16.mxu0 %v6207_v25 }
  0x6b   : > { %5635 = vmatpush3.bf16.msra.mxu0 %v6208_v26 }
  0x6c   : > { %5636 = vmatprep.subr.bf16.mxu0 %v6209_v27 }
  0x6f   : > { %5637 = vmatpush3.bf16.msra.mxu0 %v6211_v29 }
  0x70   : > { %5638 = vmatprep.subr.bf16.mxu0 %v6213_v31 }
  0x73   : > { %5639 = vmatpush3.bf16.msra.mxu0 %v6214_v32 }
  0x74   : > { %5640 = vmatprep.subr.bf16.mxu0 %v6215_v33 }
  0x77   : > { %5641 = vmatpush3.bf16.msra.mxu0 %v6216_v34 }
  0x78   : > { %5642 = vmatprep.subr.bf16.mxu0 %v6218_v36 }
  0x7b   : > { %5643 = vmatpush3.bf16.msra.mxu0 %v6219_v37 }
  0x7c   : > { %5644 = vmatprep.subr.bf16.mxu0 %v6220_v38 }
  0x7f   : > { %5645 = vmatpush3.bf16.msra.mxu0 %v6221_v39 }
  0xf5   : > { %v6009_v41 = vpop.f32.mrb[0].mxu0 }
  0xf6   : > { %v917_v43 = vmul.f32 %v6009_v41, %v6754_v40  ;;  %v717_v44 = vpop.f32.mrb[1].mxu0 }
  0xf7   : > { %v915_v45 = vmul.f32 %v6754_v40, %v717_v44  ;;  %v6010_v46 = vpop.f32.mrb[2].mxu0 }
  0xf8   : > { %v956_v47 = vadd.f32 %v6759_v42, %v917_v43  ;;  %v918_v48 = vmul.f32 %v6010_v46, %v6754_v40  ;;  %v720_v49 = vpop.f32.mrb[3].mxu0 }
  0xf9   : > { %v954_v50 = vadd.f32 %v6759_v42, %v915_v45  ;;  %v916_v51 = vmul.f32 %v6754_v40, %v720_v49 }
  0xfa   : > { %v988_v52 = vmax.f32 %v956_v47, 0.0  ;;  %v957_v54 = vadd.f32 %v6759_v42, %v918_v48 }
  0xfb   : > { %v986_v55 = vmax.f32 %v954_v50, 0.0  ;;  %v955_v56 = vadd.f32 %v6759_v42, %v916_v51  ;;  %v1299_v50 = vld [vmem:[#allocation2 + $0x19] sm:$0xff] }
  0xfc   : > { %v989_v57 = vmax.f32 %v957_v54, 0.0 }
  0xfd   : > { %v1110_v58 = vmax.f32 %v986_v55, %v988_v52  ;;  %v987_v59 = vmax.f32 %v955_v56, 0.0  ;;  %v6013_v60 = vpop.f32.mrb[4].mxu0 }
  0xfe   : > { %v921_v61 = vmul.f32 %v6013_v60, %v6754_v40  ;;  %v733_v62 = vpop.f32.mrb[5].mxu0 }
  0xff   : > { %1140 = vst [vmem:[#allocation7] sm:$0xff] %v1110_v58  ;;  %v1111_v63 = vmax.f32 %v987_v59, %v989_v57  ;;  %v919_v0 = vmul.f32 %v6754_v40, %v733_v62  ;;  %v6014_v2 = vpop.f32.mrb[6].mxu0 }
 0x100   : > { %v960_v3 = vadd.f32 %v6759_v42, %v921_v61  ;;  %v922_v4 = vmul.f32 %v6014_v2, %v6754_v40  ;;  %v736_v5 = vpop.f32.mrb[7].mxu0 }
 0x101   : > { %1141 = vst [vmem:[#allocation7 + $0x8] sm:$0xff] %v1111_v63  ;;  %v958_v6 = vadd.f32 %v6759_v42, %v919_v0  ;;  %v920_v7 = vmul.f32 %v6754_v40, %v736_v5  ;;  %v6801_v0 = vpack.c.bf16 %v6383_v53, %v1299_v50 }
 0x102   : > { %v992_v8 = vmax.f32 %v960_v3, 0.0  ;;  %v961_v9 = vadd.f32 %v6759_v42, %v922_v4 }
 0x103   : > { %v990_v10 = vmax.f32 %v958_v6, 0.0  ;;  %v959_v11 = vadd.f32 %v6759_v42, %v920_v7 }
 0x104   : > { %v993_v12 = vmax.f32 %v961_v9, 0.0 }
 0x105   : > { %v1114_v13 = vmax.f32 %v990_v10, %v992_v8  ;;  %v991_v14 = vmax.f32 %v959_v11, 0.0  ;;  %v6017_v15 = vpop.f32.mrb[8].mxu0 }
 0x106   : > { %v925_v16 = vmul.f32 %v6017_v15, %v6754_v40  ;;  %v749_v17 = vpop.f32.mrb[9].mxu0 }
 0x107   : > { %1144 = vst [vmem:[#allocation7 + $0x20] sm:$0xff] %v1114_v13  ;;  %v1115_v18 = vmax.f32 %v991_v14, %v993_v12  ;;  %v923_v19 = vmul.f32 %v6754_v40, %v749_v17  ;;  %v6018_v20 = vpop.f32.mrb[10].mxu0 }
 0x108   : > { %v1170_v21 = vld [vmem:[#allocation7] ss:$2 sm:$0xff]  ;;  %v1172_v22 = vld [vmem:[#allocation7 + $0x1] ss:$2 sm:$0xff]  ;;  %v964_v23 = vadd.f32 %v6759_v42, %v925_v16  ;;  %v926_v24 = vmul.f32 %v6018_v20, %v6754_v40  ;;  %v752_v25 = vpop.f32.mrb[11].mxu0 }
 0x109   : > { %1145 = vst [vmem:[#allocation7 + $0x28] sm:$0xff] %v1115_v18  ;;  %v962_v26 = vadd.f32 %v6759_v42, %v923_v19  ;;  %v924_v27 = vmul.f32 %v6754_v40, %v752_v25  ;;  %v6783_v28 = vmax.f32 %v1170_v21, %v1172_v22 }
 0x10a   : > { %v996_v29 = vmax.f32 %v964_v23, 0.0  ;;  %v965_v30 = vadd.f32 %v6759_v42, %v926_v24 }
 0x10b   : > { %v994_v31 = vmax.f32 %v962_v26, 0.0  ;;  %v963_v32 = vadd.f32 %v6759_v42, %v924_v27  ;;  %1174 = vst [vmem:[#allocation2 + $0x29] sm:$0xff] %v6783_v28 }
 0x10c   : > { %v997_v33 = vmax.f32 %v965_v30, 0.0 }
 0x10d   : > { %v1118_v34 = vmax.f32 %v994_v31, %v996_v29  ;;  %v995_v36 = vmax.f32 %v963_v32, 0.0  ;;  %v6021_v37 = vpop.f32.mrb[12].mxu0 }
 0x10e   : > { %v929_v38 = vmul.f32 %v6021_v37, %v6754_v40  ;;  %v765_v39 = vpop.f32.mrb[13].mxu0 }
 0x10f   : > { %1148 = vst [vmem:[#allocation7 + $0x40] sm:$0xff] %v1118_v34  ;;  %v1119_v41 = vmax.f32 %v995_v36, %v997_v33  ;;  %v927_v43 = vmul.f32 %v6754_v40, %v765_v39  ;;  %v6022_v44 = vpop.f32.mrb[14].mxu0  ;;  %v6828_v36 = vpack.c.bf16 %v6383_v53, %v6783_v28 }
 0x110   : > { %v1176_v45 = vld [vmem:[#allocation7 + $0x20] ss:$2 sm:$0xff]  ;;  %v1178_v46 = vld [vmem:[#allocation7 + $0x21] ss:$2 sm:$0xff]  ;;  %v968_v47 = vadd.f32 %v6759_v42, %v929_v38  ;;  %v930_v48 = vmul.f32 %v6022_v44, %v6754_v40  ;;  %v768_v49 = vpop.f32.mrb[15].mxu0 }
 0x111   : > { %1149 = vst [vmem:[#allocation7 + $0x48] sm:$0xff] %v1119_v41  ;;  %v966_v51 = vadd.f32 %v6759_v42, %v927_v43  ;;  %v928_v52 = vmul.f32 %v6754_v40, %v768_v49  ;;  %v6794_v54 = vmax.f32 %v1176_v45, %v1178_v46 }
 0x112   : > { %v1000_v55 = vmax.f32 %v968_v47, 0.0  ;;  %v969_v56 = vadd.f32 %v6759_v42, %v930_v48  ;;  %v1261_v57 = vld [vmem:[#allocation2 + $0x28] sm:$0xff]  ;;  %v1262_v58 = vld [vmem:[#allocation2 + $0x30] sm:$0xff] }
 0x113   : > { %v1339_v59 = vld [vmem:[#allocation2 + $0x27] sm:$0xff]  ;;  %v998_v60 = vmax.f32 %v966_v51, 0.0  ;;  %v967_v61 = vadd.f32 %v6759_v42, %v928_v52  ;;  %v6798_v62 = vpack.c.bf16 %v1262_v58, %v1261_v57  ;;  %v1340_v63 = vld [vmem:[#allocation2 + $0x2f] sm:$0xff]  ;;  %1180 = vst [vmem:[#allocation2 + $0x39] sm:$0xff] %v6794_v54 }
 0x114   : > { %v1001_v2 = vmax.f32 %v969_v56, 0.0  ;;  %v6804_v3 = vpack.c.bf16 %v1340_v63, %v1339_v59 }
 0x115   : > { %v1122_v4 = vmax.f32 %v998_v60, %v1000_v55  ;;  %v999_v5 = vmax.f32 %v967_v61, 0.0  ;;  %v6025_v6 = vpop.f32.mrb[16].mxu0  ;;  %2291 = vmatprep.mubr.bf16.mxu1 %v6798_v62 }
 0x116   : > { %v933_v7 = vmul.f32 %v6025_v6, %v6754_v40  ;;  %2396 = vmatprep.mubr.bf16.mxu0 %v6804_v3  ;;  %v781_v8 = vpop.f32.mrb[17].mxu0  ;;  %2292 = vmatmul.mubr.bf16.gmra.mrb[8].mxu1 %v6804_v3 }
 0x117   : > { %1152 = vst [vmem:[#allocation7 + $0x60] sm:$0xff] %v1122_v4  ;;  %v1123_v9 = vmax.f32 %v999_v5, %v1001_v2  ;;  %v931_v10 = vmul.f32 %v6754_v40, %v781_v8  ;;  %2397 = vmatmul.mubr.bf16.gmra.mrb[36].mxu0 %v6801_v0  ;;  %v6026_v11 = vpop.f32.mrb[18].mxu0 }
 0x118   : > { %v1182_v12 = vld [vmem:[#allocation7 + $0x40] ss:$2 sm:$0xff]  ;;  %v1184_v13 = vld [vmem:[#allocation7 + $0x41] ss:$2 sm:$0xff]  ;;  %v972_v14 = vadd.f32 %v6759_v42, %v933_v7  ;;  %v934_v15 = vmul.f32 %v6026_v11, %v6754_v40  ;;  %v784_v16 = vpop.f32.mrb[19].mxu0  ;;  %v6851_v7 = vpack.c.bf16 %v6383_v53, %v6794_v54 }
 0x119   : > { %1153 = vst [vmem:[#allocation7 + $0x68] sm:$0xff] %v1123_v9  ;;  %v970_v17 = vadd.f32 %v6759_v42, %v931_v10  ;;  %v932_v18 = vmul.f32 %v6754_v40, %v784_v16  ;;  %v6816_v19 = vmax.f32 %v1182_v12, %v1184_v13 }
 0x11a   : > { %v1004_v20 = vmax.f32 %v972_v14, 0.0  ;;  %v973_v21 = vadd.f32 %v6759_v42, %v934_v15  ;;  %v1263_v22 = vld [vmem:[#allocation2 + $0x38] sm:$0xff]  ;;  %v1264_v23 = vld [vmem:[#allocation2 + $0x40] sm:$0xff] }
 0x11b   : > { %v1341_v24 = vld [vmem:[#allocation2 + $0x37] sm:$0xff]  ;;  %v1002_v25 = vmax.f32 %v970_v17, 0.0  ;;  %v971_v26 = vadd.f32 %v6759_v42, %v932_v18  ;;  %v6820_v27 = vpack.c.bf16 %v1264_v23, %v1263_v22  ;;  %v1342_v29 = vld [vmem:[#allocation2 + $0x3f] sm:$0xff]  ;;  %1186 = vst [vmem:[#allocation2 + $0x49] sm:$0xff] %v6816_v19 }
 0x11c   : > { %v1005_v30 = vmax.f32 %v973_v21, 0.0  ;;  %v6823_v31 = vpack.c.bf16 %v1342_v29, %v1341_v24 }
 0x11d   : > { %v1126_v32 = vmax.f32 %v1002_v25, %v1004_v20  ;;  %v1003_v33 = vmax.f32 %v971_v26, 0.0  ;;  %v6029_v34 = vpop.f32.mrb[20].mxu0  ;;  %2299 = vmatprep.mubr.bf16.mxu1 %v6820_v27 }
 0x11e   : > { %v937_v37 = vmul.f32 %v6029_v34, %v6754_v40  ;;  %2404 = vmatprep.mubr.bf16.mxu0 %v6823_v31  ;;  %v797_v38 = vpop.f32.mrb[21].mxu0  ;;  %2300 = vmatmul.mubr.bf16.gmra.mrb[12].mxu1 %v6823_v31 }
 0x11f   : > { %1156 = vst [vmem:[#allocation7 + $0x80] sm:$0xff] %v1126_v32  ;;  %v1127_v39 = vmax.f32 %v1003_v33, %v1005_v30  ;;  %v935_v41 = vmul.f32 %v6754_v40, %v797_v38  ;;  %2405 = vmatmul.mubr.bf16.gmra.mrb[40].mxu0 %v6828_v36  ;;  %v6030_v43 = vpop.f32.mrb[22].mxu0 }
 0x120   : > { %v1188_v44 = vld [vmem:[#allocation7 + $0x60] ss:$2 sm:$0xff]  ;;  %v1190_v45 = vld [vmem:[#allocation7 + $0x61] ss:$2 sm:$0xff]  ;;  %v976_v46 = vadd.f32 %v6759_v42, %v937_v37  ;;  %v938_v28 = vmul.f32 %v6030_v43, %v6754_v40  ;;  %v800_v47 = vpop.f32.mrb[23].mxu0 }
 0x121   : > { %1157 = vst [vmem:[#allocation7 + $0x88] sm:$0xff] %v1127_v39  ;;  %v974_v48 = vadd.f32 %v6759_v42, %v935_v41  ;;  %v936_v49 = vmul.f32 %v6754_v40, %v800_v47  ;;  %v6839_v50 = vmax.f32 %v1188_v44, %v1190_v45  ;;  %v6874_v41 = vpack.c.bf16 %v6383_v53, %v6816_v19 }
 0x122   : > { %v1008_v51 = vmax.f32 %v976_v46, 0.0  ;;  %v977_v52 = vadd.f32 %v6759_v42, %v938_v28  ;;  %v1265_v55 = vld [vmem:[#allocation2 + $0x48] sm:$0xff]  ;;  %v1266_v56 = vld [vmem:[#allocation2 + $0x50] sm:$0xff] }
 0x123   : > { %v1343_v57 = vld [vmem:[#allocation2 + $0x47] sm:$0xff]  ;;  %v1006_v58 = vmax.f32 %v974_v48, 0.0  ;;  %v975_v59 = vadd.f32 %v6759_v42, %v936_v49  ;;  %v6843_v60 = vpack.c.bf16 %v1266_v56, %v1265_v55  ;;  %v1344_v61 = vld [vmem:[#allocation2 + $0x4f] sm:$0xff]  ;;  %1192 = vst [vmem:[#allocation2 + $0x59] sm:$0xff] %v6839_v50 }
 0x124   : > { %v1009_v63 = vmax.f32 %v977_v52, 0.0  ;;  %v6846_v2 = vpack.c.bf16 %v1344_v61, %v1343_v57 }
 0x125   : > { %v1130_v4 = vmax.f32 %v1006_v58, %v1008_v51  ;;  %v1007_v5 = vmax.f32 %v975_v59, 0.0  ;;  %v6033_v6 = vpop.f32.mrb[24].mxu0  ;;  %2307 = vmatprep.mubr.bf16.mxu1 %v6843_v60 }
 0x126   : > { %v941_v8 = vmul.f32 %v6033_v6, %v6754_v40  ;;  %2412 = vmatprep.mubr.bf16.mxu0 %v6846_v2  ;;  %v813_v9 = vpop.f32.mrb[25].mxu0  ;;  %2308 = vmatmul.mubr.bf16.gmra.mrb[16].mxu1 %v6846_v2 }
 0x127   : > { %1160 = vst [vmem:[#allocation7 + $0xa0] sm:$0xff] %v1130_v4  ;;  %v1131_v10 = vmax.f32 %v1007_v5, %v1009_v63  ;;  %v939_v11 = vmul.f32 %v6754_v40, %v813_v9  ;;  %2413 = vmatmul.mubr.bf16.gmra.mrb[44].mxu0 %v6851_v7  ;;  %v6034_v12 = vpop.f32.mrb[26].mxu0 }
 0x128   : > { %v1194_v13 = vld [vmem:[#allocation7 + $0x80] ss:$2 sm:$0xff]  ;;  %v1196_v14 = vld [vmem:[#allocation7 + $0x81] ss:$2 sm:$0xff]  ;;  %v980_v15 = vadd.f32 %v6759_v42, %v941_v8  ;;  %v942_v54 = vmul.f32 %v6034_v12, %v6754_v40  ;;  %v816_v16 = vpop.f32.mrb[27].mxu0 }
 0x129   : > { %1161 = vst [vmem:[#allocation7 + $0xa8] sm:$0xff] %v1131_v10  ;;  %v978_v17 = vadd.f32 %v6759_v42, %v939_v11  ;;  %v940_v18 = vmul.f32 %v6754_v40, %v816_v16  ;;  %v6862_v20 = vmax.f32 %v1194_v13, %v1196_v14 }
 0x12a   : > { %v1012_v21 = vmax.f32 %v980_v15, 0.0  ;;  %v981_v22 = vadd.f32 %v6759_v42, %v942_v54  ;;  %v1267_v23 = vld [vmem:[#allocation2 + $0x58] sm:$0xff]  ;;  %v1268_v24 = vld [vmem:[#allocation2 + $0x60] sm:$0xff] }
 0x12b   : > { %v1345_v25 = vld [vmem:[#allocation2 + $0x57] sm:$0xff]  ;;  %v1010_v26 = vmax.f32 %v978_v17, 0.0  ;;  %v979_v29 = vadd.f32 %v6759_v42, %v940_v18  ;;  %v6866_v30 = vpack.c.bf16 %v1268_v24, %v1267_v23  ;;  %v1346_v32 = vld [vmem:[#allocation2 + $0x5f] sm:$0xff]  ;;  %1198 = vst [vmem:[#allocation2 + $0x69] sm:$0xff] %v6862_v20 }
 0x12c   : > { %v1013_v33 = vmax.f32 %v981_v22, 0.0  ;;  %v6869_v34 = vpack.c.bf16 %v1346_v32, %v1345_v25 }
 0x12d   : > { %v1134_v37 = vmax.f32 %v1010_v26, %v1012_v21  ;;  %v1011_v38 = vmax.f32 %v979_v29, 0.0  ;;  %v6037_v39 = vpop.f32.mrb[28].mxu0  ;;  %2315 = vmatprep.mubr.bf16.mxu1 %v6866_v30 }
 0x12e   : > { %v945_v43 = vmul.f32 %v6037_v39, %v6754_v40  ;;  %2420 = vmatprep.mubr.bf16.mxu0 %v6869_v34  ;;  %v829_v44 = vpop.f32.mrb[29].mxu0  ;;  %2316 = vmatmul.mubr.bf16.gmra.mrb[20].mxu1 %v6869_v34  ;;  %v1355_v39 = vld [vmem:[#allocation2 + $0xa7] sm:$0xff] }
 0x12f   : > { %1164 = vst [vmem:[#allocation7 + $0xc0] sm:$0xff] %v1134_v37  ;;  %v1135_v45 = vmax.f32 %v1011_v38, %v1013_v33  ;;  %v943_v46 = vmul.f32 %v6754_v40, %v829_v44  ;;  %2421 = vmatmul.mubr.bf16.gmra.mrb[48].mxu0 %v6874_v41  ;;  %v6038_v28 = vpop.f32.mrb[30].mxu0 }
 0x130   : > { %v1200_v47 = vld [vmem:[#allocation7 + $0xa0] ss:$2 sm:$0xff]  ;;  %v1202_v48 = vld [vmem:[#allocation7 + $0xa1] ss:$2 sm:$0xff]  ;;  %v984_v49 = vadd.f32 %v6759_v42, %v945_v43  ;;  %v946_v53 = vmul.f32 %v6038_v28, %v6754_v40  ;;  %v832_v19 = vpop.f32.mrb[31].mxu0 }
 0x131   : > { %1165 = vst [vmem:[#allocation7 + $0xc8] sm:$0xff] %v1135_v45  ;;  %v982_v51 = vadd.f32 %v6759_v42, %v943_v46  ;;  %v944_v52 = vmul.f32 %v6754_v40, %v832_v19  ;;  %v1203_v55 = vmax.f32 %v1200_v47, %v1202_v48  ;;  %v6892_v40 = vld [vmem:[#allocation2 + $0x18] sm:$0xff]  ;;  %v1356_v43 = vld [vmem:[#allocation2 + $0xaf] sm:$0xff] }
 0x132   : > { %v1016_v56 = vmax.f32 %v984_v49, 0.0  ;;  %v985_v57 = vadd.f32 %v6759_v42, %v946_v53  ;;  %v1269_v58 = vld [vmem:[#allocation2 + $0x68] sm:$0xff]  ;;  %v1270_v59 = vld [vmem:[#allocation2 + $0x70] sm:$0xff]  ;;  %v6896_v12 = vpack.c.bf16 %v6892_v40, %v6839_v50  ;;  %v6908_v22 = vpack.c.bf16 %v6892_v40, %v6862_v20 }
 0x133   : > { %v1347_v61 = vld [vmem:[#allocation2 + $0x67] sm:$0xff]  ;;  %v1014_v63 = vmax.f32 %v982_v51, 0.0  ;;  %v983_v4 = vadd.f32 %v6759_v42, %v944_v52  ;;  %v6887_v5 = vpack.c.bf16 %v1270_v59, %v1269_v58  ;;  %v1348_v6 = vld [vmem:[#allocation2 + $0x6f] sm:$0xff]  ;;  %1204 = vst [vmem:[#allocation2 + $0x79] sm:$0xff] %v1203_v55  ;;  %v6919_v20 = vpack.c.bf16 %v6892_v40, %v1203_v55  ;;  %v5418_v52 = vpop.f32.mrb[0].mxu1 }
 0x134   : > { %v1017_v8 = vmax.f32 %v985_v57, 0.0  ;;  %v6889_v9 = vpack.c.bf16 %v1348_v6, %v1347_v61  ;;  %v6928_v49 = vpack.c.bf16 %v1356_v43, %v1355_v39  ;;  %v6222_v51 = vld [vmem:[%s7670_s4 + $0x208] sm:$0xff]   ;;  %v5419_v55 = vpop.f32.mrb[1].mxu1  ;;  %v6225_v58 = vld [vmem:[%s7670_s4 + $0x220] sm:$0xff]  }
 0x135   : > { %v1138_v10 = vmax.f32 %v1014_v63, %v1016_v56  ;;  %v1015_v11 = vmax.f32 %v983_v4, 0.0  ;;  %2323 = vmatprep.mubr.bf16.mxu1 %v6887_v5  ;;  %v5421_v56 = vpop.f32.mrb[2].mxu1  ;;  %v5494_v59 = vpop.f32.mrb[32].mxu0  ;;  %v6229_v43 = vld [vmem:[%s7673_s7 + $0xc0] sm:$0xff]  }
 0x136   : > { %2428 = vmatprep.mubr.bf16.mxu0 %v6889_v9  ;;  %2324 = vmatmul.mubr.bf16.gmra.mrb[24].mxu1 %v6889_v9  ;;  %v5422_v57 = vpop.f32.mrb[3].mxu1  ;;  %v5495_v4 = vpop.f32.mrb[33].mxu0 }
 0x137   : > { %1168 = vst [vmem:[#allocation7 + $0xe0] sm:$0xff] %v1138_v10  ;;  %v1139_v42 = vmax.f32 %v1015_v11, %v1017_v8  ;;  %2429 = vmatmul.mubr.bf16.gmra.mrb[52].mxu0 %v6896_v12  ;;  %v5497_v6 = vpop.f32.mrb[34].mxu0  ;;  %v6226_v8 = vld [vmem:[%s7670_s4 + $0x228] sm:$0xff]   ;;  %v6227_v10 = vld [vmem:[%s7670_s4 + $0x230] sm:$0xff]   ;;  %v6228_v11 = vld [vmem:[%s7670_s4 + $0x238] sm:$0xff]   ;;  %5758 = vmatprep.subr.bf16.mxu0 %v6229_v43 }
 0x138   : > { %v1206_v13 = vld [vmem:[#allocation7 + $0xc0] ss:$2 sm:$0xff]  ;;  %v1208_v14 = vld [vmem:[#allocation7 + $0xc1] ss:$2 sm:$0xff] }
 0x139   : > { %1169 = vst [vmem:[#allocation7 + $0xe8] sm:$0xff] %v1139_v42  ;;  %v1209_v15 = vmax.f32 %v1206_v13, %v1208_v14  ;;  %v1537_v42 = vld [vmem:[#allocation2 + $0x29] sm:$0xff] }
 0x13a   : > { %v1271_v54 = vld [vmem:[#allocation2 + $0x78] sm:$0xff]  ;;  %v1272_v16 = vld [vmem:[#allocation2 + $0x80] sm:$0xff]  ;;  %v1557_v14 = vpack.c.bf16 %v6892_v40, %v1537_v42 }
 0x13b   : > { %v1349_v17 = vld [vmem:[#allocation2 + $0x77] sm:$0xff]  ;;  %v6901_v18 = vpack.c.bf16 %v1272_v16, %v1271_v54  ;;  %v1350_v21 = vld [vmem:[#allocation2 + $0x7f] sm:$0xff]  ;;  %1210 = vst [vmem:[#allocation2 + $0x89] sm:$0xff] %v1209_v15  ;;  %v6932_v53 = vpack.c.bf16 %v6892_v40, %v1209_v15 }
 0x13c   : > { %v6903_v50 = vpack.c.bf16 %v1350_v21, %v1349_v17  ;;  %v1475_v15 = vld [vmem:[#allocation2 + $0xb7] sm:$0xff]  ;;  %v1476_v54 = vld [vmem:[#allocation2 + $0xbf] sm:$0xff] }
 0x13d   : > { %2331 = vmatprep.mubr.bf16.mxu1 %v6901_v18  ;;  %v1539_v16 = vld [vmem:[#allocation2 + $0x39] sm:$0xff]  ;;  %v1486_v17 = vpack.c.bf16 %v1476_v54, %v1475_v15 }
 0x13e   : > { %2436 = vmatprep.mubr.bf16.mxu0 %v6903_v50  ;;  %2332 = vmatmul.mubr.bf16.gmra.mrb[28].mxu1 %v6903_v50  ;;  %v1555_v21 = vld [vmem:[#allocation2 + $0xb9] sm:$0xff] }
 0x13f   : > { %2437 = vmatmul.mubr.bf16.gmra.mrb[56].mxu0 %v6908_v22 }
 0x140   : > { %v1212_v23 = vld [vmem:[#allocation7 + $0xe0] ss:$2 sm:$0xff]  ;;  %v1214_v24 = vld [vmem:[#allocation7 + $0xe1] ss:$2 sm:$0xff] }
 0x141   : > { %v1215_v25 = vmax.f32 %v1212_v23, %v1214_v24 }
 0x142   : > { %v1273_v26 = vld [vmem:[#allocation2 + $0x88] sm:$0xff]  ;;  %v1274_v29 = vld [vmem:[#allocation2 + $0x90] sm:$0xff] }
 0x143   : > { %v1351_v32 = vld [vmem:[#allocation2 + $0x87] sm:$0xff]  ;;  %v6913_v33 = vpack.c.bf16 %v1274_v29, %v1273_v26  ;;  %v1352_v37 = vld [vmem:[#allocation2 + $0x8f] sm:$0xff]  ;;  %1216 = vst [vmem:[#allocation2 + $0x99] sm:$0xff] %v1215_v25  ;;  %v6940_v19 = vpack.c.bf16 %v6892_v40, %v1215_v25 }
 0x144   : > { %v6915_v38 = vpack.c.bf16 %v1352_v37, %v1351_v32 }
 0x145   : > { %2339 = vmatprep.mubr.bf16.mxu1 %v6913_v33 }
 0x146   : > { %2444 = vmatprep.mubr.bf16.mxu0 %v6915_v38  ;;  %2340 = vmatmul.mubr.bf16.gmra.mrb[32].mxu1 %v6915_v38 }
 0x147   : > { %2445 = vmatmul.mubr.bf16.gmra.mrb[60].mxu0 %v6919_v20 }
 0x14a   : > { %v1275_v44 = vld [vmem:[#allocation2 + $0x98] sm:$0xff]  ;;  %v1276_v45 = vld [vmem:[#allocation2 + $0xa0] sm:$0xff] }
 0x14b   : > { %v1353_v46 = vld [vmem:[#allocation2 + $0x97] sm:$0xff]  ;;  %v6924_v28 = vpack.c.bf16 %v1276_v45, %v1275_v44  ;;  %v1354_v47 = vld [vmem:[#allocation2 + $0x9f] sm:$0xff] }
 0x14c   : > { %v6926_v48 = vpack.c.bf16 %v1354_v47, %v1353_v46  ;;  %v6230_v44 = vld [vmem:[%s7673_s7 + $0x80] sm:$0xff]  }
 0x14d   : > { %2347 = vmatprep.mubr.bf16.mxu1 %v6924_v28 }
 0x14e   : > { %2452 = vmatprep.mubr.bf16.mxu0 %v6926_v48  ;;  %2348 = vmatmul.mubr.bf16.gmra.mrb[36].mxu1 %v6926_v48 }
 0x14f   : > { %2453 = vmatmul.mubr.bf16.gmra.mrb[64].mxu0 %v6932_v53  ;;  %2501 = vmatprep.mubr.bf16.mxu1 %v6801_v0  ;;  %v6223_v0 = vld [vmem:[%s7670_s4 + $0x210] sm:$0xff]  }
 0x150   : > { %2460 = vmatprep.mubr.bf16.mxu0 %v6928_v49 }
 0x156   : > { %2502 = vmatmul.mubr.bf16.vlgmr.msra.gmra.mrb[40].mxu1 %v6643_v1  ;;  %v6224_v1 = vld [vmem:[%s7670_s4 + $0x218] sm:$0xff]  }
 0x157   : > { %2461 = vmatmul.mubr.bf16.gmra.mrb[68].mxu0 %v6940_v19  ;;  %6040 = vmatpush3.bf16.msra.mxu1 %v6736_v35  ;;  %v5424_v35 = vpop.f32.mrb[4].mxu1 }
 0x158   : > { %2509 = vmatprep.mubr.bf16.mxu1 %v6828_v36  ;;  %2614 = vmatprep.mubr.bf16.mxu0 %v6798_v62  ;;  %v5425_v36 = vpop.f32.mrb[5].mxu1 }
 0x159   : > { %6041 = vmatprep.subr.bf16.mxu1 %v6222_v51  ;;  %v6963_v61 = vadd.f32 %v5425_v36, %v5424_v35  ;;  %v5427_v63 = vpop.f32.mrb[6].mxu1 }
 0x15b   : > { %6042 = vmatpush3.bf16.msra.mxu1 %v6222_v51 }
 0x15c   : > { %6043 = vmatprep.subr.bf16.mxu1 %v6223_v0 }
 0x15e   : > { %2510 = vmatmul.mubr.bf16.gmra.mrb[44].mxu1 %v6798_v62  ;;  %v5428_v62 = vpop.f32.mrb[7].mxu1 }
 0x15f   : > { %2615 = vmatmul.mubr.bf16.vlgmr.msra.gmra.mrb[72].mxu0 %v6804_v3  ;;  %2517 = vmatprep.mubr.bf16.mxu1 %v6851_v7  ;;  %v6965_v3 = vadd.f32 %v5428_v62, %v5427_v63  ;;  %v5498_v7 = vpop.f32.mrb[35].mxu0 }
 0x160   : > { %2622 = vmatprep.mubr.bf16.mxu0 %v6820_v27  ;;  %6044 = vmatpush3.bf16.msra.mxu1 %v6223_v0 }
 0x161   : > { %6045 = vmatprep.subr.bf16.mxu1 %v6224_v1  ;;  %5759 = vmatpush3.bf16.msra.mxu0 %v6230_v44  ;;  %v6238_v44 = vld [vmem:[%s7673_s7 + $0x90] sm:$0xff]  }
 0x164   : > { %6046 = vmatpush3.bf16.msra.mxu1 %v6224_v1  ;;  %v6231_v1 = vld [vmem:[%s7673_s7 + $0xc8] sm:$0xff]  }
 0x165   : > { %6047 = vmatprep.subr.bf16.mxu1 %v6225_v58  ;;  %5760 = vmatprep.subr.bf16.mxu0 %v6231_v1 }
 0x166   : > { %2518 = vmatmul.mubr.bf16.gmra.mrb[48].mxu1 %v6820_v27  ;;  %v1435_v27 = vld [vmem:[#allocation2 + $0xa9] sm:$0xff] }
 0x167   : > { %2623 = vmatmul.mubr.bf16.gmra.mrb[76].mxu0 %v6823_v31  ;;  %2525 = vmatprep.mubr.bf16.mxu1 %v6874_v41  ;;  %v1436_v31 = vld [vmem:[#allocation2 + $0xb1] sm:$0xff] }
 0x168   : > { %2630 = vmatprep.mubr.bf16.mxu0 %v6843_v60  ;;  %6048 = vmatpush3.bf16.msra.mxu1 %v6225_v58 }
 0x169   : > { %6049 = vmatprep.subr.bf16.mxu1 %v6226_v8 }
 0x16c   : > { %6050 = vmatpush3.bf16.msra.mxu1 %v6226_v8 }
 0x16d   : > { %6051 = vmatprep.subr.bf16.mxu1 %v6227_v10 }
 0x16e   : > { %2526 = vmatmul.mubr.bf16.gmra.mrb[52].mxu1 %v6843_v60  ;;  %v1513_v60 = vld [vmem:[#allocation2 + $0xa8] sm:$0xff] }
 0x16f   : > { %2631 = vmatmul.mubr.bf16.gmra.mrb[80].mxu0 %v6846_v2  ;;  %2533 = vmatprep.mubr.bf16.mxu1 %v6896_v12  ;;  %v1514_v2 = vld [vmem:[#allocation2 + $0xb0] sm:$0xff] }
 0x170   : > { %2638 = vmatprep.mubr.bf16.mxu0 %v6866_v30  ;;  %6052 = vmatpush3.bf16.msra.mxu1 %v6227_v10 }
 0x171   : > { %6053 = vmatprep.subr.bf16.mxu1 %v6228_v11 }
 0x174   : > { %6054 = vmatpush3.bf16.msra.mxu1 %v6228_v11 }
 0x176   : > { %2534 = vmatmul.mubr.bf16.gmra.mrb[56].mxu1 %v6866_v30  ;;  %v1446_v30 = vpack.c.bf16 %v1436_v31, %v1435_v27  ;;  %v6232_v31 = vld [vmem:[%s7673_s7 + $0x88] sm:$0xff]  }
 0x177   : > { %2639 = vmatmul.mubr.bf16.gmra.mrb[84].mxu0 %v6869_v34  ;;  %2541 = vmatprep.mubr.bf16.mxu1 %v6908_v22  ;;  %v1525_v34 = vpack.c.bf16 %v1514_v2, %v1513_v60  ;;  %v6233_v60 = vld [vmem:[%s7673_s7 + $0x40] sm:$0xff]  }
 0x178   : > { %2646 = vmatprep.mubr.bf16.mxu0 %v6887_v5  ;;  %5761 = vmatpush3.bf16.msra.mxu0 %v6232_v31  ;;  %v6249_v31 = vld [vmem:[%s7673_s7 + $0x28] sm:$0xff]  }
 0x179   : > { %5724 = vmatprep.subr.bf16.mxu1 %v6233_v60 }
 0x17e   : > { %2542 = vmatmul.mubr.bf16.gmra.mrb[60].mxu1 %v6887_v5  ;;  %v1515_v5 = vld [vmem:[#allocation2 + $0xb8] sm:$0xff] }
 0x17f   : > { %2647 = vmatmul.mubr.bf16.gmra.mrb[88].mxu0 %v6889_v9  ;;  %2549 = vmatprep.mubr.bf16.mxu1 %v6919_v20  ;;  %v1516_v9 = vld [vmem:[#allocation2 + $0xc0] sm:$0xff] }
 0x180   : > { %2654 = vmatprep.mubr.bf16.mxu0 %v6901_v18  ;;  %v1526_v13 = vpack.c.bf16 %v1516_v9, %v1515_v5  ;;  %v6235_v9 = vld [vmem:[%s7673_s7 + $0x48] sm:$0xff]  }
 0x186   : > { %2550 = vmatmul.mubr.bf16.gmra.mrb[64].mxu1 %v6901_v18  ;;  %v1558_v18 = vpack.c.bf16 %v6892_v40, %v1539_v16 }
 0x187   : > { %2655 = vmatmul.mubr.bf16.gmra.mrb[92].mxu0 %v6903_v50  ;;  %2557 = vmatprep.mubr.bf16.mxu1 %v6932_v53  ;;  %v1556_v50 = vld [vmem:[#allocation2 + $0xc1] sm:$0xff] }
 0x188   : > { %2662 = vmatprep.mubr.bf16.mxu0 %v6913_v33  ;;  %v1566_v23 = vpack.c.bf16 %v1556_v50, %v1555_v21  ;;  %v6236_v21 = vld [vmem:[%s7673_s7 + $0x8] sm:$0xff]  }
 0x18e   : > { %2558 = vmatmul.mubr.bf16.gmra.mrb[68].mxu1 %v6913_v33 }
 0x18f   : > { %2663 = vmatmul.mubr.bf16.gmra.mrb[96].mxu0 %v6915_v38  ;;  %2565 = vmatprep.mubr.bf16.mxu1 %v6940_v19 }
 0x190   : > { %2670 = vmatprep.mubr.bf16.mxu0 %v6924_v28 }
 0x196   : > { %2566 = vmatmul.mubr.bf16.gmra.mrb[72].mxu1 %v6924_v28 }
 0x197   : > { %2671 = vmatmul.mubr.bf16.gmra.mrb[100].mxu0 %v6926_v48  ;;  %2573 = vmatprep.mubr.bf16.mxu1 %v1446_v30 }
 0x198   : > { %2678 = vmatprep.mubr.bf16.mxu0 %v1525_v34 }
 0x19e   : > { %2574 = vmatmul.mubr.bf16.gmra.mrb[76].mxu1 %v1525_v34 }
 0x19f   : > { %2679 = vmatmul.mubr.bf16.gmra.mrb[104].mxu0 %v6928_v49  ;;  %6055 = vmatprep.mubr.bf16.mxu1 %v1557_v14 }
 0x1a0   : > { %2686 = vmatprep.mubr.bf16.mxu0 %v1526_v13 }
 0x1a6   : > { %6056 = vmatmul.mubr.bf16.vlgmr.msra.gmra.mrb[80].mxu1 %v1558_v18 }
 0x1a7   : > { %2687 = vmatmul.mubr.bf16.gmra.mrb[108].mxu0 %v1486_v17  ;;  %6059 = vmatprep.mubr.bf16.mxu1 %v6874_v41 }
 0x1ae   : > { %6060 = vmatmul.mubr.bf16.gmra.mrb[84].mxu1 %v6896_v12 }
 0x1af   : > { %6063 = vmatprep.mubr.bf16.mxu1 %v6908_v22 }
 0x1b6   : > { %6064 = vmatmul.mubr.bf16.gmra.mrb[88].mxu1 %v6919_v20 }
 0x1b7   : > { %6067 = vmatprep.mubr.bf16.mxu1 %v6932_v53 }
 0x1be   : > { %6068 = vmatmul.mubr.bf16.gmra.mrb[92].mxu1 %v6940_v19 }
 0x1bf   : > { %6071 = vmatprep.mubr.bf16.mxu1 %v1446_v30  ;;  %v6234_v30 = vld [vmem:[%s7673_s7] sm:$0xff]  }
 0x1c0   : > { %5725 = vmatpush3.bf16.msra.mxu1 %v6234_v30  ;;  %v6251_v30 = vld [vmem:[%s7673_s7 + $0xe8] sm:$0xff]  }
 0x1c1   : > { %5726 = vmatprep.subr.bf16.mxu1 %v6235_v9  ;;  %v6253_v9 = vld [vmem:[%s7673_s7 + $0xa8] sm:$0xff]  }
 0x1c4   : > { %5727 = vmatpush3.bf16.msra.mxu1 %v6236_v21 }
 0x1c6   : > { %6072 = vmatmul.mubr.bf16.gmra.mrb[96].mxu1 %v1566_v23 }
 0x1e9   : > { %v5430_v24 = vpop.f32.mrb[8].mxu1 }
 0x1ea   : > { %v5500_v25 = vpop.f32.mrb[36].mxu0  ;;  %v5431_v26 = vpop.f32.mrb[9].mxu1 }
 0x1eb   : > { %v5432_v29 = vadd.f32 %v5431_v26, %v5430_v24  ;;  %v5501_v41 = vpop.f32.mrb[37].mxu0  ;;  %v5433_v32 = vpop.f32.mrb[10].mxu1 }
 0x1ec   : > { %v5502_v12 = vadd.f32 %v5501_v41, %v5500_v25  ;;  %v5503_v33 = vpop.f32.mrb[38].mxu0  ;;  %v5434_v22 = vpop.f32.mrb[11].mxu1  ;;  %v6239_v25 = vld [vmem:[%s7673_s7 + $0x50] sm:$0xff]  }
 0x1ed   : > { %v5435_v37 = vadd.f32 %v5434_v22, %v5433_v32  ;;  %v5504_v38 = vpop.f32.mrb[39].mxu0  ;;  %5728 = vmatprep.subr.bf16.mxu1 %v6239_v25 }
 0x1ee   : > { %v7012_v20 = vadd.f32 %v5502_v12, %v6963_v61  ;;  %v5505_v39 = vadd.f32 %v5504_v38, %v5503_v33 }
 0x1f0   : > { %v7021_v45 = vadd.f32 %v5505_v39, %v6965_v3 }
 0x1f1   : > { %v5436_v46 = vpop.f32.mrb[12].mxu1 }
 0x1f2   : > { %v5506_v28 = vpop.f32.mrb[40].mxu0  ;;  %v5437_v47 = vpop.f32.mrb[13].mxu1 }
 0x1f3   : > { %v5438_v48 = vadd.f32 %v5437_v47, %v5436_v46  ;;  %v5507_v49 = vpop.f32.mrb[41].mxu0  ;;  %v5439_v53 = vpop.f32.mrb[14].mxu1  ;;  %v6241_v46 = vld [vmem:[%s7673_s7 + $0x58] sm:$0xff]  }
 0x1f4   : > { %v5508_v19 = vadd.f32 %v5507_v49, %v5506_v28  ;;  %v5509_v51 = vpop.f32.mrb[42].mxu0  ;;  %v5440_v52 = vpop.f32.mrb[15].mxu1 }
 0x1f5   : > { %v5441_v55 = vadd.f32 %v5440_v52, %v5439_v53  ;;  %v5510_v0 = vpop.f32.mrb[43].mxu0  ;;  %v6244_v52 = vld [vmem:[%s7673_s7 + $0x98] sm:$0xff]  }
 0x1f6   : > { %v7023_v56 = vadd.f32 %v5508_v19, %v5432_v29  ;;  %v5511_v57 = vadd.f32 %v5510_v0, %v5509_v51  ;;  %v6240_v29 = vld [vmem:[%s7673_s7 + $0x10] sm:$0xff]   ;;  %v6243_v19 = vld [vmem:[%s7673_s7 + $0xd8] sm:$0xff]  }
 0x1f7   : > { %5729 = vmatpush3.bf16.msra.mxu1 %v6240_v29  ;;  %v6257_v29 = vld [vmem:[%s7673_s7 + $0xb0] sm:$0xff]  }
 0x1f8   : > { %v7028_v35 = vadd.f32 %v5511_v57, %v5435_v37  ;;  %v6237_v37 = vld [vmem:[%s7673_s7 + $0xd0] sm:$0xff]   ;;  %5730 = vmatprep.subr.bf16.mxu1 %v6241_v46  ;;  %v6246_v57 = vld [vmem:[%s7673_s7 + $0x20] sm:$0xff]  }
 0x1f9   : > { %v5442_v36 = vpop.f32.mrb[16].mxu1  ;;  %5762 = vmatprep.subr.bf16.mxu0 %v6237_v37  ;;  %v3034_v37 = vld [vmem:[#allocation3 + $0x8] sm:$0xff] }
 0x1fa   : > { %v5512_v58 = vpop.f32.mrb[44].mxu0  ;;  %v5443_v59 = vpop.f32.mrb[17].mxu1  ;;  %5763 = vmatpush3.bf16.msra.mxu0 %v6238_v44  ;;  %v3022_v44 = vld [vmem:[#allocation3 + $0x7] sm:$0xff]  ;;  %v7135_v46 = vld [vmem:[#allocation3 + $0xf] sm:$0xff] }
 0x1fb   : > { %v5444_v61 = vadd.f32 %v5443_v59, %v5442_v36  ;;  %v5513_v63 = vpop.f32.mrb[45].mxu0  ;;  %v5445_v4 = vpop.f32.mrb[18].mxu1  ;;  %5764 = vmatprep.subr.bf16.mxu0 %v6243_v19 }
 0x1fc   : > { %v5514_v62 = vadd.f32 %v5513_v63, %v5512_v58  ;;  %v5515_v6 = vpop.f32.mrb[46].mxu0  ;;  %v5446_v3 = vpop.f32.mrb[19].mxu1  ;;  %v6248_v63 = vld [vmem:[%s7673_s7 + $0xe0] sm:$0xff]  }
 0x1fd   : > { %v5447_v7 = vadd.f32 %v5446_v3, %v5445_v4  ;;  %v5516_v8 = vpop.f32.mrb[47].mxu0  ;;  %v6247_v3 = vld [vmem:[%s7673_s7 + $0x68] sm:$0xff]  }
 0x1fe   : > { %v7030_v10 = vadd.f32 %v5514_v62, %v5438_v48  ;;  %v5517_v11 = vadd.f32 %v5516_v8, %v5515_v6  ;;  %v6242_v48 = vld [vmem:[%s7673_s7 + $0x18] sm:$0xff]   ;;  %5765 = vmatpush3.bf16.msra.mxu0 %v6244_v52 }
 0x1ff   : > { %5731 = vmatpush3.bf16.msra.mxu1 %v6242_v48  ;;  %5766 = vmatprep.subr.bf16.mxu0 %v6248_v63  ;;  %v6260_v48 = vld [vmem:[%s7673_s7 + $0xb8] sm:$0xff]  }
 0x200   : > { %v7032_v27 = vadd.f32 %v5517_v11, %v5441_v55  ;;  %v6245_v55 = vld [vmem:[%s7673_s7 + $0x60] sm:$0xff]  }
 0x201   : > { %v5448_v2 = vpop.f32.mrb[20].mxu1  ;;  %5732 = vmatprep.subr.bf16.mxu1 %v6245_v55  ;;  %v6261_v55 = vld [vmem:[%s7673_s7 + $0x140] sm:$0xff]  }
 0x202   : > { %v5518_v34 = vpop.f32.mrb[48].mxu0  ;;  %v5449_v5 = vpop.f32.mrb[21].mxu1 }
 0x203   : > { %v5450_v42 = vadd.f32 %v5449_v5, %v5448_v2  ;;  %v5519_v13 = vpop.f32.mrb[49].mxu0  ;;  %v5451_v14 = vpop.f32.mrb[22].mxu1  ;;  %5733 = vmatpush3.bf16.msra.mxu1 %v6246_v57  ;;  %v6252_v5 = vld [vmem:[%s7673_s7 + $0x70] sm:$0xff]  }
 0x204   : > { %v5520_v15 = vadd.f32 %v5519_v13, %v5518_v34  ;;  %v5521_v54 = vpop.f32.mrb[50].mxu0  ;;  %v5452_v16 = vpop.f32.mrb[23].mxu1  ;;  %5734 = vmatprep.subr.bf16.mxu1 %v6247_v3  ;;  %v6254_v13 = vld [vmem:[%s7673_s7 + $0x30] sm:$0xff]  }
 0x205   : > { %v5453_v17 = vadd.f32 %v5452_v16, %v5451_v14  ;;  %v5522_v18 = vpop.f32.mrb[51].mxu0 }
 0x206   : > { %v7049_v50 = vadd.f32 %v5520_v15, %v5444_v61  ;;  %v5523_v23 = vadd.f32 %v5522_v18, %v5521_v54  ;;  %v6255_v18 = vld [vmem:[%s7673_s7 + $0xf0] sm:$0xff]  }
 0x207   : > { %5735 = vmatpush3.bf16.msra.mxu1 %v6249_v31 }
 0x208   : > { %v7051_v24 = vadd.f32 %v5523_v23, %v5447_v7  ;;  %v6250_v7 = vld [vmem:[%s7673_s7 + $0xa0] sm:$0xff]   ;;  %5736 = vmatprep.subr.bf16.mxu1 %v6252_v5  ;;  %v6269_v5 = vld [vmem:[%s7673_s7 + $0x150] sm:$0xff]  }
 0x209   : > { %v5454_v26 = vpop.f32.mrb[24].mxu1  ;;  %5767 = vmatpush3.bf16.msra.mxu0 %v6250_v7  ;;  %v6265_v7 = vld [vmem:[%s7673_s7 + $0x148] sm:$0xff]  }
 0x20a   : > { %v5524_v41 = vpop.f32.mrb[52].mxu0  ;;  %v5455_v32 = vpop.f32.mrb[25].mxu1  ;;  %5768 = vmatprep.subr.bf16.mxu0 %v6251_v30 }
 0x20b   : > { %v5456_v12 = vadd.f32 %v5455_v32, %v5454_v26  ;;  %v5525_v33 = vpop.f32.mrb[53].mxu0  ;;  %v5457_v22 = vpop.f32.mrb[26].mxu1  ;;  %5737 = vmatpush3.bf16.msra.mxu1 %v6254_v13  ;;  %v6256_v26 = vld [vmem:[%s7673_s7 + $0x78] sm:$0xff]   ;;  %v6270_v13 = vld [vmem:[%s7673_s7 + $0x110] sm:$0xff]  }
 0x20c   : > { %v5526_v38 = vadd.f32 %v5525_v33, %v5524_v41  ;;  %v5527_v39 = vpop.f32.mrb[54].mxu0  ;;  %v5458_v43 = vpop.f32.mrb[27].mxu1  ;;  %5738 = vmatprep.subr.bf16.mxu1 %v6256_v26 }
 0x20d   : > { %v5459_v28 = vadd.f32 %v5458_v43, %v5457_v22  ;;  %v5528_v47 = vpop.f32.mrb[55].mxu0  ;;  %5769 = vmatpush3.bf16.msra.mxu0 %v6253_v9  ;;  %v6259_v43 = vld [vmem:[%s7673_s7 + $0xf8] sm:$0xff]  }
 0x20e   : > { %v7071_v49 = vadd.f32 %v5526_v38, %v5450_v42  ;;  %v5529_v53 = vadd.f32 %v5528_v47, %v5527_v39  ;;  %5770 = vmatprep.subr.bf16.mxu0 %v6255_v18  ;;  %v7129_v38 = vld [vmem:[#allocation3 + $0x10] sm:$0xff]  ;;  %v3028_v47 = vpack.c.bf16 %v7135_v46, %v3022_v44  ;;  %v6274_v18 = vld [vmem:[%s7673_s7 + $0x118] sm:$0xff]  }
 0x20f   : > { %v3040_v39 = vpack.c.bf16 %v7129_v38, %v3034_v37 }
 0x210   : > { %v7076_v51 = vadd.f32 %v5529_v53, %v5453_v17 }
 0x211   : > { %v5460_v0 = vpop.f32.mrb[28].mxu1  ;;  %5771 = vmatpush3.bf16.msra.mxu0 %v6257_v29  ;;  %3765 = vmatprep.mubr.bf16.mxu1 %v3040_v39  ;;  %v6278_v39 = vld [vmem:[%s7673_s7 + $0x120] sm:$0xff]  }
 0x212   : > { %v5530_v1 = vpop.f32.mrb[56].mxu0  ;;  %v5461_v36 = vpop.f32.mrb[29].mxu1  ;;  %5772 = vmatprep.subr.bf16.mxu0 %v6259_v43 }
 0x213   : > { %v5462_v58 = vadd.f32 %v5461_v36, %v5460_v0  ;;  %v5531_v59 = vpop.f32.mrb[57].mxu0  ;;  %v5463_v61 = vpop.f32.mrb[30].mxu1  ;;  %v6262_v36 = vld [vmem:[%s7673_s7 + $0x100] sm:$0xff]  }
 0x214   : > { %v5532_v4 = vadd.f32 %v5531_v59, %v5530_v1  ;;  %v5533_v62 = vpop.f32.mrb[58].mxu0  ;;  %v5464_v6 = vpop.f32.mrb[31].mxu1 }
 0x215   : > { %v5465_v8 = vadd.f32 %v5464_v6, %v5463_v61  ;;  %v5534_v11 = vpop.f32.mrb[59].mxu0  ;;  %5773 = vmatpush3.bf16.msra.mxu0 %v6260_v48 }
 0x216   : > { %v7099_v60 = vadd.f32 %v5532_v4, %v5456_v12  ;;  %v5535_v2 = vadd.f32 %v5534_v11, %v5533_v62  ;;  %v6258_v12 = vld [vmem:[%s7673_s7 + $0x38] sm:$0xff]  }
 0x217   : > { %5739 = vmatpush3.bf16.msra.mxu1 %v6258_v12 }
 0x218   : > { %v7104_v34 = vadd.f32 %v5535_v2, %v5459_v28  ;;  %5792 = vmatprep.subr.bf16.mxu1 %v6261_v55 }
 0x219   : > { %v5466_v42 = vpop.f32.mrb[32].mxu1 }
 0x21a   : > { %v5536_v14 = vpop.f32.mrb[60].mxu0  ;;  %v5467_v15 = vpop.f32.mrb[33].mxu1  ;;  %3766 = vmatmul.mubr.bf16.vlgmr.msra.gmra.mrb[100].mxu1 %v3028_v47 }
 0x21b   : > { %v5468_v54 = vadd.f32 %v5467_v15, %v5466_v42  ;;  %v5537_v16 = vpop.f32.mrb[61].mxu0  ;;  %v5469_v17 = vpop.f32.mrb[34].mxu1  ;;  %5793 = vmatpush3.bf16.msra.mxu1 %v6262_v36 }
 0x21c   : > { %v5538_v21 = vadd.f32 %v5537_v16, %v5536_v14  ;;  %v5539_v23 = vpop.f32.mrb[62].mxu0  ;;  %v5470_v25 = vpop.f32.mrb[35].mxu1  ;;  %5794 = vmatprep.subr.bf16.mxu1 %v6265_v7 }
 0x21d   : > { %v5471_v41 = vadd.f32 %v5470_v25, %v5469_v17  ;;  %v5540_v32 = vpop.f32.mrb[63].mxu0  ;;  %v6273_v17 = vld [vmem:[%s7673_s7 + $0x158] sm:$0xff]  }
 0x21e   : > { %v7127_v33 = vadd.f32 %v5538_v21, %v5462_v58  ;;  %v5541_v22 = vadd.f32 %v5540_v32, %v5539_v23  ;;  %v6263_v58 = vld [vmem:[%s7673_s7 + $0x1c0] sm:$0xff]  }
 0x21f   : > { %5826 = vmatprep.subr.bf16.mxu0 %v6263_v58  ;;  %v6277_v32 = vld [vmem:[%s7673_s7 + $0x160] sm:$0xff]  }
 0x220   : > { %v7137_v28 = vadd.f32 %v5541_v22, %v5465_v8  ;;  %v6266_v8 = vld [vmem:[%s7673_s7 + $0x108] sm:$0xff]  }
 0x221   : > { %v5472_v53 = vpop.f32.mrb[36].mxu1  ;;  %5795 = vmatpush3.bf16.msra.mxu1 %v6266_v8 }
 0x222   : > { %v5542_v19 = vpop.f32.mrb[64].mxu0  ;;  %v5473_v52 = vpop.f32.mrb[37].mxu1  ;;  %5796 = vmatprep.subr.bf16.mxu1 %v6269_v5 }
 0x223   : > { %v5474_v0 = vadd.f32 %v5473_v52, %v5472_v53  ;;  %v5543_v57 = vpop.f32.mrb[65].mxu0  ;;  %v5475_v1 = vpop.f32.mrb[38].mxu1  ;;  %v6282_v52 = vld [vmem:[%s7673_s7 + $0x128] sm:$0xff]  }
 0x224   : > { %v5544_v59 = vadd.f32 %v5543_v57, %v5542_v19  ;;  %v5545_v61 = vpop.f32.mrb[66].mxu0  ;;  %v5476_v63 = vpop.f32.mrb[39].mxu1  ;;  %v6281_v19 = vld [vmem:[%s7673_s7 + $0x168] sm:$0xff]  }
 0x225   : > { %v5477_v4 = vadd.f32 %v5476_v63, %v5475_v1  ;;  %v5546_v62 = vpop.f32.mrb[67].mxu0  ;;  %5797 = vmatpush3.bf16.msra.mxu1 %v6270_v13 }
 0x226   : > { %v7152_v6 = vadd.f32 %v5544_v59, %v5468_v54  ;;  %v5547_v3 = vadd.f32 %v5546_v62, %v5545_v61  ;;  %5798 = vmatprep.subr.bf16.mxu1 %v6273_v17  ;;  %v6286_v61 = vld [vmem:[%s7673_s7 + $0x130] sm:$0xff]  }
 0x228   : > { %v7160_v11 = vadd.f32 %v5547_v3, %v5471_v41 }
 0x229   : > { %v5570_v31 = vpop.f32.mrb[40].mxu1  ;;  %5799 = vmatpush3.bf16.msra.mxu1 %v6274_v18 }
 0x22a   : > { %v5548_v2 = vpop.f32.mrb[68].mxu0  ;;  %v5571_v30 = vpop.f32.mrb[41].mxu1  ;;  %5800 = vmatprep.subr.bf16.mxu1 %v6277_v32 }
 0x22b   : > { %v5549_v9 = vpop.f32.mrb[69].mxu0  ;;  %v5573_v42 = vpop.f32.mrb[42].mxu1  ;;  %v6290_v30 = vld [vmem:[%s7673_s7 + $0x138] sm:$0xff]  }
 0x22c   : > { %v5550_v14 = vadd.f32 %v5549_v9, %v5548_v2  ;;  %v5551_v15 = vpop.f32.mrb[70].mxu0  ;;  %v5574_v54 = vpop.f32.mrb[43].mxu1  ;;  %v6289_v2 = vld [vmem:[%s7673_s7 + $0x178] sm:$0xff]  }
 0x22d   : > { %v5552_v16 = vpop.f32.mrb[71].mxu0  ;;  %5801 = vmatpush3.bf16.msra.mxu1 %v6278_v39 }
 0x22e   : > { %v7174_v21 = vadd.f32 %v5550_v14, %v5474_v0  ;;  %v5553_v23 = vadd.f32 %v5552_v16, %v5551_v15  ;;  %5802 = vmatprep.subr.bf16.mxu1 %v6281_v19 }
 0x230   : > { %v7176_v25 = vadd.f32 %v5553_v23, %v5477_v4 }
 0x231   : > { %v5576_v26 = vpop.f32.mrb[44].mxu1  ;;  %5803 = vmatpush3.bf16.msra.mxu1 %v6282_v52 }
 0x232   : > { %v5646_v29 = vpop.f32.mrb[72].mxu0  ;;  %v5577_v41 = vpop.f32.mrb[45].mxu1 }
 0x233   : > { %v5578_v12 = vadd.f32 %v5577_v41, %v5576_v26  ;;  %v5647_v22 = vpop.f32.mrb[73].mxu0  ;;  %v5579_v37 = vpop.f32.mrb[46].mxu1 }
 0x234   : > { %v5649_v43 = vpop.f32.mrb[74].mxu0  ;;  %v5580_v44 = vpop.f32.mrb[47].mxu1 }
 0x235   : > { %v2512_v47 = vadd.f32 %v5578_v12, %v7012_v20  ;;  %v5581_v48 = vadd.f32 %v5580_v44, %v5579_v37  ;;  %v5650_v53 = vpop.f32.mrb[75].mxu0  ;;  %v6285_v20 = vld [vmem:[%s7673_s7 + $0x170] sm:$0xff]  }
 0x236   : > { %5804 = vmatprep.subr.bf16.mxu1 %v6285_v20 }
 0x237   : > { %v2515_v55 = vadd.f32 %v5581_v48, %v7021_v45  ;;  %5805 = vmatpush3.bf16.msra.mxu1 %v6286_v61 }
 0x238   : > { %5806 = vmatprep.subr.bf16.mxu1 %v6289_v2 }
 0x239   : > { %v5582_v0 = vpop.f32.mrb[48].mxu1 }
 0x23a   : > { %v5652_v57 = vpop.f32.mrb[76].mxu0  ;;  %v5583_v1 = vpop.f32.mrb[49].mxu1 }
 0x23b   : > { %v5584_v36 = vadd.f32 %v5583_v1, %v5582_v0  ;;  %v5653_v58 = vpop.f32.mrb[77].mxu0  ;;  %v5585_v59 = vpop.f32.mrb[50].mxu1  ;;  %5807 = vmatpush3.bf16.msra.mxu1 %v6290_v30 }
 0x23c   : > { %v5654_v63 = vadd.f32 %v5653_v58, %v5652_v57  ;;  %v5655_v4 = vpop.f32.mrb[78].mxu0  ;;  %v5586_v62 = vpop.f32.mrb[51].mxu1  ;;  %6075 = vmatprep.subr.bf16.mxu1 %v6892_v40 }
 0x23d   : > { %v2520_v45 = vadd.f32 %v5584_v36, %v7023_v56  ;;  %v5587_v3 = vadd.f32 %v5586_v62, %v5585_v59  ;;  %v5656_v7 = vpop.f32.mrb[79].mxu0 }
 0x23e   : > { %v5657_v8 = vadd.f32 %v5656_v7, %v5655_v4  ;;  %v7199_v31 = vadd.f32 %v5654_v63, %v2512_v47 }
 0x23f   : > { %v2523_v5 = vadd.f32 %v5587_v3, %v7028_v35 }
 0x240   : > { %v7208_v9 = vadd.f32 %v5657_v8, %v2515_v55 }
 0x241   : > { %v5588_v56 = vpop.f32.mrb[52].mxu1 }
 0x242   : > { %v5658_v42 = vpop.f32.mrb[80].mxu0  ;;  %v5589_v13 = vpop.f32.mrb[53].mxu1 }
 0x243   : > { %v5590_v14 = vadd.f32 %v5589_v13, %v5588_v56  ;;  %v5659_v15 = vpop.f32.mrb[81].mxu0  ;;  %v5591_v54 = vpop.f32.mrb[54].mxu1 }
 0x244   : > { %v5660_v16 = vadd.f32 %v5659_v15, %v5658_v42  ;;  %v5661_v17 = vpop.f32.mrb[82].mxu0  ;;  %v5592_v18 = vpop.f32.mrb[55].mxu1 }
 0x245   : > { %v2528_v23 = vadd.f32 %v5590_v14, %v7030_v10  ;;  %v5593_v26 = vadd.f32 %v5592_v18, %v5591_v54  ;;  %v5662_v29 = vpop.f32.mrb[83].mxu0 }
 0x246   : > { %v5663_v35 = vadd.f32 %v5662_v29, %v5661_v17  ;;  %v7212_v41 = vadd.f32 %v5660_v16, %v2520_v45 }
 0x247   : > { %v2531_v32 = vadd.f32 %v5593_v26, %v7032_v27 }
 0x248   : > { %v7215_v12 = vadd.f32 %v5663_v35, %v2523_v5 }
 0x249   : > { %v5594_v22 = vpop.f32.mrb[56].mxu1 }
 0x24a   : > { %v5664_v37 = vpop.f32.mrb[84].mxu0  ;;  %v5595_v40 = vpop.f32.mrb[57].mxu1 }
 0x24b   : > { %v5596_v39 = vadd.f32 %v5595_v40, %v5594_v22  ;;  %v5665_v43 = vpop.f32.mrb[85].mxu0  ;;  %v5597_v44 = vpop.f32.mrb[58].mxu1 }
 0x24c   : > { %v5666_v47 = vadd.f32 %v5665_v43, %v5664_v37  ;;  %v5667_v48 = vpop.f32.mrb[86].mxu0  ;;  %v5598_v53 = vpop.f32.mrb[59].mxu1 }
 0x24d   : > { %v2536_v10 = vadd.f32 %v5596_v39, %v7049_v50  ;;  %v5599_v19 = vadd.f32 %v5598_v53, %v5597_v44  ;;  %v5668_v52 = vpop.f32.mrb[87].mxu0 }
 0x24e   : > { %v5669_v55 = vadd.f32 %v5668_v52, %v5667_v48  ;;  %v7218_v0 = vadd.f32 %v5666_v47, %v2528_v23 }
 0x24f   : > { %v2539_v27 = vadd.f32 %v5599_v19, %v7051_v24 }
 0x250   : > { %v7221_v57 = vadd.f32 %v5669_v55, %v2531_v32 }
 0x251   : > { %v5600_v1 = vpop.f32.mrb[60].mxu1 }
 0x252   : > { %v5670_v20 = vpop.f32.mrb[88].mxu0  ;;  %v5601_v36 = vpop.f32.mrb[61].mxu1 }
 0x253   : > { %v5602_v58 = vadd.f32 %v5601_v36, %v5600_v1  ;;  %v5671_v59 = vpop.f32.mrb[89].mxu0  ;;  %v5603_v61 = vpop.f32.mrb[62].mxu1 }
 0x254   : > { %v5672_v63 = vadd.f32 %v5671_v59, %v5670_v20  ;;  %v5673_v4 = vpop.f32.mrb[90].mxu0  ;;  %v5604_v62 = vpop.f32.mrb[63].mxu1 }
 0x255   : > { %v2544_v50 = vadd.f32 %v5602_v58, %v7071_v49  ;;  %v5605_v45 = vadd.f32 %v5604_v62, %v5603_v61  ;;  %v5674_v3 = vpop.f32.mrb[91].mxu0 }
 0x256   : > { %v5675_v7 = vadd.f32 %v5674_v3, %v5673_v4  ;;  %v7224_v8 = vadd.f32 %v5672_v63, %v2536_v10 }
 0x257   : > { %v2547_v24 = vadd.f32 %v5605_v45, %v7076_v51 }
 0x258   : > { %v7227_v2 = vadd.f32 %v5675_v7, %v2539_v27 }
 0x259   : > { %v5606_v30 = vpop.f32.mrb[64].mxu1 }
 0x25a   : > { %v5676_v5 = vpop.f32.mrb[92].mxu0  ;;  %v5607_v56 = vpop.f32.mrb[65].mxu1 }
 0x25b   : > { %v5608_v42 = vadd.f32 %v5607_v56, %v5606_v30  ;;  %v5677_v13 = vpop.f32.mrb[93].mxu0  ;;  %v5609_v14 = vpop.f32.mrb[66].mxu1 }
 0x25c   : > { %v5678_v15 = vadd.f32 %v5677_v13, %v5676_v5  ;;  %v5679_v54 = vpop.f32.mrb[94].mxu0  ;;  %v5610_v16 = vpop.f32.mrb[67].mxu1 }
 0x25d   : > { %v2552_v49 = vadd.f32 %v5608_v42, %v7099_v60  ;;  %v5611_v17 = vadd.f32 %v5610_v16, %v5609_v14  ;;  %v5680_v18 = vpop.f32.mrb[95].mxu0 }
 0x25e   : > { %v5681_v23 = vadd.f32 %v5680_v18, %v5679_v54  ;;  %v7230_v26 = vadd.f32 %v5678_v15, %v2544_v50 }
 0x25f   : > { %v2555_v51 = vadd.f32 %v5611_v17, %v7104_v34 }
 0x260   : > { %v7233_v29 = vadd.f32 %v5681_v23, %v2547_v24 }
 0x261   : > { %v5612_v35 = vpop.f32.mrb[68].mxu1 }
 0x262   : > { %v5682_v32 = vpop.f32.mrb[96].mxu0  ;;  %v5613_v22 = vpop.f32.mrb[69].mxu1 }
 0x263   : > { %v5614_v37 = vadd.f32 %v5613_v22, %v5612_v35  ;;  %v5683_v40 = vpop.f32.mrb[97].mxu0  ;;  %v5615_v39 = vpop.f32.mrb[70].mxu1 }
 0x264   : > { %v5684_v43 = vadd.f32 %v5683_v40, %v5682_v32  ;;  %v5685_v44 = vpop.f32.mrb[98].mxu0  ;;  %v5616_v47 = vpop.f32.mrb[71].mxu1 }
 0x265   : > { %v2560_v60 = vadd.f32 %v5614_v37, %v7127_v33  ;;  %v5617_v48 = vadd.f32 %v5616_v47, %v5615_v39  ;;  %v5686_v53 = vpop.f32.mrb[99].mxu0  ;;  %v7258_v47 = vld [vmem:[%s7671_s5] ss:$0 sm:$0xff] }
 0x266   : > { %v5687_v10 = vadd.f32 %v5686_v53, %v5685_v44  ;;  %v7236_v19 = vadd.f32 %v5684_v43, %v2552_v49 }
 0x267   : > { %v2563_v34 = vadd.f32 %v5617_v48, %v7137_v28 }
 0x268   : > { %v7239_v52 = vadd.f32 %v5687_v10, %v2555_v51  ;;  %v7268_v10 = vld [vmem:[%s7672_s6] ss:$0 sm:$0xff] }
 0x269   : > { %v5618_v55 = vpop.f32.mrb[72].mxu1 }
 0x26a   : > { %v5688_v27 = vpop.f32.mrb[100].mxu0  ;;  %v5619_v1 = vpop.f32.mrb[73].mxu1 }
 0x26b   : > { %v5620_v20 = vadd.f32 %v5619_v1, %v5618_v55  ;;  %v5689_v36 = vpop.f32.mrb[101].mxu0  ;;  %v5621_v58 = vpop.f32.mrb[74].mxu1 }
 0x26c   : > { %v5690_v59 = vadd.f32 %v5689_v36, %v5688_v27  ;;  %v5691_v61 = vpop.f32.mrb[102].mxu0  ;;  %v5622_v63 = vpop.f32.mrb[75].mxu1 }
 0x26d   : > { %v2568_v33 = vadd.f32 %v5620_v20, %v7152_v6  ;;  %v5623_v4 = vadd.f32 %v5622_v63, %v5621_v58  ;;  %v5692_v62 = vpop.f32.mrb[103].mxu0 }
 0x26e   : > { %v5693_v50 = vadd.f32 %v5692_v62, %v5691_v61  ;;  %v7242_v45 = vadd.f32 %v5690_v59, %v2560_v60 }
 0x26f   : > { %v2571_v28 = vadd.f32 %v5623_v4, %v7160_v11 }
 0x270   : > { %v7245_v3 = vadd.f32 %v5693_v50, %v2563_v34 }
 0x271   : > { %v5624_v7 = vpop.f32.mrb[76].mxu1 }
 0x272   : > { %v5694_v24 = vpop.f32.mrb[104].mxu0  ;;  %v5625_v30 = vpop.f32.mrb[77].mxu1 }
 0x273   : > { %v5626_v5 = vadd.f32 %v5625_v30, %v5624_v7  ;;  %v5695_v56 = vpop.f32.mrb[105].mxu0  ;;  %v5627_v42 = vpop.f32.mrb[78].mxu1 }
 0x274   : > { %v5696_v13 = vadd.f32 %v5695_v56, %v5694_v24  ;;  %v5697_v14 = vpop.f32.mrb[106].mxu0  ;;  %v5628_v15 = vpop.f32.mrb[79].mxu1 }
 0x275   : > { %v2576_v6 = vadd.f32 %v5626_v5, %v7174_v21  ;;  %v5629_v54 = vadd.f32 %v5628_v15, %v5627_v42  ;;  %v5698_v16 = vpop.f32.mrb[107].mxu0 }
 0x276   : > { %v5699_v49 = vadd.f32 %v5698_v16, %v5697_v14  ;;  %v7248_v17 = vadd.f32 %v5696_v13, %v2568_v33 }
 0x277   : > { %v2579_v11 = vadd.f32 %v5629_v54, %v7176_v25 }
 0x278   : > { %v7251_v18 = vadd.f32 %v5699_v49, %v2571_v28 }
 0x279   : > { %v6057_v23 = vpop.f32.mrb[80].mxu1 }
 0x27a   : > { %v5700_v51 = vpop.f32.mrb[108].mxu0  ;;  %v2738_v35 = vadd.f32 %v6057_v23, %v7199_v31  ;;  %v2729_v32 = vpop.f32.mrb[81].mxu1 }
 0x27b   : > { %v5701_v22 = vpop.f32.mrb[109].mxu0  ;;  %v6058_v37 = vpop.f32.mrb[82].mxu1 }
 0x27c   : > { %v5702_v40 = vadd.f32 %v5701_v22, %v5700_v51  ;;  %v5703_v39 = vpop.f32.mrb[110].mxu0  ;;  %v2741_v21 = vadd.f32 %v6058_v37, %v7208_v9  ;;  %v2732_v43 = vpop.f32.mrb[83].mxu1  ;;  %v2857_v31 = vmul.f32 %v7258_v47, %v2738_v35 }
 0x27d   : > { %v5704_v44 = vpop.f32.mrb[111].mxu0 }
 0x27e   : > { %v5705_v25 = vadd.f32 %v5704_v44, %v5703_v39  ;;  %v7260_v60 = vadd.f32 %v5702_v40, %v2576_v6  ;;  %v2858_v55 = vmul.f32 %v7258_v47, %v2741_v21  ;;  %v2884_v58 = vadd.f32 %v7268_v10, %v2857_v31 }
 0x280   : > { %v7262_v48 = vadd.f32 %v5705_v25, %v2579_v11  ;;  %v2885_v33 = vadd.f32 %v7268_v10, %v2858_v55 }
 0x281   : > { %v6061_v53 = vpop.f32.mrb[84].mxu1 }
 0x282   : > { %v2754_v9 = vadd.f32 %v6061_v53, %v7218_v0  ;;  %v2745_v34 = vpop.f32.mrb[85].mxu1  ;;  %v2905_v5 = vmax.f32 %v2885_v33, 0.0 }
 0x283   : > { %v2746_v27 = vadd.f32 %v2745_v34, %v7212_v41  ;;  %v6062_v1 = vpop.f32.mrb[86].mxu1 }
 0x284   : > { %v2757_v20 = vadd.f32 %v6062_v1, %v7221_v57  ;;  %v2748_v36 = vpop.f32.mrb[87].mxu1  ;;  %v2861_v41 = vmul.f32 %v7258_v47, %v2754_v9  ;;  %v2904_v57 = vmax.f32 %v2884_v58, 0.0 }
 0x285   : > { %v2859_v59 = vmul.f32 %v7258_v47, %v2746_v27  ;;  %v2749_v61 = vadd.f32 %v2748_v36, %v7215_v12 }
 0x286   : > { %v2862_v63 = vmul.f32 %v7258_v47, %v2757_v20  ;;  %v2888_v15 = vadd.f32 %v7268_v10, %v2861_v41 }
 0x287   : > { %v2886_v0 = vadd.f32 %v7268_v10, %v2859_v59  ;;  %v2860_v4 = vmul.f32 %v7258_v47, %v2749_v61 }
 0x288   : > { %v2889_v62 = vadd.f32 %v7268_v10, %v2862_v63  ;;  %v2908_v37 = vmax.f32 %v2888_v15, 0.0 }
 0x289   : > { %v2906_v50 = vmax.f32 %v2886_v0, 0.0  ;;  %v2887_v28 = vadd.f32 %v7268_v10, %v2860_v4  ;;  %v6065_v7 = vpop.f32.mrb[88].mxu1 }
 0x28a   : > { %v2909_v24 = vmax.f32 %v2889_v62, 0.0  ;;  %v2770_v12 = vadd.f32 %v6065_v7, %v7230_v26  ;;  %v2761_v30 = vpop.f32.mrb[89].mxu1 }
 0x28b   : > { %v2964_v56 = vmax.f32 %v2904_v57, %v2906_v50  ;;  %v2907_v42 = vmax.f32 %v2887_v28, 0.0  ;;  %v2762_v13 = vadd.f32 %v2761_v30, %v7224_v8  ;;  %v6066_v14 = vpop.f32.mrb[90].mxu1 }
 0x28c   : > { %v2865_v6 = vmul.f32 %v7258_v47, %v2770_v12  ;;  %v2773_v54 = vadd.f32 %v6066_v14, %v7233_v29  ;;  %v2764_v16 = vpop.f32.mrb[91].mxu1 }
 0x28d   : > { %2982 = vst [vmem:[#allocation7 + $0x10] sm:$0xff] %v2964_v56  ;;  %v2965_v49 = vmax.f32 %v2905_v5, %v2907_v42  ;;  %v2967_v11 = vmax.f32 %v2907_v42, %v2909_v24  ;;  %v2863_v23 = vmul.f32 %v7258_v47, %v2762_v13  ;;  %v2765_v26 = vadd.f32 %v2764_v16, %v7227_v2  ;;  %v3046_v16 = vld [vmem:[#allocation3 + $0x9] sm:$0xff] }
 0x28e   : > { %v2892_v51 = vadd.f32 %v7268_v10, %v2865_v6  ;;  %v2866_v35 = vmul.f32 %v7258_v47, %v2773_v54 }
 0x28f   : > { %2983 = vst [vmem:[#allocation7 + $0x18] sm:$0xff] %v2965_v49  ;;  %2985 = vst [vmem:[#allocation7 + $0x28] sm:$0xff] %v2967_v11  ;;  %v2890_v8 = vadd.f32 %v7268_v10, %v2863_v23  ;;  %v2864_v32 = vmul.f32 %v7258_v47, %v2765_v26  ;;  %v7315_v49 = vld [vmem:[#allocation3 + $0x11] sm:$0xff] }
 0x290   : > { %v2912_v22 = vmax.f32 %v2892_v51, 0.0  ;;  %v2893_v29 = vadd.f32 %v7268_v10, %v2866_v35 }
 0x291   : > { %v2910_v40 = vmax.f32 %v2890_v8, 0.0  ;;  %v2891_v39 = vadd.f32 %v7268_v10, %v2864_v32  ;;  %v6069_v21 = vpop.f32.mrb[92].mxu1 }
 0x292   : > { %v2913_v43 = vmax.f32 %v2893_v29, 0.0  ;;  %v2786_v2 = vadd.f32 %v6069_v21, %v7242_v45  ;;  %v2777_v44 = vpop.f32.mrb[93].mxu1 }
 0x293   : > { %v2968_v25 = vmax.f32 %v2908_v37, %v2910_v40  ;;  %v2970_v31 = vmax.f32 %v2910_v40, %v2912_v22  ;;  %v2911_v53 = vmax.f32 %v2891_v39, 0.0  ;;  %v2778_v9 = vadd.f32 %v2777_v44, %v7236_v19  ;;  %v6070_v34 = vpop.f32.mrb[94].mxu1  ;;  %v6264_v39 = vld [vmem:[%s7673_s7 + $0x180] sm:$0xff]  }
 0x294   : > { %v2869_v55 = vmul.f32 %v7258_v47, %v2786_v2  ;;  %v2789_v27 = vadd.f32 %v6070_v34, %v7245_v3  ;;  %v2780_v1 = vpop.f32.mrb[95].mxu1  ;;  %v2999_v19 = vld [vmem:[#allocation7 + $0x11] ss:$2 sm:$0xf] }
 0x295   : > { %2986 = vst [vmem:[#allocation7 + $0x30] sm:$0xff] %v2968_v25  ;;  %2988 = vst [vmem:[#allocation7 + $0x40] sm:$0xff] %v2970_v31  ;;  %v2969_v20 = vmax.f32 %v2909_v24, %v2911_v53  ;;  %v2971_v36 = vmax.f32 %v2911_v53, %v2913_v43  ;;  %v2867_v58 = vmul.f32 %v7258_v47, %v2778_v9  ;;  %v6271_v31 = vld [vmem:[%s7673_s7 + $0x1d0] sm:$0xff]  }
 0x296   : > { %v2781_v45 = vadd.f32 %v2780_v1, %v7239_v52  ;;  %v3001_v59 = vld [vmem:[#allocation7 + $0x12] ss:$2 sm:$0xf]  ;;  %v2896_v61 = vadd.f32 %v7268_v10, %v2869_v55  ;;  %v2870_v63 = vmul.f32 %v7258_v47, %v2789_v27 }
 0x297   : > { %2987 = vst [vmem:[#allocation7 + $0x38] sm:$0xff] %v2969_v20  ;;  %2989 = vst [vmem:[#allocation7 + $0x48] sm:$0xff] %v2971_v36  ;;  %v2894_v33 = vadd.f32 %v7268_v10, %v2867_v58  ;;  %v3002_v0 = vmax.f32 %v2999_v19, %v3001_v59  ;;  %v6272_v58 = vld [vmem:[%s7673_s7 + $0x190] sm:$0xff]   ;;  %v6276_v59 = vld [vmem:[%s7673_s7 + $0x198] sm:$0xff]  }
 0x298   : > { %v2868_v3 = vmul.f32 %v7258_v47, %v2781_v45  ;;  %v2916_v4 = vmax.f32 %v2896_v61, 0.0  ;;  %v2897_v41 = vadd.f32 %v7268_v10, %v2870_v63  ;;  %v6275_v45 = vld [vmem:[%s7673_s7 + $0x1d8] sm:$0xff]   ;;  %v6279_v61 = vld [vmem:[%s7673_s7 + $0x1e0] sm:$0xff]  }
 0x299   : > { %v2914_v62 = vmax.f32 %v2894_v33, 0.0  ;;  %v6073_v52 = vpop.f32.mrb[96].mxu1  ;;  %3003 = vst [vmem:[#allocation3 + $0x19] sm:$0xf] %v3002_v0 }
 0x29a   : > { %v2895_v57 = vadd.f32 %v7268_v10, %v2868_v3  ;;  %v2917_v50 = vmax.f32 %v2897_v41, 0.0  ;;  %v2802_v28 = vadd.f32 %v6073_v52, %v7260_v60  ;;  %v2793_v7 = vpop.f32.mrb[97].mxu1  ;;  %v6283_v52 = vld [vmem:[%s7673_s7 + $0x1e8] sm:$0xff]  }
 0x29b   : > { %v2972_v24 = vmax.f32 %v2912_v22, %v2914_v62  ;;  %v2974_v12 = vmax.f32 %v2914_v62, %v2916_v4  ;;  %v2794_v5 = vadd.f32 %v2793_v7, %v7248_v17  ;;  %v6074_v56 = vpop.f32.mrb[98].mxu1  ;;  %v3052_v22 = vpack.c.bf16 %v7315_v49, %v3046_v16  ;;  %v6280_v62 = vld [vmem:[%s7673_s7 + $0x1a0] sm:$0xff]   ;;  %v6287_v7 = vld [vmem:[%s7673_s7 + $0x1f0] sm:$0xff]   ;;  %v6292_v16 = vld [vmem:[%s7673_s7 + $0x1b8] sm:$0xff]  }
 0x29c   : > { %v2915_v30 = vmax.f32 %v2895_v57, 0.0  ;;  %v2873_v42 = vmul.f32 %v7258_v47, %v2802_v28  ;;  %v2805_v13 = vadd.f32 %v6074_v56, %v7262_v48  ;;  %v2796_v14 = vpop.f32.mrb[99].mxu1  ;;  %v3005_v23 = vld [vmem:[#allocation7 + $0x31] ss:$2 sm:$0xf]  ;;  %v3063_v28 = vld [vmem:[#allocation3 + $0x37] sm:$0xff] }
 0x29d   : > { %2990 = vst [vmem:[#allocation7 + $0x50] sm:$0xff] %v2972_v24  ;;  %2992 = vst [vmem:[#allocation7 + $0x60] sm:$0xff] %v2974_v12  ;;  %v2871_v54 = vmul.f32 %v7258_v47, %v2794_v5  ;;  %v2797_v60 = vadd.f32 %v2796_v14, %v7251_v18 }
 0x29e   : > { %v2973_v15 = vmax.f32 %v2913_v43, %v2915_v30  ;;  %v2975_v6 = vmax.f32 %v2915_v30, %v2917_v50  ;;  %v2900_v11 = vadd.f32 %v7268_v10, %v2873_v42  ;;  %v2874_v17 = vmul.f32 %v7258_v47, %v2805_v13  ;;  %v3007_v26 = vld [vmem:[#allocation7 + $0x32] ss:$2 sm:$0xf] }
 0x29f   : > { %v2898_v48 = vadd.f32 %v7268_v10, %v2871_v54  ;;  %v2872_v51 = vmul.f32 %v7258_v47, %v2797_v60  ;;  %v3008_v35 = vmax.f32 %v3005_v23, %v3007_v26  ;;  %v6267_v47 = vld [vmem:[%s7673_s7 + $0x1c8] sm:$0xff]   ;;  %v6291_v54 = vld [vmem:[%s7673_s7 + $0x1f8] sm:$0xff]  }
 0x2a0   : > { %2991 = vst [vmem:[#allocation7 + $0x58] sm:$0xff] %v2973_v15  ;;  %2993 = vst [vmem:[#allocation7 + $0x68] sm:$0xff] %v2975_v6  ;;  %v2920_v8 = vmax.f32 %v2900_v11, 0.0  ;;  %v2901_v32 = vadd.f32 %v7268_v10, %v2874_v17  ;;  %v3059_v18 = vld [vmem:[#allocation3 + $0x17] sm:$0xff]  ;;  %v6288_v6 = vld [vmem:[%s7673_s7 + $0x1b0] sm:$0xff]  }
 0x2a1   : > { %v2918_v29 = vmax.f32 %v2898_v48, 0.0  ;;  %v2899_v37 = vadd.f32 %v7268_v10, %v2872_v51  ;;  %v3064_v40 = vpack.c.bf16 %v3059_v18, %v7135_v46  ;;  %3009 = vst [vmem:[#allocation3 + $0x21] sm:$0xf] %v3008_v35  ;;  %v6268_v46 = vld [vmem:[%s7673_s7 + $0x188] sm:$0xff]   ;;  %v6293_v11 = vld [vmem:[%s7673_s7 + $0x200] sm:$0xff]   ;;  %v6374_v26 = vld [vmem:[#allocation2 + $0x18] sm:$0xff] }
 0x2a2   : > { %v2921_v21 = vmax.f32 %v2901_v32, 0.0  ;;  %v7337_v55 = vld [vmem:[#allocation3 + $0x18] sm:$0xff]  ;;  %v3111_v48 = vld [vmem:[#allocation3 + $0x40] sm:$0xff] }
 0x2a3   : > { %v2976_v43 = vmax.f32 %v2916_v4, %v2918_v29  ;;  %v2978_v2 = vmax.f32 %v2918_v29, %v2920_v8  ;;  %v2919_v44 = vmax.f32 %v2899_v37, 0.0  ;;  %3822 = vmatprep.mubr.bf16.mxu0 %v3064_v40  ;;  %v3048_v41 = vld [vmem:[#allocation3 + $0x19] sm:$0xff]  ;;  %v3076_v17 = vpack.c.bf16 %v7337_v55, %v7129_v38  ;;  %v6297_v40 = vld [vmem:[%s7673_s7 + $0x220] sm:$0xff]  }
 0x2a4   : > { %3823 = vmatmul.mubr.bf16.vlgmr.msra.gmra.mrb[112].mxu0 %v3052_v22  ;;  %v3011_v53 = vld [vmem:[#allocation7 + $0x51] ss:$2 sm:$0xf]  ;;  %v3088_v60 = vpack.c.bf16 %v3048_v41, %v7315_v49  ;;  %v6294_v23 = vld [vmem:[%s7673_s7 + $0x208] sm:$0xff]   ;;  %v6296_v22 = vld [vmem:[%s7673_s7 + $0x218] sm:$0xff]  }
 0x2a5   : > { %2994 = vst [vmem:[#allocation7 + $0x70] sm:$0xff] %v2976_v43  ;;  %2996 = vst [vmem:[#allocation7 + $0x80] sm:$0xff] %v2978_v2  ;;  %v2977_v10 = vmax.f32 %v2917_v50, %v2919_v44  ;;  %v2979_v25 = vmax.f32 %v2919_v44, %v2921_v21  ;;  %5827 = vmatpush3.bf16.msra.mxu0 %v6264_v39  ;;  %v6284_v50 = vld [vmem:[%s7673_s7 + $0x1a8] sm:$0xff]   ;;  %v6295_v35 = vld [vmem:[%s7673_s7 + $0x210] sm:$0xff]  }
 0x2a6   : > { %5828 = vmatprep.subr.bf16.mxu0 %v6267_v47  ;;  %v3087_v51 = vld [vmem:[#allocation3 + $0x39] sm:$0xff]  ;;  %v6300_v43 = vld [vmem:[%s7673_s7 + $0x238] sm:$0xff]  }
 0x2a7   : > { %v3013_v9 = vld [vmem:[#allocation7 + $0x52] ss:$2 sm:$0xf]  ;;  %2995 = vst [vmem:[#allocation7 + $0x78] sm:$0xff] %v2977_v10  ;;  %2997 = vst [vmem:[#allocation7 + $0x88] sm:$0xff] %v2979_v25  ;;  %v3075_v38 = vld [vmem:[#allocation3 + $0x38] sm:$0xff] }
 0x2a8   : > { %v3014_v34 = vmax.f32 %v3011_v53, %v3013_v9  ;;  %v7339_v27 = vld [vmem:[#allocation3 + $0x20] sm:$0xff]  ;;  %v3114_v32 = vpack.c.bf16 %v3111_v48, %v3075_v38  ;;  %v6298_v21 = vld [vmem:[%s7673_s7 + $0x228] sm:$0xff]   ;;  %v6301_v9 = vld [vmem:[%s7676_s10 + $0x40] sm:$0xff]  }
 0x2a9   : > { %v3025_v1 = vld [vmem:[#allocation3 + $0x1f] sm:$0xff]  ;;  %5829 = vmatpush3.bf16.msra.mxu0 %v6268_v46  ;;  %v3041_v20 = vpack.c.bf16 %v7339_v27, %v7337_v55  ;;  %v6337_v48 = vld [vmem:[%s7676_s10 + $0xf8] sm:$0xff]  }
 0x2aa   : > { %v3029_v36 = vpack.c.bf16 %v3025_v1, %v3059_v18  ;;  %3015 = vst [vmem:[#allocation3 + $0x29] sm:$0xf] %v3014_v34  ;;  %5830 = vmatprep.subr.bf16.mxu0 %v6271_v31  ;;  %v3049_v33 = vld [vmem:[#allocation3 + $0x21] sm:$0xff]  ;;  %v6302_v34 = vld [vmem:[%s7676_s10] sm:$0xff]   ;;  %v6303_v55 = vld [vmem:[%s7676_s10 + $0x48] sm:$0xff]  }
 0x2ab   : > { %3773 = vmatprep.mubr.bf16.mxu1 %v3041_v20  ;;  %v7358_v57 = vpack.c.bf16 %v3049_v33, %v3048_v41  ;;  %v3099_v29 = vld [vmem:[#allocation3 + $0x3f] sm:$0xff] }
 0x2ac   : > { %3774 = vmatmul.mubr.bf16.gmra.mrb[104].mxu1 %v3029_v36  ;;  %v3017_v63 = vld [vmem:[#allocation7 + $0x71] ss:$2 sm:$0xf]  ;;  %v3102_v37 = vpack.c.bf16 %v3099_v29, %v3063_v28  ;;  %v6347_v29 = vld [vmem:[%s7676_s10 + $0x128] sm:$0xff]  }
 0x2ad   : > { %5831 = vmatpush3.bf16.msra.mxu0 %v6272_v58  ;;  %v6299_v47 = vld [vmem:[%s7673_s7 + $0x230] sm:$0xff]   ;;  %v6308_v58 = vld [vmem:[%s7676_s10 + $0x18] sm:$0xff]  }
 0x2ae   : > { %5832 = vmatprep.subr.bf16.mxu0 %v6275_v45  ;;  %v3019_v19 = vld [vmem:[#allocation7 + $0x72] ss:$2 sm:$0xf]  ;;  %v6309_v45 = vld [vmem:[%s7676_s10 + $0x60] sm:$0xff]  }
 0x2af   : > { %v3020_v3 = vmax.f32 %v3017_v63, %v3019_v19  ;;  %v3123_v2 = vld [vmem:[#allocation3 + $0x41] sm:$0xff]  ;;  %v6312_v63 = vld [vmem:[%s7676_s10 + $0x80] sm:$0xff]   ;;  %v6313_v19 = vld [vmem:[%s7676_s10 + $0x68] sm:$0xff]  }
 0x2b0   : > { %v3126_v44 = vpack.c.bf16 %v3123_v2, %v3087_v51  ;;  %v6318_v41 = vld [vmem:[%s7676_s10 + $0x30] sm:$0xff]  }
 0x2b1   : > { %v3061_v0 = vld [vmem:[#allocation3 + $0x27] sm:$0xff]  ;;  %5833 = vmatpush3.bf16.msra.mxu0 %v6276_v59  ;;  %3021 = vst [vmem:[#allocation3 + $0x31] sm:$0xf] %v3020_v3  ;;  %v6310_v59 = vld [vmem:[%s7676_s10 + $0x20] sm:$0xff]   ;;  %v6315_v3 = vld [vmem:[%s7676_s10 + $0xc8] sm:$0xff]  }
 0x2b2   : > { %v3065_v4 = vpack.c.bf16 %v3061_v0, %v3025_v1  ;;  %5834 = vmatprep.subr.bf16.mxu0 %v6279_v61  ;;  %v3038_v24 = vld [vmem:[#allocation3 + $0x28] sm:$0xff]  ;;  %v6305_v1 = vld [vmem:[%s7676_s10 + $0x50] sm:$0xff]   ;;  %v6311_v61 = vld [vmem:[%s7676_s10 + $0xc0] sm:$0xff]  }
 0x2b3   : > { %v3050_v12 = vld [vmem:[#allocation3 + $0x29] sm:$0xff]  ;;  %v3077_v8 = vpack.c.bf16 %v3038_v24, %v7339_v27  ;;  %v6304_v27 = vld [vmem:[%s7676_s10 + $0x8] sm:$0xff]  }
 0x2b4   : > { %3830 = vmatprep.mubr.bf16.mxu0 %v3065_v4  ;;  %v3089_v49 = vpack.c.bf16 %v3050_v12, %v3049_v33  ;;  %v6314_v33 = vld [vmem:[%s7676_s10 + $0x28] sm:$0xff]   ;;  %v6317_v4 = vld [vmem:[%s7676_s10 + $0x70] sm:$0xff]  }
 0x2b5   : > { %3831 = vmatmul.mubr.bf16.gmra.mrb[116].mxu0 %v7358_v57 }
 0x2b6   : > { %5835 = vmatpush3.bf16.msra.mxu0 %v6280_v62  ;;  %v6319_v62 = vld [vmem:[%s7676_s10 + $0xd0] sm:$0xff]  }
 0x2b7   : > { %5836 = vmatprep.subr.bf16.mxu0 %v6283_v52  ;;  %v6321_v52 = vld [vmem:[%s7676_s10 + $0x78] sm:$0xff]  }
 0x2b8   : > { %v3039_v30 = vld [vmem:[#allocation3 + $0x30] sm:$0xff] }
 0x2b9   : > { %v3062_v5 = vld [vmem:[#allocation3 + $0x2f] sm:$0xff]  ;;  %v3042_v42 = vpack.c.bf16 %v3039_v30, %v3038_v24  ;;  %v3078_v39 = vpack.c.bf16 %v3075_v38, %v3039_v30  ;;  %v7483_v24 = vld [vmem:[#allocation4 + $0x10] sm:$0xff] }
 0x2ba   : > { %v3051_v56 = vld [vmem:[#allocation3 + $0x31] sm:$0xff]  ;;  %5837 = vmatpush3.bf16.msra.mxu0 %v6284_v50  ;;  %v3066_v13 = vpack.c.bf16 %v3063_v28, %v3062_v5  ;;  %v3030_v14 = vpack.c.bf16 %v3062_v5, %v3061_v0  ;;  %v6322_v50 = vld [vmem:[%s7676_s10 + $0x38] sm:$0xff]  }
 0x2bb   : > { %v7370_v15 = vpack.c.bf16 %v3051_v56, %v3050_v12  ;;  %5838 = vmatprep.subr.bf16.mxu0 %v6287_v7  ;;  %3781 = vmatprep.mubr.bf16.mxu1 %v3042_v42  ;;  %v3090_v18 = vpack.c.bf16 %v3087_v51, %v3051_v56  ;;  %v6316_v0 = vld [vmem:[%s7676_s10 + $0x88] sm:$0xff]   ;;  %v6323_v28 = vld [vmem:[%s7676_s10 + $0xd8] sm:$0xff]  }
 0x2bc   : > { %3838 = vmatprep.mubr.bf16.mxu0 %v3066_v13  ;;  %3782 = vmatmul.mubr.bf16.gmra.mrb[108].mxu1 %v3030_v14  ;;  %v4104_v7 = vld [vmem:[#allocation4 + $0x8] sm:$0xff]  ;;  %v6324_v30 = vld [vmem:[%s7676_s10 + $0x98] sm:$0xff]   ;;  %v6325_v13 = vld [vmem:[%s7676_s10 + $0xe0] sm:$0xff]  }
 0x2bd   : > { %3839 = vmatmul.mubr.bf16.gmra.mrb[120].mxu0 %v7370_v15  ;;  %3879 = vmatprep.mubr.bf16.mxu1 %v3088_v60  ;;  %v4108_v12 = vpack.c.bf16 %v7483_v24, %v4104_v7  ;;  %v4096_v5 = vld [vmem:[#allocation4 + $0x7] sm:$0xff]  ;;  %v7489_v56 = vld [vmem:[#allocation4 + $0xf] sm:$0xff]  ;;  %v6338_v51 = vld [vmem:[%s7676_s10 + $0x158] sm:$0xff]  }
 0x2be   : > { %5839 = vmatpush3.bf16.msra.mxu0 %v6288_v6  ;;  %3936 = vmatprep.mubr.bf16.mxu0 %v3041_v20  ;;  %v6306_v20 = vld [vmem:[%s7676_s10 + $0x10] sm:$0xff]   ;;  %v6328_v6 = vld [vmem:[%s7676_s10 + $0x100] sm:$0xff]   ;;  %v6330_v60 = vld [vmem:[%s7676_s10 + $0x148] sm:$0xff]  }
 0x2bf   : > { %5840 = vmatprep.subr.bf16.mxu0 %v6291_v54  ;;  %v6329_v54 = vld [vmem:[%s7676_s10 + $0xe8] sm:$0xff]   ;;  %v6340_v38 = vld [vmem:[%s7676_s10 + $0x118] sm:$0xff]  }
 0x2c2   : > { %5841 = vmatpush3.bf16.msra.mxu0 %v6292_v16  ;;  %v6331_v16 = vld [vmem:[%s7676_s10 + $0xa8] sm:$0xff]  }
 0x2c3   : > { %5871 = vmatprep.subr.bf16.mxu0 %v6301_v9 }
 0x2c4   : > { %3880 = vmatmul.mubr.bf16.vlgmr.msra.gmra.mrb[112].mxu1 %v3076_v17  ;;  %v6333_v17 = vld [vmem:[%s7676_s10 + $0xf0] sm:$0xff]  }
 0x2c5   : > { %3937 = vmatmul.mubr.bf16.vlgmr.msra.gmra.mrb[124].mxu0 %v3029_v36  ;;  %6076 = vmatpush3.bf16.msra.mxu1 %v6293_v11  ;;  %v6307_v36 = vld [vmem:[%s7676_s10 + $0x58] sm:$0xff]   ;;  %v6332_v11 = vld [vmem:[%s7676_s10 + $0x108] sm:$0xff]  }
 0x2c6   : > { %3887 = vmatprep.mubr.bf16.mxu1 %v3089_v49  ;;  %3944 = vmatprep.mubr.bf16.mxu0 %v3042_v42  ;;  %v4100_v42 = vpack.c.bf16 %v7489_v56, %v4096_v5  ;;  %v6334_v49 = vld [vmem:[%s7676_s10 + $0x150] sm:$0xff]  }
 0x2c7   : > { %6077 = vmatprep.subr.bf16.mxu1 %v6374_v26  ;;  %5872 = vmatpush3.bf16.msra.mxu0 %v6302_v34 }
 0x2c8   : > { %5873 = vmatprep.subr.bf16.mxu0 %v6303_v55 }
 0x2c9   : > { %6078 = vmatpush3.bf16.msra.mxu1 %v6294_v23  ;;  %v6335_v23 = vld [vmem:[%s7676_s10 + $0xb0] sm:$0xff]  }
 0x2ca   : > { %6079 = vmatprep.subr.bf16.mxu1 %v6374_v26 }
 0x2cb   : > { %5874 = vmatpush3.bf16.msra.mxu0 %v6304_v27 }
 0x2cc   : > { %3888 = vmatmul.mubr.bf16.gmra.mrb[116].mxu1 %v3077_v8  ;;  %5875 = vmatprep.subr.bf16.mxu0 %v6305_v1  ;;  %v6341_v8 = vld [vmem:[%s7676_s10 + $0x160] sm:$0xff]  }
 0x2cd   : > { %3945 = vmatmul.mubr.bf16.gmra.mrb[128].mxu0 %v3030_v14  ;;  %6080 = vmatpush3.bf16.msra.mxu1 %v6295_v35  ;;  %v6326_v14 = vld [vmem:[%s7676_s10 + $0x140] sm:$0xff]   ;;  %v6339_v35 = vld [vmem:[%s7676_s10 + $0xb8] sm:$0xff]  }
 0x2ce   : > { %3895 = vmatprep.mubr.bf16.mxu1 %v3090_v18  ;;  %6081 = vmatprep.subr.bf16.mxu1 %v6374_v26  ;;  %v6343_v18 = vld [vmem:[%s7676_s10 + $0x120] sm:$0xff]  }
 0x2cf   : > { %3952 = vmatprep.mubr.bf16.mxu0 %v3114_v32  ;;  %5876 = vmatpush3.bf16.msra.mxu0 %v6306_v20  ;;  %v6342_v32 = vld [vmem:[%s7676_s10 + $0x1c0] sm:$0xff]  }
 0x2d0   : > { %5877 = vmatprep.subr.bf16.mxu0 %v6307_v36 }
 0x2d1   : > { %6082 = vmatpush3.bf16.msra.mxu1 %v6296_v22  ;;  %v6345_v22 = vld [vmem:[%s7676_s10 + $0x168] sm:$0xff]  }
 0x2d2   : > { %6083 = vmatprep.subr.bf16.mxu1 %v6374_v26 }
 0x2d3   : > { %5878 = vmatpush3.bf16.msra.mxu0 %v6308_v58 }
 0x2d4   : > { %3896 = vmatmul.mubr.bf16.gmra.mrb[120].mxu1 %v3078_v39  ;;  %5879 = vmatprep.subr.bf16.mxu0 %v6309_v45  ;;  %v6353_v39 = vld [vmem:[%s7676_s10 + $0x178] sm:$0xff]  }
 0x2d5   : > { %3953 = vmatmul.mubr.bf16.gmra.mrb[132].mxu0 %v3102_v37  ;;  %6084 = vmatpush3.bf16.msra.mxu1 %v6297_v40  ;;  %v6349_v37 = vld [vmem:[%s7676_s10 + $0x170] sm:$0xff]  }
 0x2d6   : > { %6091 = vmatprep.mubr.msk.bf16.mxu1 %vm6384_vm2, %v6374_v26  ;;  %6085 = vmatprep.subr.bf16.mxu1 %v6374_v26  ;;  %v6351_v40 = vld [vmem:[%s7676_s10 + $0x130] sm:$0xff]  }
 0x2d7   : > { %5880 = vmatpush3.bf16.msra.mxu0 %v6310_v59  ;;  %4794 = vmatprep.mubr.bf16.mxu0 %v4108_v12 }
 0x2d8   : > { %5881 = vmatprep.subr.bf16.mxu0 %v6313_v19 }
 0x2d9   : > { %6086 = vmatpush3.bf16.msra.mxu1 %v6298_v21  ;;  %v6355_v21 = vld [vmem:[%s7676_s10 + $0x138] sm:$0xff]  }
 0x2da   : > { %6087 = vmatprep.subr.bf16.mxu1 %v6374_v26 }
 0x2db   : > { %5882 = vmatpush3.bf16.msra.mxu0 %v6314_v33 }
 0x2dc   : > { %5883 = vmatprep.subr.bf16.mxu0 %v6317_v4 }
 0x2dd   : > { %6088 = vmatpush3.bf16.msra.mxu1 %v6299_v47  ;;  %v7570_v47 = vld [vmem:[%s7676_s10 + $0x200] sm:$0xff]  }
 0x2de   : > { %6089 = vmatprep.subr.bf16.mxu1 %v6374_v26 }
 0x2df   : > { %5884 = vmatpush3.bf16.msra.mxu0 %v6318_v41 }
 0x2e0   : > { %5885 = vmatprep.subr.bf16.mxu0 %v6321_v52 }
 0x2e1   : > { %6090 = vmatpush3.bf16.msra.mxu1 %v6300_v43 }
 0x2e2   : > { %5899 = vmatprep.subr.bf16.mxu1 %v6311_v61 }
 0x2e3   : > { %5886 = vmatpush3.bf16.msra.mxu0 %v6322_v50 }
 0x2e4   : > { %6092 = vmatmul.mubr.bf16.vlgmr.msra.gmra.mrb[124].mxu1 %v7358_v57  ;;  %v6320_v57 = vld [vmem:[%s7676_s10 + $0x90] sm:$0xff]   ;;  %5927 = vmatprep.subr.bf16.mxu0 %v6326_v14 }
 0x2e5   : > { %6095 = vmatprep.mubr.msk.bf16.mxu1 %vm6384_vm2, %v6374_v26  ;;  %5900 = vmatpush3.bf16.msra.mxu1 %v6312_v63 }
 0x2e6   : > { %5901 = vmatprep.subr.bf16.mxu1 %v6315_v3  ;;  %4795 = vmatmul.mubr.bf16.vlgmr.msra.gmra.mrb[136].mxu0 %v4100_v42 }
 0x2e7   : > { %5928 = vmatpush3.bf16.msra.mxu0 %v6328_v6 }
 0x2e8   : > { %5929 = vmatprep.subr.bf16.mxu0 %v6330_v60 }
 0x2e9   : > { %5902 = vmatpush3.bf16.msra.mxu1 %v6316_v0 }
 0x2ea   : > { %5903 = vmatprep.subr.bf16.mxu1 %v6319_v62 }
 0x2eb   : > { %5930 = vmatpush3.bf16.msra.mxu0 %v6332_v11 }
 0x2ec   : > { %6096 = vmatmul.mubr.bf16.gmra.mrb[128].mxu1 %v7370_v15  ;;  %v6327_v15 = vld [vmem:[%s7676_s10 + $0xa0] sm:$0xff]   ;;  %5931 = vmatprep.subr.bf16.mxu0 %v6334_v49 }
 0x2ed   : > { %6099 = vmatprep.mubr.msk.bf16.mxu1 %vm6384_vm2, %v6374_v26  ;;  %v5740_v10 = vpop.f32.mrb[100].mxu1  ;;  %5904 = vmatpush3.bf16.msra.mxu1 %v6320_v57  ;;  %v6336_v26 = vld [vmem:[%s7676_s10 + $0x110] sm:$0xff]  }
 0x2ee   : > { %v5741_v25 = vpop.f32.mrb[101].mxu1  ;;  %5905 = vmatprep.subr.bf16.mxu1 %v6323_v28 }
 0x2ef   : > { %v5743_v46 = vpop.f32.mrb[102].mxu1  ;;  %5932 = vmatpush3.bf16.msra.mxu0 %v6336_v26 }
 0x2f0   : > { %v5744_v31 = vpop.f32.mrb[103].mxu1  ;;  %5933 = vmatprep.subr.bf16.mxu0 %v6338_v51 }
 0x2f1   : > { %v7412_v53 = vadd.f32 %v5744_v31, %v5743_v46  ;;  %5906 = vmatpush3.bf16.msra.mxu1 %v6324_v30 }
 0x2f2   : > { %5907 = vmatprep.subr.bf16.mxu1 %v6325_v13 }
 0x2f3   : > { %5934 = vmatpush3.bf16.msra.mxu0 %v6340_v38 }
 0x2f4   : > { %6100 = vmatmul.mubr.bf16.gmra.mrb[132].mxu1 %v3126_v44  ;;  %5935 = vmatprep.subr.bf16.mxu0 %v6341_v8 }
 0x2f5   : > { %5908 = vmatpush3.bf16.msra.mxu1 %v6327_v15 }
 0x2f6   : > { %5909 = vmatprep.subr.bf16.mxu1 %v6329_v54 }
 0x2f7   : > { %5936 = vmatpush3.bf16.msra.mxu0 %v6343_v18 }
 0x2f8   : > { %5937 = vmatprep.subr.bf16.mxu0 %v6345_v22 }
 0x2f9   : > { %5910 = vmatpush3.bf16.msra.mxu1 %v6331_v16 }
 0x2fa   : > { %5911 = vmatprep.subr.bf16.mxu1 %v6333_v17 }
 0x2fb   : > { %5938 = vmatpush3.bf16.msra.mxu0 %v6347_v29 }
 0x2fc   : > { %5939 = vmatprep.subr.bf16.mxu0 %v6349_v37 }
 0x2fd   : > { %5912 = vmatpush3.bf16.msra.mxu1 %v6335_v23 }
 0x2fe   : > { %5913 = vmatprep.subr.bf16.mxu1 %v6337_v48 }
 0x2ff   : > { %5940 = vmatpush3.bf16.msra.mxu0 %v6351_v40 }
 0x300   : > { %5941 = vmatprep.subr.bf16.mxu0 %v6353_v39 }
 0x301   : > { %5914 = vmatpush3.bf16.msra.mxu1 %v6339_v35 }
 0x302   : > { %5955 = vmatprep.subr.bf16.mxu1 %v6342_v32 }
 0x303   : > { %5942 = vmatpush3.bf16.msra.mxu0 %v6355_v21 }
 0x304   : > { %6103 = vmatprep.subr.bf16.mxu0 %v7570_v47 }
 0x377   : > { %v5774_v43 = vpop.f32.mrb[112].mxu0 }
 0x378   : > { %v5775_v2 = vpop.f32.mrb[113].mxu0 }
 0x379   : > { %v5777_v44 = vpop.f32.mrb[114].mxu0 }
 0x37a   : > { %v5778_v10 = vpop.f32.mrb[115].mxu0 }
 0x37b   : > { %v5779_v25 = vadd.f32 %v5778_v10, %v5777_v44 }
 0x37d   : > { %v3828_v46 = vadd.f32 %v5779_v25, %v7412_v53 }
 0x37f   : > { %v5746_v31 = vpop.f32.mrb[104].mxu1 }
 0x380   : > { %v5747_v9 = vpop.f32.mrb[105].mxu1 }
 0x381   : > { %v5748_v34 = vadd.f32 %v5747_v9, %v5746_v31  ;;  %v5749_v55 = vpop.f32.mrb[106].mxu1 }
 0x382   : > { %v5750_v27 = vpop.f32.mrb[107].mxu1 }
 0x383   : > { %v5751_v1 = vadd.f32 %v5750_v27, %v5749_v55 }
 0x388   : > { %v5780_v20 = vpop.f32.mrb[116].mxu0 }
 0x389   : > { %v5781_v36 = vpop.f32.mrb[117].mxu0 }
 0x38a   : > { %v5782_v58 = vadd.f32 %v5781_v36, %v5780_v20  ;;  %v5783_v45 = vpop.f32.mrb[118].mxu0 }
 0x38b   : > { %v5784_v59 = vpop.f32.mrb[119].mxu0 }
 0x38c   : > { %v3833_v61 = vadd.f32 %v5782_v58, %v5748_v34  ;;  %v5785_v63 = vadd.f32 %v5784_v59, %v5783_v45 }
 0x38e   : > { %v3836_v19 = vadd.f32 %v5785_v63, %v5751_v1 }
 0x38f   : > { %v5752_v33 = vpop.f32.mrb[108].mxu1 }
 0x390   : > { %v5786_v3 = vpop.f32.mrb[120].mxu0  ;;  %v5753_v0 = vpop.f32.mrb[109].mxu1 }
 0x391   : > { %v5787_v4 = vpop.f32.mrb[121].mxu0  ;;  %v5754_v41 = vadd.f32 %v5753_v0, %v5752_v33  ;;  %v5755_v62 = vpop.f32.mrb[110].mxu1  ;;  %v5300_v0 = vld [vmem:[%s7674_s8] ss:$0 sm:$0xff] }
 0x392   : > { %v5788_v53 = vadd.f32 %v5787_v4, %v5786_v3  ;;  %v5789_v57 = vpop.f32.mrb[122].mxu0  ;;  %v5756_v52 = vpop.f32.mrb[111].mxu1 }
 0x393   : > { %v5790_v50 = vpop.f32.mrb[123].mxu0  ;;  %v5757_v7 = vadd.f32 %v5756_v52, %v5755_v62 }
 0x394   : > { %v3841_v28 = vadd.f32 %v5788_v53, %v5754_v41  ;;  %v5791_v12 = vadd.f32 %v5790_v50, %v5789_v57  ;;  %v5301_v41 = vld [vmem:[%s7675_s9] ss:$0 sm:$0xff] }
 0x396   : > { %v3844_v30 = vadd.f32 %v5791_v12, %v5757_v7 }
 0x397   : > { %v5808_v5 = vpop.f32.mrb[112].mxu1 }
 0x398   : > { %v5842_v42 = vpop.f32.mrb[124].mxu0  ;;  %v5809_v13 = vpop.f32.mrb[113].mxu1 }
 0x399   : > { %v5843_v14 = vpop.f32.mrb[125].mxu0  ;;  %v5811_v15 = vpop.f32.mrb[114].mxu1 }
 0x39a   : > { %v5845_v6 = vpop.f32.mrb[126].mxu0  ;;  %v5812_v54 = vpop.f32.mrb[115].mxu1 }
 0x39b   : > { %v5846_v60 = vpop.f32.mrb[127].mxu0  ;;  %v5813_v16 = vadd.f32 %v5812_v54, %v5811_v15 }
 0x39c   : > { %v5847_v11 = vadd.f32 %v5846_v60, %v5845_v6 }
 0x39d   : > { %v3885_v17 = vadd.f32 %v5813_v16, %v3828_v46 }
 0x39f   : > { %v5814_v49 = vpop.f32.mrb[116].mxu1  ;;  %v3942_v26 = vadd.f32 %v5847_v11, %v3885_v17 }
 0x3a0   : > { %v5848_v23 = vpop.f32.mrb[128].mxu0  ;;  %v5815_v48 = vpop.f32.mrb[117].mxu1 }
 0x3a1   : > { %v5849_v51 = vpop.f32.mrb[129].mxu0  ;;  %v5816_v35 = vadd.f32 %v5815_v48, %v5814_v49  ;;  %v5817_v8 = vpop.f32.mrb[118].mxu1 }
 0x3a2   : > { %v5850_v38 = vadd.f32 %v5849_v51, %v5848_v23  ;;  %v5851_v32 = vpop.f32.mrb[130].mxu0  ;;  %v5818_v18 = vpop.f32.mrb[119].mxu1 }
 0x3a3   : > { %v5852_v22 = vpop.f32.mrb[131].mxu0  ;;  %v3890_v29 = vadd.f32 %v5816_v35, %v3833_v61  ;;  %v5819_v37 = vadd.f32 %v5818_v18, %v5817_v8 }
 0x3a4   : > { %v5853_v40 = vadd.f32 %v5852_v22, %v5851_v32 }
 0x3a5   : > { %v3893_v39 = vadd.f32 %v5819_v37, %v3836_v19  ;;  %v3947_v21 = vadd.f32 %v5850_v38, %v3890_v29  ;;  %v4112_v37 = vld [vmem:[#allocation4 + $0x9] sm:$0xff] }
 0x3a7   : > { %v5820_v43 = vpop.f32.mrb[120].mxu1  ;;  %v3950_v44 = vadd.f32 %v5853_v40, %v3893_v39  ;;  %v4113_v40 = vld [vmem:[#allocation4 + $0x11] sm:$0xff] }
 0x3a8   : > { %v5854_v2 = vpop.f32.mrb[132].mxu0  ;;  %v5821_v10 = vpop.f32.mrb[121].mxu1 }
 0x3a9   : > { %v5855_v25 = vpop.f32.mrb[133].mxu0  ;;  %v5822_v46 = vadd.f32 %v5821_v10, %v5820_v43  ;;  %v5823_v31 = vpop.f32.mrb[122].mxu1 }
 0x3aa   : > { %v5856_v9 = vadd.f32 %v5855_v25, %v5854_v2  ;;  %v5857_v34 = vpop.f32.mrb[134].mxu0  ;;  %v5824_v55 = vpop.f32.mrb[123].mxu1  ;;  %v6344_v25 = vld [vmem:[%s7676_s10 + $0x180] sm:$0xff]  }
 0x3ab   : > { %v5858_v27 = vpop.f32.mrb[135].mxu0  ;;  %v3898_v1 = vadd.f32 %v5822_v46, %v3841_v28  ;;  %v5825_v20 = vadd.f32 %v5824_v55, %v5823_v31  ;;  %v6346_v46 = vld [vmem:[%s7676_s10 + $0x1c8] sm:$0xff]  }
 0x3ac   : > { %v5859_v36 = vadd.f32 %v5858_v27, %v5857_v34  ;;  %v6348_v31 = vld [vmem:[%s7676_s10 + $0x188] sm:$0xff]  }
 0x3ad   : > { %v3901_v58 = vadd.f32 %v5825_v20, %v3844_v30  ;;  %v3955_v45 = vadd.f32 %v5856_v9, %v3898_v1  ;;  %v7590_v9 = vld [vmem:[#allocation4 + $0x27] sm:$0xff] }
 0x3af   : > { %v3958_v59 = vadd.f32 %v5859_v36, %v3901_v58 }
 0x3b7   : > { %v3995_v61 = vpop.f32.mrb[124].mxu1 }
 0x3b8   : > { %v6093_v63 = vpop.f32.mrb[125].mxu1  ;;  %v6352_v61 = vld [vmem:[%s7676_s10 + $0x190] sm:$0xff]  }
 0x3b9   : > { %v3998_v19 = vpop.f32.mrb[126].mxu1  ;;  %v6354_v63 = vld [vmem:[%s7676_s10 + $0x1d8] sm:$0xff]  }
 0x3ba   : > { %v3999_v33 = vadd.f32 %v3998_v19, %v3942_v26  ;;  %v6094_v3 = vpop.f32.mrb[127].mxu1 }
 0x3bb   : > { %v6357_v3 = vld [vmem:[%s7676_s10 + $0x1e0] sm:$0xff]  }
 0x3bc   : > { %v4038_v4 = vmul.f32 %v5300_v0, %v3999_v33  ;;  %v6356_v33 = vld [vmem:[%s7676_s10 + $0x198] sm:$0xff]  }
 0x3be   : > { %v4051_v50 = vadd.f32 %v5301_v41, %v4038_v4  ;;  %v4139_v4 = vld [vmem:[#allocation4 + $0x29] sm:$0xff] }
 0x3bf   : > { %v4003_v53 = vpop.f32.mrb[128].mxu1 }
 0x3c0   : > { %v4004_v62 = vadd.f32 %v4003_v53, %v3947_v21  ;;  %v6097_v57 = vpop.f32.mrb[129].mxu1  ;;  %v4057_v5 = vmax.f32 %v4051_v50, 0.0  ;;  %v6360_v53 = vld [vmem:[%s7676_s10 + $0x1e8] sm:$0xff]   ;;  %v6364_v50 = vld [vmem:[%s7676_s10 + $0x210] sm:$0xff]  }
 0x3c1   : > { %v4006_v52 = vpop.f32.mrb[130].mxu1 }
 0x3c2   : > { %v4039_v28 = vmul.f32 %v5300_v0, %v4004_v62  ;;  %v4007_v7 = vadd.f32 %v4006_v52, %v3950_v44  ;;  %v6098_v12 = vpop.f32.mrb[131].mxu1  ;;  %v4116_v44 = vpack.c.bf16 %v4113_v40, %v4112_v37  ;;  %v6361_v62 = vld [vmem:[%s7676_s10 + $0x208] sm:$0xff]  }
 0x3c3   : > { %v6362_v52 = vld [vmem:[%s7676_s10 + $0x1a8] sm:$0xff]   ;;  %v6366_v12 = vld [vmem:[%s7676_s10 + $0x1f8] sm:$0xff]  }
 0x3c4   : > { %v4052_v30 = vadd.f32 %v5301_v41, %v4039_v28  ;;  %v4040_v13 = vmul.f32 %v5300_v0, %v4007_v7  ;;  %v4131_v28 = vld [vmem:[#allocation4 + $0x28] sm:$0xff] }
 0x3c6   : > { %v4058_v42 = vmax.f32 %v4052_v30, 0.0  ;;  %v4053_v16 = vadd.f32 %v5301_v41, %v4040_v13  ;;  %v6367_v30 = vld [vmem:[%s7676_s10 + $0x218] sm:$0xff]   ;;  %v4155_v13 = vld [vmem:[#allocation4 + $0x30] sm:$0xff] }
 0x3c7   : > { %v4011_v14 = vpop.f32.mrb[132].mxu1 }
 0x3c8   : > { %v4075_v15 = vmax.f32 %v4057_v5, %v4058_v42  ;;  %v4012_v6 = vadd.f32 %v4011_v14, %v3955_v45  ;;  %v6101_v54 = vpop.f32.mrb[133].mxu1  ;;  %v4059_v48 = vmax.f32 %v4053_v16, 0.0  ;;  %v6368_v5 = vld [vmem:[%s7676_s10 + $0x1b8] sm:$0xff]   ;;  %v6369_v42 = vld [vmem:[%s7676_s10 + $0x220] sm:$0xff]   ;;  %v4157_v14 = vpack.c.bf16 %v4155_v13, %v4131_v28 }
 0x3c9   : > { %v4014_v60 = vpop.f32.mrb[134].mxu1  ;;  %v6371_v54 = vld [vmem:[%s7676_s10 + $0x230] sm:$0xff]   ;;  %v6372_v16 = vld [vmem:[%s7676_s10 + $0x238] sm:$0xff]  }
 0x3ca   : > { %4080 = vst [vmem:[#allocation7 + $0x8] sm:$0xff] %v4075_v15  ;;  %v4041_v11 = vmul.f32 %v5300_v0, %v4012_v6  ;;  %v4015_v17 = vadd.f32 %v4014_v60, %v3958_v59  ;;  %v6102_v49 = vpop.f32.mrb[135].mxu1  ;;  %v6370_v15 = vld [vmem:[%s7676_s10 + $0x228] sm:$0xff]  }
 0x3cb   : > { %v4147_v6 = vld [vmem:[#allocation4 + $0x2f] sm:$0xff]  ;;  %v5887_v49 = vpop.f32.mrb[136].mxu0 }
 0x3cc   : > { %v4054_v23 = vadd.f32 %v5301_v41, %v4041_v11  ;;  %v4042_v26 = vmul.f32 %v5300_v0, %v4015_v17  ;;  %v6359_v0 = vld [vmem:[%s7676_s10 + $0x1a0] sm:$0xff]   ;;  %v4149_v60 = vpack.c.bf16 %v4147_v6, %v7590_v9  ;;  %v4163_v11 = vld [vmem:[#allocation4 + $0x31] sm:$0xff] }
 0x3cd   : > { %v4165_v17 = vpack.c.bf16 %v4163_v11, %v4139_v4 }
 0x3ce   : > { %v4060_v51 = vmax.f32 %v4054_v23, 0.0  ;;  %v4055_v35 = vadd.f32 %v5301_v41, %v4042_v26  ;;  %v5888_v23 = vpop.f32.mrb[137].mxu0 }
 0x3cf   : > { %v5889_v26 = vadd.f32 %v5888_v23, %v5887_v49  ;;  %v5375_v49 = vld [vmem:[%s7678_s12] ss:$0 sm:$0xff] }
 0x3d0   : > { %v4077_v38 = vmax.f32 %v4059_v48, %v4060_v51  ;;  %v4061_v8 = vmax.f32 %v4055_v35, 0.0  ;;  %v5890_v48 = vpop.f32.mrb[138].mxu0 }
 0x3d1   : > { %v4085_v32 = vld [vmem:[#allocation7 + $0x9] ss:$2 sm:$0x3]  ;;  %v4087_v18 = vld [vmem:[#allocation7 + $0xa] ss:$2 sm:$0x3] }
 0x3d2   : > { %4082 = vst [vmem:[#allocation7 + $0x18] sm:$0xff] %v4077_v38  ;;  %v4078_v22 = vmax.f32 %v4060_v51, %v4061_v8  ;;  %v4088_v29 = vmax.f32 %v4085_v32, %v4087_v18  ;;  %v5891_v51 = vpop.f32.mrb[139].mxu0 }
 0x3d3   : > { %v5892_v35 = vadd.f32 %v5891_v51, %v5890_v48 }
 0x3d4   : > { %4083 = vst [vmem:[#allocation7 + $0x20] sm:$0xff] %v4078_v22  ;;  %4089 = vst [vmem:[#allocation4 + $0x19] sm:$0x3] %v4088_v29 }
 0x3d9   : > { %v4091_v39 = vld [vmem:[#allocation7 + $0x19] ss:$2 sm:$0x3]  ;;  %v4093_v21 = vld [vmem:[#allocation7 + $0x1a] ss:$2 sm:$0x3] }
 0x3da   : > { %v4094_v43 = vmax.f32 %v4091_v39, %v4093_v21 }
 0x3db   : > { %v4121_v2 = vld [vmem:[#allocation4 + $0x17] sm:$0xff] }
 0x3dc   : > { %v4124_v10 = vpack.c.bf16 %v4121_v2, %v7489_v56  ;;  %4095 = vst [vmem:[#allocation4 + $0x21] sm:$0x3] %v4094_v43  ;;  %v6350_v56 = vld [vmem:[%s7676_s10 + $0x1d0] sm:$0xff]   ;;  %v4106_v34 = vld [vmem:[#allocation4 + $0x18] sm:$0xff] }
 0x3dd   : > { %v4114_v55 = vld [vmem:[#allocation4 + $0x19] sm:$0xff]  ;;  %v4132_v41 = vpack.c.bf16 %v4106_v34, %v7483_v24  ;;  %v6363_v24 = vld [vmem:[%s7676_s10 + $0x1f0] sm:$0xff]  }
 0x3de   : > { %4843 = vmatprep.mubr.bf16.mxu1 %v4124_v10  ;;  %v4140_v19 = vpack.c.bf16 %v4114_v55, %v4113_v40 }
 0x3df   : > { %4844 = vmatmul.mubr.bf16.vlgmr.msra.gmra.mrb[136].mxu1 %v4116_v44 }
 0x3e0   : > { %5956 = vmatpush3.bf16.msra.mxu1 %v6344_v25 }
 0x3e1   : > { %5957 = vmatprep.subr.bf16.mxu1 %v6346_v46 }
 0x3e3   : > { %v4107_v27 = vld [vmem:[#allocation4 + $0x20] sm:$0xff] }
 0x3e4   : > { %v4122_v1 = vld [vmem:[#allocation4 + $0x1f] sm:$0xff]  ;;  %5958 = vmatpush3.bf16.msra.mxu1 %v6348_v31  ;;  %v4109_v36 = vpack.c.bf16 %v4107_v27, %v4106_v34  ;;  %v4133_v7 = vpack.c.bf16 %v4131_v28, %v4107_v27 }
 0x3e5   : > { %v4115_v20 = vld [vmem:[#allocation4 + $0x21] sm:$0xff]  ;;  %v4125_v58 = vpack.c.bf16 %v7590_v9, %v4122_v1  ;;  %v4101_v45 = vpack.c.bf16 %v4122_v1, %v4121_v2  ;;  %5959 = vmatprep.subr.bf16.mxu1 %v6350_v56 }
 0x3e6   : > { %v4117_v59 = vpack.c.bf16 %v4115_v20, %v4114_v55  ;;  %4802 = vmatprep.mubr.bf16.mxu0 %v4109_v36  ;;  %v4141_v57 = vpack.c.bf16 %v4139_v4, %v4115_v20 }
 0x3e7   : > { %4851 = vmatprep.mubr.bf16.mxu1 %v4125_v58  ;;  %4803 = vmatmul.mubr.bf16.gmra.mrb[140].mxu0 %v4101_v45 }
 0x3e8   : > { %4852 = vmatmul.mubr.bf16.gmra.mrb[140].mxu1 %v4117_v59  ;;  %4892 = vmatprep.mubr.bf16.mxu0 %v4140_v19 }
 0x3e9   : > { %5960 = vmatpush3.bf16.msra.mxu1 %v6352_v61  ;;  %4941 = vmatprep.mubr.bf16.mxu1 %v4109_v36 }
 0x3ea   : > { %5961 = vmatprep.subr.bf16.mxu1 %v6354_v63 }
 0x3ed   : > { %5962 = vmatpush3.bf16.msra.mxu1 %v6356_v33 }
 0x3ee   : > { %5963 = vmatprep.subr.bf16.mxu1 %v6357_v3 }
 0x3ef   : > { %4893 = vmatmul.mubr.bf16.vlgmr.msra.gmra.mrb[144].mxu0 %v4132_v41 }
 0x3f0   : > { %6104 = vmatpush3.bf16.msra.mxu0 %v7570_v47  ;;  %4900 = vmatprep.mubr.bf16.mxu0 %v4141_v57  ;;  %v6365_v47 = vld [vmem:[%s7676_s10 + $0x1b0] sm:$0xff]  }
 0x3f1   : > { %5964 = vmatpush3.bf16.msra.mxu1 %v6359_v0  ;;  %6105 = vmatprep.subr.bf16.mxu0 %v6361_v62 }
 0x3f2   : > { %5965 = vmatprep.subr.bf16.mxu1 %v6360_v53 }
 0x3f4   : > { %6106 = vmatpush3.bf16.msra.mxu0 %v6361_v62 }
 0x3f5   : > { %5966 = vmatpush3.bf16.msra.mxu1 %v6362_v52  ;;  %6107 = vmatprep.subr.bf16.mxu0 %v6364_v50 }
 0x3f6   : > { %5967 = vmatprep.subr.bf16.mxu1 %v6363_v24 }
 0x3f7   : > { %4901 = vmatmul.mubr.bf16.gmra.mrb[148].mxu0 %v4133_v7 }
 0x3f8   : > { %6108 = vmatpush3.bf16.msra.mxu0 %v6364_v50  ;;  %6119 = vmatprep.mubr.bf16.mxu0 %v4117_v59 }
 0x3f9   : > { %5968 = vmatpush3.bf16.msra.mxu1 %v6365_v47  ;;  %6109 = vmatprep.subr.bf16.mxu0 %v6367_v30 }
 0x3fa   : > { %5969 = vmatprep.subr.bf16.mxu1 %v6366_v12 }
 0x3fc   : > { %6110 = vmatpush3.bf16.msra.mxu0 %v6367_v30 }
 0x3fd   : > { %5970 = vmatpush3.bf16.msra.mxu1 %v6368_v5  ;;  %6111 = vmatprep.subr.bf16.mxu0 %v6369_v42 }
 0x400   : > { %4942 = vmatmul.mubr.bf16.vlgmr.msra.gmra.mrb[144].mxu1 %v4101_v45  ;;  %6112 = vmatpush3.bf16.msra.mxu0 %v6369_v42 }
 0x401   : > { %4949 = vmatprep.mubr.bf16.mxu1 %v4157_v14  ;;  %6113 = vmatprep.subr.bf16.mxu0 %v6370_v15 }
 0x404   : > { %6114 = vmatpush3.bf16.msra.mxu0 %v6370_v15 }
 0x405   : > { %6115 = vmatprep.subr.bf16.mxu0 %v6371_v54 }
 0x408   : > { %4950 = vmatmul.mubr.bf16.gmra.mrb[148].mxu1 %v4149_v60  ;;  %6116 = vmatpush3.bf16.msra.mxu0 %v6371_v54 }
 0x409   : > { %6117 = vmatprep.subr.bf16.mxu0 %v6372_v16 }
 0x40c   : > { %6118 = vmatpush3.bf16.msra.mxu0 %v6372_v16  ;;  %v5374_v16 = vld [vmem:[%s7677_s11] ss:$0 sm:$0xff] }
 0x40f   : > { %6120 = vmatmul.mubr.bf16.vlgmr.msra.gmra.mrb[152].mxu0 %v4165_v17 }
 0x4b2   : > { %v5915_v38 = vpop.f32.mrb[136].mxu1 }
 0x4b3   : > { %v5916_v8 = vpop.f32.mrb[137].mxu1 }
 0x4b4   : > { %v5917_v32 = vadd.f32 %v5916_v8, %v5915_v38  ;;  %v5918_v18 = vpop.f32.mrb[138].mxu1 }
 0x4b5   : > { %v5919_v22 = vpop.f32.mrb[139].mxu1 }
 0x4b6   : > { %v4846_v29 = vadd.f32 %v5917_v32, %v5889_v26  ;;  %v5920_v37 = vadd.f32 %v5919_v22, %v5918_v18 }
 0x4b8   : > { %v4849_v40 = vadd.f32 %v5920_v37, %v5892_v35 }
 0x4ba   : > { %v5893_v39 = vpop.f32.mrb[140].mxu0 }
 0x4bb   : > { %v5921_v21 = vpop.f32.mrb[140].mxu1  ;;  %v5894_v43 = vpop.f32.mrb[141].mxu0 }
 0x4bc   : > { %v5922_v2 = vpop.f32.mrb[141].mxu1  ;;  %v5895_v44 = vadd.f32 %v5894_v43, %v5893_v39  ;;  %v5896_v25 = vpop.f32.mrb[142].mxu0 }
 0x4bd   : > { %v5923_v10 = vadd.f32 %v5922_v2, %v5921_v21  ;;  %v5924_v46 = vpop.f32.mrb[142].mxu1  ;;  %v5897_v31 = vpop.f32.mrb[143].mxu0 }
 0x4be   : > { %v5925_v9 = vpop.f32.mrb[143].mxu1  ;;  %v5898_v34 = vadd.f32 %v5897_v31, %v5896_v25 }
 0x4bf   : > { %v4854_v56 = vadd.f32 %v5923_v10, %v5895_v44  ;;  %v5926_v55 = vadd.f32 %v5925_v9, %v5924_v46 }
 0x4c1   : > { %v4857_v27 = vadd.f32 %v5926_v55, %v5898_v34 }
 0x4c2   : > { %v5943_v1 = vpop.f32.mrb[144].mxu0 }
 0x4c3   : > { %v5944_v20 = vpop.f32.mrb[145].mxu0 }
 0x4c4   : > { %v5945_v36 = vadd.f32 %v5944_v20, %v5943_v1  ;;  %v5946_v58 = vpop.f32.mrb[146].mxu0 }
 0x4c5   : > { %v5947_v45 = vpop.f32.mrb[147].mxu0 }
 0x4c6   : > { %v4895_v59 = vadd.f32 %v5945_v36, %v4846_v29  ;;  %v5948_v61 = vadd.f32 %v5947_v45, %v5946_v58 }
 0x4c8   : > { %v4898_v63 = vadd.f32 %v5948_v61, %v4849_v40 }
 0x4ca   : > { %v5949_v19 = vpop.f32.mrb[148].mxu0 }
 0x4cb   : > { %v5950_v33 = vpop.f32.mrb[149].mxu0 }
 0x4cc   : > { %v5951_v3 = vadd.f32 %v5950_v33, %v5949_v19  ;;  %v5952_v0 = vpop.f32.mrb[150].mxu0 }
 0x4cd   : > { %v5953_v4 = vpop.f32.mrb[151].mxu0 }
 0x4ce   : > { %v4903_v41 = vadd.f32 %v5951_v3, %v4854_v56  ;;  %v5954_v53 = vadd.f32 %v5953_v4, %v5952_v0 }
 0x4d0   : > { %v4906_v62 = vadd.f32 %v5954_v53, %v4857_v27 }
 0x4d3   : > { %v5971_v57 = vpop.f32.mrb[144].mxu1 }
 0x4d4   : > { %v5972_v52 = vpop.f32.mrb[145].mxu1 }
 0x4d5   : > { %v5973_v24 = vadd.f32 %v5972_v52, %v5971_v57  ;;  %v5974_v50 = vpop.f32.mrb[146].mxu1 }
 0x4d6   : > { %v5975_v28 = vpop.f32.mrb[147].mxu1 }
 0x4d7   : > { %v5976_v47 = vadd.f32 %v5975_v28, %v5974_v50  ;;  %v4944_v7 = vadd.f32 %v5973_v24, %v4895_v59 }
 0x4d9   : > { %v4947_v12 = vadd.f32 %v5976_v47, %v4898_v63 }
 0x4db   : > { %v5977_v30 = vpop.f32.mrb[148].mxu1 }
 0x4dc   : > { %v5978_v5 = vpop.f32.mrb[149].mxu1 }
 0x4dd   : > { %v5979_v42 = vadd.f32 %v5978_v5, %v5977_v30  ;;  %v5980_v13 = vpop.f32.mrb[150].mxu1 }
 0x4de   : > { %v5981_v14 = vpop.f32.mrb[151].mxu1 }
 0x4df   : > { %v5982_v15 = vadd.f32 %v5981_v14, %v5980_v13  ;;  %v4952_v6 = vadd.f32 %v5979_v42, %v4903_v41 }
 0x4e1   : > { %v4955_v54 = vadd.f32 %v5982_v15, %v4906_v62 }
 0x4e2   : > { %v6121_v60 = vpop.f32.mrb[152].mxu0 }
 0x4e3   : > { %v5001_v11 = vadd.f32 %v6121_v60, %v4952_v6  ;;  %v4992_v17 = vpop.f32.mrb[153].mxu0 }
 0x4e4   : > { %v4993_v23 = vadd.f32 %v4992_v17, %v4944_v7  ;;  %v6122_v26 = vpop.f32.mrb[154].mxu0 }
 0x4e5   : > { %v5024_v48 = vmul.f32 %v5374_v16, %v5001_v11  ;;  %v5004_v51 = vadd.f32 %v6122_v26, %v4955_v54  ;;  %v4995_v35 = vpop.f32.mrb[155].mxu0 }
 0x4e6   : > { %v5022_v38 = vmul.f32 %v5374_v16, %v4993_v23  ;;  %v4996_v8 = vadd.f32 %v4995_v35, %v4947_v12 }
 0x4e7   : > { %v5035_v32 = vadd.f32 %v5375_v49, %v5024_v48  ;;  %v5025_v18 = vmul.f32 %v5374_v16, %v5004_v51 }
 0x4e8   : > { %v5033_v22 = vadd.f32 %v5375_v49, %v5022_v38  ;;  %v5023_v29 = vmul.f32 %v5374_v16, %v4996_v8 }
 0x4e9   : > { %v5036_v37 = vadd.f32 %v5375_v49, %v5025_v18  ;;  %v5039_v39 = vmax.f32 %v5035_v32, 0.0 }
 0x4ea   : > { %v5034_v40 = vadd.f32 %v5375_v49, %v5023_v29  ;;  %v5037_v43 = vmax.f32 %v5033_v22, 0.0 }
 0x4eb   : > { %v5040_v21 = vmax.f32 %v5036_v37, 0.0 }
 0x4ec   : > { %v5038_v2 = vmax.f32 %v5034_v40, 0.0 }
 0x4ed   : > { %v5051_v44 = vmax.f32 %v5039_v39, %v5040_v21 }
 0x4ee   : > { %v5049_v10 = vmax.f32 %v5037_v43, %v5038_v2  ;;  %v5050_v25 = vmax.f32 %v5038_v2, %v5039_v39 }
 0x4ef   : > { %5054 = vst [vmem:[#allocation7 + $0x10] sm:$0xff] %v5051_v44 }
 0x4f0   : > { %5052 = vst [vmem:[#allocation7] sm:$0xff] %v5049_v10  ;;  %5053 = vst [vmem:[#allocation7 + $0x8] sm:$0xff] %v5050_v25 }
 0x4f7   : > { %v5055_v46 = vld [vmem:[#allocation7 + $0x9] sm:$0x1]  ;;  %v5056_v31 = vld [vmem:[#allocation7 + $0xa] sm:$0x1] }
 0x4f8   : > { %v5057_v9 = vmax.f32 %v5055_v46, %v5056_v31 }
 0x4fa   : > { %5058 = vst [vmem:[%s436_s16] sm:$0x1] %v5057_v9 }
 0x4fb PF: > { %s23_s25 = sadd.s32 1, %s6381_s25  }
 0x4fc   : > { %p20_p4 = scmp.ge.s32.totalorder %s23_s25, 4  }
 0x4fe   :  { %22 = sbr.rel (!%p20_p4) target bundleno = 1 (0x1), region = 129 }

</bundles_post_ra>
